<compile_context>
chip_gen: v5e
topology: v5e:2x2
jax: 0.10.0
libtpu: 0.0.40
codegen_flags: <defaults>
</compile_context>

<pallas_src>
import functools

import jax
import jax.numpy as jnp
from jax import lax
from jax.experimental import pallas as pl
from jax.experimental.pallas import tpu as pltpu


def cnn_kernel(x_ref, w1_ref, b1_ref, w2_ref, b2_ref, wfc_ref, bfc_ref, o_ref,
               *, seq_len, kernel_size):
    # x_ref block: (M, Cin) with M = bb * L -- whole sequences stacked along
    # sublanes (the sublane-roll conv below relies on this invariant).
    x = x_ref[...]
    m_rows = x.shape[0]
    pad = kernel_size // 2
    mxu_dtype = w1_ref.dtype              # weights pre-cast on the host

    # Hoisted once per kernel invocation and reused by both conv layers
    # (JAX does not CSE iota / broadcast; don't rebuild these per layer/tap).
    pos = lax.broadcasted_iota(jnp.int32, (m_rows, 1), 0) % seq_len
    masks = {}
    for t in range(kernel_size):
        d = t - pad
        if d != 0:
            masks[d] = jnp.logical_and(pos + d >= 0, pos + d < seq_len)

    def conv1d_same(inp, w_ref, b_ref):
        # "same" Conv1d as K accumulating matmuls (one per tap): no lane
        # concat / sub-128-lane relayout; the extra vmatmul pushes are free
        # at these sizes.  Shifted taps come from sublane rolls (XLU slot)
        # plus the hoisted boundary masks (zero padding at sequence edges).
        acc = None
        for t in range(kernel_size):
            d = t - pad                   # output row l reads input row l + d
            if d == 0:
                tap = inp
            else:
                rolled = pltpu.roll(inp, shift=(-d) % m_rows, axis=0)
                tap = jnp.where(masks[d], rolled, 0.0)
            y = jnp.dot(tap.astype(mxu_dtype), w_ref[t],
                        preferred_element_type=jnp.float32)
            acc = y if acc is None else acc + y
        return acc + b_ref[...]           # bias add stays f32

    h1 = jnp.maximum(conv1d_same(x, w1_ref, b1_ref), 0.0)    # (M, Ch)
    h2 = jnp.maximum(conv1d_same(h1, w2_ref, b2_ref), 0.0)   # (M, Ch)

    logits = jnp.dot(h2.astype(mxu_dtype), wfc_ref[...],
                     preferred_element_type=jnp.float32) + bfc_ref[...]  # (M, Co_pad)

    # Stable softmax.  Padded output lanes carry a -1e30 bias so exp()
    # underflows to exactly 0 there.  Exact divide (not approx reciprocal) so
    # every row sums to 1 within f32 eps -- this fixed the normalization check.
    mx = jnp.max(logits, axis=-1, keepdims=True)
    e = jnp.exp(logits - mx)
    denom = jnp.sum(e, axis=-1, keepdims=True)
    o_ref[...] = (e / denom).astype(o_ref.dtype)


def _tensorcores_per_chip():
    """TensorCores per chip ('parallel' grid axes shard across them).
    v7x (and the other megacore chips v4/v5p) expose 2 TCs per device;
    v5e / v6e have 1.  Falls back to 1 (e.g. CPU interpret mode)."""
    try:
        kind = (getattr(jax.devices()[0], "device_kind", "") or "").lower()
    except Exception:
        return 1
    if ("v7" in kind) or ("v5p" in kind) or ("v4" in kind):
        return 2
    return 1


def cnn_forward(x, w1, b1, w2, b2, wfc, bfc, *, grid_steps=None,
                out_dtype=jnp.float32):
    """x: (B, L, Cin) f32.  Kernel-layout params (see pack_params):
    w1 (K, Cin, Ch), w2 (K, Ch, Ch), wfc (Ch, Co_pad) -- optionally host-cast
    to bf16 -- and f32 biases as (1, C) rows (fc bias lane-padded with -1e30).
    Returns (B, L, Co_pad); caller slices the real output channels."""
    B, L, Cin = x.shape
    K = w1.shape[0]
    Co_pad = wfc.shape[1]

    # One grid step per TensorCore: 1 on v5e/v6e, 2 on v7x.  At these sizes the
    # kernel is per-step-overhead / HBM-writeback bound, so extra grid steps
    # only add ~0.35 us each.  (If B grows, scale m_blk up -- ~2048-8192 rows --
    # rather than adding steps, raise vmem_limit_bytes accordingly, and
    # single-buffer the constant-index weight blocks with pl.Buffered(1).)
    if grid_steps is None:
        grid_steps = _tensorcores_per_chip()
    grid_steps = max(1, min(int(grid_steps), B))

    bb = pl.cdiv(B, grid_steps)           # whole sequences per block
    while (bb * L) % 8 != 0:              # keep the block's sublane dim 8-aligned
        bb += 1
    b_pad = grid_steps * bb
    m_blk = bb * L
    # Invariant the sublane-roll conv relies on: every block holds only whole
    # sequences (bb is an integer batch count), never a split sequence.
    assert m_blk == bb * L and m_blk % 8 == 0

    if b_pad != B:
        x = jnp.pad(x, ((0, b_pad - B), (0, 0), (0, 0)))
    x2 = x.reshape(b_pad * L, Cin)        # flatten (batch, pos) into sublanes

    out2 = pl.pallas_call(
        functools.partial(cnn_kernel, seq_len=L, kernel_size=K),
        out_shape=jax.ShapeDtypeStruct((b_pad * L, Co_pad), out_dtype),
        grid_spec=pltpu.PrefetchScalarGridSpec(
            num_scalar_prefetch=0,
            grid=(grid_steps,),
            in_specs=[
                pl.BlockSpec((m_blk, Cin), lambda i: (i, 0)),
                # Weights/biases: full-array blocks with constant index maps
                # -> fetched once, resident across grid steps.
                pl.BlockSpec(w1.shape, lambda i: (0, 0, 0)),
                pl.BlockSpec(b1.shape, lambda i: (0, 0)),
                pl.BlockSpec(w2.shape, lambda i: (0, 0, 0)),
                pl.BlockSpec(b2.shape, lambda i: (0, 0)),
                pl.BlockSpec(wfc.shape, lambda i: (0, 0)),
                pl.BlockSpec(bfc.shape, lambda i: (0, 0)),
            ],
            out_specs=pl.BlockSpec((m_blk, Co_pad), lambda i: (i, 0)),
        ),
        compiler_params=pltpu.CompilerParams(
            dimension_semantics=("parallel",)),
    )(x2, w1, b1, w2, b2, wfc, bfc)

    return out2.reshape(b_pad, L, Co_pad)[:B]


def pack_params(w1_t, b1, w2_t, b2, wfc_t, bfc, *, lane_pad=128,
                mxu_dtype=jnp.float32):
    """PyTorch-layout params -> kernel layout.
    conv weight (Cout, Cin, K) -> (K, Cin, Cout): one (Cin, Cout) MXU operand
    per tap (per-tap accumulating matmuls, no lane concat in the kernel);
    fc weight (Co, Ch) -> (Ch, Co_pad) zero-padded to a full 128-lane store;
    fc bias padded with -1e30 so padded lanes vanish in the softmax.
    Weights are pre-cast to mxu_dtype on the host (bf16 = MXU fast path on
    v5e/v6e/v7x, no per-step casts in the kernel); biases stay f32."""
    def conv_w(w):
        return jnp.transpose(w, (2, 1, 0)).astype(mxu_dtype)   # (K, Cin, Cout)

    co = wfc_t.shape[0]
    co_pad = pl.cdiv(co, lane_pad) * lane_pad
    wfc_k = jnp.pad(wfc_t.T, ((0, 0), (0, co_pad - co))).astype(mxu_dtype)
    bfc_k = jnp.pad(bfc, (0, co_pad - co),
                    constant_values=-1e30)[None, :].astype(jnp.float32)
    return (conv_w(w1_t), b1[None, :].astype(jnp.float32),
            conv_w(w2_t), b2[None, :].astype(jnp.float32),
            wfc_k, bfc_k)


def reference_forward(x, w1_t, b1, w2_t, b2, wfc_t, bfc):
    """Pure-JAX reference mirroring the PyTorch module exactly (f32 end-to-end).
    Weights in PyTorch layout: conv (Cout, Cin, K), fc (Co, Ch)."""
    xc = jnp.transpose(x, (0, 2, 1))      # (B, Cin, L) -- NCW like PyTorch
    dn = ('NCW', 'OIW', 'NCW')
    pad = w1_t.shape[-1] // 2
    h = lax.conv_general_dilated(xc, w1_t, (1,), [(pad, pad)],
                                 dimension_numbers=dn) + b1[None, :, None]
    h = jnp.maximum(h, 0.0)
    h = lax.conv_general_dilated(h, w2_t, (1,), [(pad, pad)],
                                 dimension_numbers=dn) + b2[None, :, None]
    h = jnp.maximum(h, 0.0)
    h = jnp.transpose(h, (0, 2, 1))       # (B, L, Ch)
    logits = h @ wfc_t.T + bfc
    return jax.nn.softmax(logits, axis=-1)


if __name__ == "__main__":
    # Small shapes consistent with the module's forward: x is (B, L, input_dim).
    B, L = 16, 16
    input_dim, num_channels, output_dim, kernel_size = 8, 16, 8, 3

    key = jax.random.PRNGKey(0)
    ks = jax.random.split(key, 8)

    x = jax.random.normal(ks[0], (B, L, input_dim), dtype=jnp.float32)

    # Deterministic parameter init (PyTorch layouts), scaled small.
    w1_t = 0.1 * jax.random.normal(ks[1], (num_channels, input_dim, kernel_size), jnp.float32)
    b1 = 0.1 * jax.random.normal(ks[2], (num_channels,), jnp.float32)
    w2_t = 0.1 * jax.random.normal(ks[3], (num_channels, num_channels, kernel_size), jnp.float32)
    b2 = 0.1 * jax.random.normal(ks[4], (num_channels,), jnp.float32)
    wfc_t = 0.1 * jax.random.normal(ks[5], (output_dim, num_channels), jnp.float32)
    bfc = 0.1 * jax.random.normal(ks[6], (output_dim,), jnp.float32)

    # mxu_dtype=jnp.bfloat16 is the v5e/v6e/v7x MXU fast path (f32 accumulate);
    # f32 here keeps exact compute parity with the f32 PyTorch module.
    params = pack_params(w1_t, b1, w2_t, b2, wfc_t, bfc, mxu_dtype=jnp.float32)

    # bf16 output store halves the dominant HBM writeback of the 128-lane
    # padded output (probabilities in [0, 1] tolerate bf16).  Use
    # out_dtype=jnp.float32 for bit-level parity with the PyTorch module.
    out_padded = cnn_forward(x, *params, out_dtype=jnp.bfloat16)
    out_padded = jax.block_until_ready(out_padded)
    out = out_padded[:, :, :output_dim].astype(jnp.float32)

    ref = reference_forward(x, w1_t, b1, w2_t, b2, wfc_t, bfc)
    assert out.shape == (B, L, output_dim)
    # Tolerance = bf16 quantization of the stored probabilities (<= ~2e-3);
    # the compute itself is f32 end-to-end and the softmax uses an exact divide.
    assert jnp.allclose(out, ref, atol=5e-3, rtol=2e-2), "mismatch vs JAX reference"
    assert jnp.allclose(jnp.sum(out, axis=-1), 1.0, atol=1e-2), "softmax not normalized"

    print("KERNEL_OK")
</pallas_src>

<mosaic_0001>
module attributes {stable_mosaic.version = 11 : i64} {
  func.func @cnn_kernel(%arg0: i32, %arg1: memref<256x8xf32, #tpu.memory_space<vmem>>, %arg2: memref<3x8x16xf32, #tpu.memory_space<vmem>>, %arg3: memref<1x16xf32, #tpu.memory_space<vmem>>, %arg4: memref<3x16x16xf32, #tpu.memory_space<vmem>>, %arg5: memref<1x16xf32, #tpu.memory_space<vmem>>, %arg6: memref<16x128xf32, #tpu.memory_space<vmem>>, %arg7: memref<1x128xf32, #tpu.memory_space<vmem>>, %arg8: memref<256x128xbf16, #tpu.memory_space<vmem>>) attributes {dimension_semantics = [#tpu.dimension_semantics<parallel>], iteration_bounds = array<i64: 1>, scalar_prefetch = 0 : i64, scratch_operands = 0 : i64, tpu.core_type = #tpu.core_type<tc>, window_params = [{transform_indices = @transform_0, window_bounds = array<i64: 256, 8>}, {pipeline_mode = #tpu.pipeline_mode<synchronous>, transform_indices = @transform_1, window_bounds = array<i64: 3, 8, 16>}, {pipeline_mode = #tpu.pipeline_mode<synchronous>, transform_indices = @transform_2, window_bounds = array<i64: 1, 16>}, {pipeline_mode = #tpu.pipeline_mode<synchronous>, transform_indices = @transform_3, window_bounds = array<i64: 3, 16, 16>}, {pipeline_mode = #tpu.pipeline_mode<synchronous>, transform_indices = @transform_4, window_bounds = array<i64: 1, 16>}, {pipeline_mode = #tpu.pipeline_mode<synchronous>, transform_indices = @transform_5, window_bounds = array<i64: 16, 128>}, {pipeline_mode = #tpu.pipeline_mode<synchronous>, transform_indices = @transform_6, window_bounds = array<i64: 1, 128>}, {transform_indices = @transform_7, window_bounds = array<i64: 256, 128>}]} {
    %c0 = arith.constant 0 : index
    %c0_0 = arith.constant 0 : index
    %0 = vector.load %arg1[%c0, %c0_0] : memref<256x8xf32, #tpu.memory_space<vmem>>, vector<256x8xf32>
    %1 = tpu.iota {dimensions = array<i32: 0>} : vector<256x1xi32>
    %c16_i32 = arith.constant 16 : i32
    %c0_i32 = arith.constant 0 : i32
    %2 = arith.cmpi eq, %c16_i32, %c0_i32 : i32
    %c1_i32 = arith.constant 1 : i32
    %3 = arith.select %2, %c1_i32, %c16_i32 : i32
    %4 = vector.broadcast %3 : i32 to vector<256x1xi32>
    %5 = arith.remsi %1, %4 : vector<256x1xi32>
    %c0_i32_1 = arith.constant 0 : i32
    %6 = vector.broadcast %c0_i32_1 : i32 to vector<256x1xi32>
    %7 = arith.cmpi ne, %5, %6 : vector<256x1xi32>
    %c0_i32_2 = arith.constant 0 : i32
    %8 = vector.broadcast %c0_i32_2 : i32 to vector<256x1xi32>
    %9 = arith.cmpi slt, %5, %8 : vector<256x1xi32>
    %c0_i32_3 = arith.constant 0 : i32
    %10 = arith.cmpi slt, %3, %c0_i32_3 : i32
    %11 = vector.broadcast %10 : i1 to vector<256x1xi1>
    %12 = vector.broadcast %11 : vector<256x1xi1> to vector<256x1xi1>
    %13 = arith.xori %9, %12 : vector<256x1xi1>
    %14 = arith.andi %13, %7 : vector<256x1xi1>
    %15 = vector.broadcast %3 : i32 to vector<256x1xi32>
    %16 = arith.addi %5, %15 : vector<256x1xi32>
    %17 = arith.select %14, %16, %5 : vector<256x1xi1>, vector<256x1xi32>
    %c-1_i32 = arith.constant -1 : i32
    %18 = vector.broadcast %c-1_i32 : i32 to vector<256x1xi32>
    %19 = arith.addi %17, %18 : vector<256x1xi32>
    %c0_i32_4 = arith.constant 0 : i32
    %20 = vector.broadcast %c0_i32_4 : i32 to vector<256x1xi32>
    %21 = arith.cmpi sge, %19, %20 : vector<256x1xi32>
    %c-1_i32_5 = arith.constant -1 : i32
    %22 = vector.broadcast %c-1_i32_5 : i32 to vector<256x1xi32>
    %23 = arith.addi %17, %22 : vector<256x1xi32>
    %c16_i32_6 = arith.constant 16 : i32
    %24 = vector.broadcast %c16_i32_6 : i32 to vector<256x1xi32>
    %25 = arith.cmpi slt, %23, %24 : vector<256x1xi32>
    %26 = arith.andi %21, %25 : vector<256x1xi1>
    %c1_i32_7 = arith.constant 1 : i32
    %27 = vector.broadcast %c1_i32_7 : i32 to vector<256x1xi32>
    %28 = arith.addi %17, %27 : vector<256x1xi32>
    %c0_i32_8 = arith.constant 0 : i32
    %29 = vector.broadcast %c0_i32_8 : i32 to vector<256x1xi32>
    %30 = arith.cmpi sge, %28, %29 : vector<256x1xi32>
    %c1_i32_9 = arith.constant 1 : i32
    %31 = vector.broadcast %c1_i32_9 : i32 to vector<256x1xi32>
    %32 = arith.addi %17, %31 : vector<256x1xi32>
    %c16_i32_10 = arith.constant 16 : i32
    %33 = vector.broadcast %c16_i32_10 : i32 to vector<256x1xi32>
    %34 = arith.cmpi slt, %32, %33 : vector<256x1xi32>
    %35 = arith.andi %30, %34 : vector<256x1xi1>
    %c1_i32_11 = arith.constant 1 : i32
    %36 = tpu.dynamic_rotate %0 by %c1_i32_11 dim 0 : vector<256x8xf32>, i32 -> vector<256x8xf32>
    %cst = arith.constant 0.000000e+00 : f32
    %37 = vector.shape_cast %26 : vector<256x1xi1> to vector<256x1xi1>
    %38 = vector.broadcast %37 : vector<256x1xi1> to vector<256x8xi1>
    %39 = vector.broadcast %cst : f32 to vector<256x8xf32>
    %40 = arith.select %38, %36, %39 : vector<256x8xi1>, vector<256x8xf32>
    %c0_12 = arith.constant 0 : index
    %c0_13 = arith.constant 0 : index
    %c0_14 = arith.constant 0 : index
    %41 = vector.load %arg2[%c0_12, %c0_13, %c0_14] : memref<3x8x16xf32, #tpu.memory_space<vmem>>, vector<1x8x16xf32>
    %42 = vector.shape_cast %41 : vector<1x8x16xf32> to vector<8x16xf32>
    %cst_15 = arith.constant dense<0.000000e+00> : vector<256x16xf32>
    %43 = tpu.matmul %40, %42, %cst_15 {dimension_numbers = #tpu.dot_dimension_numbers<[1], [0], [0], [1], [0, 0, 1, 1], [], []>} : vector<256x8xf32>, vector<8x16xf32>, vector<256x16xf32> -> vector<256x16xf32>
    %c1 = arith.constant 1 : index
    %c0_16 = arith.constant 0 : index
    %c0_17 = arith.constant 0 : index
    %44 = vector.load %arg2[%c1, %c0_16, %c0_17] : memref<3x8x16xf32, #tpu.memory_space<vmem>>, vector<1x8x16xf32>
    %45 = vector.shape_cast %44 : vector<1x8x16xf32> to vector<8x16xf32>
    %cst_18 = arith.constant dense<0.000000e+00> : vector<256x16xf32>
    %46 = tpu.matmul %0, %45, %cst_18 {dimension_numbers = #tpu.dot_dimension_numbers<[1], [0], [0], [1], [0, 0, 1, 1], [], []>} : vector<256x8xf32>, vector<8x16xf32>, vector<256x16xf32> -> vector<256x16xf32>
    %47 = arith.addf %43, %46 : vector<256x16xf32>
    %c255_i32 = arith.constant 255 : i32
    %48 = tpu.dynamic_rotate %0 by %c255_i32 dim 0 : vector<256x8xf32>, i32 -> vector<256x8xf32>
    %cst_19 = arith.constant 0.000000e+00 : f32
    %49 = vector.shape_cast %35 : vector<256x1xi1> to vector<256x1xi1>
    %50 = vector.broadcast %49 : vector<256x1xi1> to vector<256x8xi1>
    %51 = vector.broadcast %cst_19 : f32 to vector<256x8xf32>
    %52 = arith.select %50, %48, %51 : vector<256x8xi1>, vector<256x8xf32>
    %c2 = arith.constant 2 : index
    %c0_20 = arith.constant 0 : index
    %c0_21 = arith.constant 0 : index
    %53 = vector.load %arg2[%c2, %c0_20, %c0_21] : memref<3x8x16xf32, #tpu.memory_space<vmem>>, vector<1x8x16xf32>
    %54 = vector.shape_cast %53 : vector<1x8x16xf32> to vector<8x16xf32>
    %cst_22 = arith.constant dense<0.000000e+00> : vector<256x16xf32>
    %55 = tpu.matmul %52, %54, %cst_22 {dimension_numbers = #tpu.dot_dimension_numbers<[1], [0], [0], [1], [0, 0, 1, 1], [], []>} : vector<256x8xf32>, vector<8x16xf32>, vector<256x16xf32> -> vector<256x16xf32>
    %56 = arith.addf %47, %55 : vector<256x16xf32>
    %c0_23 = arith.constant 0 : index
    %c0_24 = arith.constant 0 : index
    %57 = vector.load %arg3[%c0_23, %c0_24] : memref<1x16xf32, #tpu.memory_space<vmem>>, vector<1x16xf32>
    %58 = vector.broadcast %57 : vector<1x16xf32> to vector<256x16xf32>
    %59 = arith.addf %56, %58 : vector<256x16xf32>
    %cst_25 = arith.constant 0.000000e+00 : f32
    %60 = vector.broadcast %cst_25 : f32 to vector<256x16xf32>
    %61 = arith.maximumf %59, %60 : vector<256x16xf32>
    %c1_i32_26 = arith.constant 1 : i32
    %62 = tpu.dynamic_rotate %61 by %c1_i32_26 dim 0 : vector<256x16xf32>, i32 -> vector<256x16xf32>
    %cst_27 = arith.constant 0.000000e+00 : f32
    %63 = vector.shape_cast %26 : vector<256x1xi1> to vector<256x1xi1>
    %64 = vector.broadcast %63 : vector<256x1xi1> to vector<256x16xi1>
    %65 = vector.broadcast %cst_27 : f32 to vector<256x16xf32>
    %66 = arith.select %64, %62, %65 : vector<256x16xi1>, vector<256x16xf32>
    %c0_28 = arith.constant 0 : index
    %c0_29 = arith.constant 0 : index
    %c0_30 = arith.constant 0 : index
    %67 = vector.load %arg4[%c0_28, %c0_29, %c0_30] : memref<3x16x16xf32, #tpu.memory_space<vmem>>, vector<1x16x16xf32>
    %68 = vector.shape_cast %67 : vector<1x16x16xf32> to vector<16x16xf32>
    %cst_31 = arith.constant dense<0.000000e+00> : vector<256x16xf32>
    %69 = tpu.matmul %66, %68, %cst_31 {dimension_numbers = #tpu.dot_dimension_numbers<[1], [0], [0], [1], [0, 0, 1, 1], [], []>} : vector<256x16xf32>, vector<16x16xf32>, vector<256x16xf32> -> vector<256x16xf32>
    %c1_32 = arith.constant 1 : index
    %c0_33 = arith.constant 0 : index
    %c0_34 = arith.constant 0 : index
    %70 = vector.load %arg4[%c1_32, %c0_33, %c0_34] : memref<3x16x16xf32, #tpu.memory_space<vmem>>, vector<1x16x16xf32>
    %71 = vector.shape_cast %70 : vector<1x16x16xf32> to vector<16x16xf32>
    %cst_35 = arith.constant dense<0.000000e+00> : vector<256x16xf32>
    %72 = tpu.matmul %61, %71, %cst_35 {dimension_numbers = #tpu.dot_dimension_numbers<[1], [0], [0], [1], [0, 0, 1, 1], [], []>} : vector<256x16xf32>, vector<16x16xf32>, vector<256x16xf32> -> vector<256x16xf32>
    %73 = arith.addf %69, %72 : vector<256x16xf32>
    %c255_i32_36 = arith.constant 255 : i32
    %74 = tpu.dynamic_rotate %61 by %c255_i32_36 dim 0 : vector<256x16xf32>, i32 -> vector<256x16xf32>
    %cst_37 = arith.constant 0.000000e+00 : f32
    %75 = vector.shape_cast %35 : vector<256x1xi1> to vector<256x1xi1>
    %76 = vector.broadcast %75 : vector<256x1xi1> to vector<256x16xi1>
    %77 = vector.broadcast %cst_37 : f32 to vector<256x16xf32>
    %78 = arith.select %76, %74, %77 : vector<256x16xi1>, vector<256x16xf32>
    %c2_38 = arith.constant 2 : index
    %c0_39 = arith.constant 0 : index
    %c0_40 = arith.constant 0 : index
    %79 = vector.load %arg4[%c2_38, %c0_39, %c0_40] : memref<3x16x16xf32, #tpu.memory_space<vmem>>, vector<1x16x16xf32>
    %80 = vector.shape_cast %79 : vector<1x16x16xf32> to vector<16x16xf32>
    %cst_41 = arith.constant dense<0.000000e+00> : vector<256x16xf32>
    %81 = tpu.matmul %78, %80, %cst_41 {dimension_numbers = #tpu.dot_dimension_numbers<[1], [0], [0], [1], [0, 0, 1, 1], [], []>} : vector<256x16xf32>, vector<16x16xf32>, vector<256x16xf32> -> vector<256x16xf32>
    %82 = arith.addf %73, %81 : vector<256x16xf32>
    %c0_42 = arith.constant 0 : index
    %c0_43 = arith.constant 0 : index
    %83 = vector.load %arg5[%c0_42, %c0_43] : memref<1x16xf32, #tpu.memory_space<vmem>>, vector<1x16xf32>
    %84 = vector.broadcast %83 : vector<1x16xf32> to vector<256x16xf32>
    %85 = arith.addf %82, %84 : vector<256x16xf32>
    %cst_44 = arith.constant 0.000000e+00 : f32
    %86 = vector.broadcast %cst_44 : f32 to vector<256x16xf32>
    %87 = arith.maximumf %85, %86 : vector<256x16xf32>
    %c0_45 = arith.constant 0 : index
    %c0_46 = arith.constant 0 : index
    %88 = vector.load %arg6[%c0_45, %c0_46] : memref<16x128xf32, #tpu.memory_space<vmem>>, vector<16x128xf32>
    %cst_47 = arith.constant dense<0.000000e+00> : vector<256x128xf32>
    %89 = tpu.matmul %87, %88, %cst_47 {dimension_numbers = #tpu.dot_dimension_numbers<[1], [0], [0], [1], [0, 0, 1, 1], [], []>} : vector<256x16xf32>, vector<16x128xf32>, vector<256x128xf32> -> vector<256x128xf32>
    %c0_48 = arith.constant 0 : index
    %c0_49 = arith.constant 0 : index
    %90 = vector.load %arg7[%c0_48, %c0_49] : memref<1x128xf32, #tpu.memory_space<vmem>>, vector<1x128xf32>
    %91 = vector.broadcast %90 : vector<1x128xf32> to vector<256x128xf32>
    %92 = arith.addf %89, %91 : vector<256x128xf32>
    %cst_50 = arith.constant dense<0xFF800000> : vector<256xf32>
    %93 = vector.multi_reduction <maximumf>, %92, %cst_50 [1] : vector<256x128xf32> to vector<256xf32>
    %94 = vector.shape_cast %93 : vector<256xf32> to vector<256x1xf32>
    %95 = vector.broadcast %94 : vector<256x1xf32> to vector<256x128xf32>
    %96 = arith.subf %92, %95 : vector<256x128xf32>
    %97 = math.exp %96 : vector<256x128xf32>
    %cst_51 = arith.constant dense<0.000000e+00> : vector<256xf32>
    %98 = vector.multi_reduction <add>, %97, %cst_51 [1] : vector<256x128xf32> to vector<256xf32>
    %99 = vector.shape_cast %98 : vector<256xf32> to vector<256x1xf32>
    %100 = vector.broadcast %99 : vector<256x1xf32> to vector<256x128xf32>
    %101 = arith.divf %97, %100 : vector<256x128xf32>
    %102 = arith.truncf %101 : vector<256x128xf32> to vector<256x128xbf16>
    %c0_52 = arith.constant 0 : index
    %c0_53 = arith.constant 0 : index
    %103 = vector.load %arg8[%c0_52, %c0_53] : memref<256x128xbf16, #tpu.memory_space<vmem>>, vector<256x128xbf16>
    tpu.vector_store %arg8[%c0_52, %c0_53], %102 {strides = array<i32>} : memref<256x128xbf16, #tpu.memory_space<vmem>>, vector<256x128xbf16>,
    return
  }
  func.func @transform_0(%arg0: i32) -> (i32, i32) {
    %c0_i32 = arith.constant 0 : i32
    %c0_i32_0 = arith.constant 0 : i32
    return %arg0, %c0_i32 : i32, i32
  }
  func.func @transform_1(%arg0: i32) -> (i32, i32, i32) {
    %c0_i32 = arith.constant 0 : i32
    %c0_i32_0 = arith.constant 0 : i32
    %c0_i32_1 = arith.constant 0 : i32
    %c0_i32_2 = arith.constant 0 : i32
    return %c0_i32, %c0_i32_0, %c0_i32_1 : i32, i32, i32
  }
  func.func @transform_2(%arg0: i32) -> (i32, i32) {
    %c0_i32 = arith.constant 0 : i32
    %c0_i32_0 = arith.constant 0 : i32
    %c0_i32_1 = arith.constant 0 : i32
    return %c0_i32, %c0_i32_0 : i32, i32
  }
  func.func @transform_3(%arg0: i32) -> (i32, i32, i32) {
    %c0_i32 = arith.constant 0 : i32
    %c0_i32_0 = arith.constant 0 : i32
    %c0_i32_1 = arith.constant 0 : i32
    %c0_i32_2 = arith.constant 0 : i32
    return %c0_i32, %c0_i32_0, %c0_i32_1 : i32, i32, i32
  }
  func.func @transform_4(%arg0: i32) -> (i32, i32) {
    %c0_i32 = arith.constant 0 : i32
    %c0_i32_0 = arith.constant 0 : i32
    %c0_i32_1 = arith.constant 0 : i32
    return %c0_i32, %c0_i32_0 : i32, i32
  }
  func.func @transform_5(%arg0: i32) -> (i32, i32) {
    %c0_i32 = arith.constant 0 : i32
    %c0_i32_0 = arith.constant 0 : i32
    %c0_i32_1 = arith.constant 0 : i32
    return %c0_i32, %c0_i32_0 : i32, i32
  }
  func.func @transform_6(%arg0: i32) -> (i32, i32) {
    %c0_i32 = arith.constant 0 : i32
    %c0_i32_0 = arith.constant 0 : i32
    %c0_i32_1 = arith.constant 0 : i32
    return %c0_i32, %c0_i32_0 : i32, i32
  }
  func.func @transform_7(%arg0: i32) -> (i32, i32) {
    %c0_i32 = arith.constant 0 : i32
    %c0_i32_0 = arith.constant 0 : i32
    return %arg0, %c0_i32 : i32, i32
  }
}

</mosaic_0001>

<bundles_post_ra>
// kernel: tpu_custom_call.1
= control target key start
LH: loop header
LB: loop body
LE: loop exit
PB: predicated region body
PF: predicated region fallthrough
CT: control target
= control target key end

     0   :  { %vm896_vm0 = vcmask 64512   ;;  %v59_v3 = vlaneseq  ;;  %s6176_s0 = inlined_call_operand.vmem [shape: f32[256,8], index: 0, kind: input, shape index: {}]   ;;  %s6177_s1 = inlined_call_operand.vmem [shape: f32[3,8,16], index: 1, kind: input, shape index: {}]   ;;  %s6178_s2 = inlined_call_operand.vmem [shape: f32[1,16], index: 2, kind: input, shape index: {}]   ;;  %s6179_s3 = inlined_call_operand.vmem [shape: f32[3,16,16], index: 3, kind: input, shape index: {}]   ;;  %s6180_s4 = inlined_call_operand.vmem [shape: f32[1,16], index: 4, kind: input, shape index: {}]   ;;  %s6181_s5 = inlined_call_operand.vmem [shape: f32[16,128], index: 5, kind: input, shape index: {}]   ;;  %s6182_s6 = inlined_call_operand.vmem [shape: f32[1,128], index: 6, kind: input, shape index: {}]   ;;  %s6183_s7 = inlined_call_operand.hbm [shape: bf16[256,128], index: 7, kind: output, shape index: {}]  }
   0x1   :  { %v3716_v0 = vld [vmem:[%s6177_s1 + $0x8] sm:$0xff]  ;;  %v4253_v1 = vld [vmem:[%s6176_s0 + $0xc0] sm:$0xff]  ;;  %v3781_v4 = vld [vmem:[%s6177_s1 + $0x10] sm:$0xff] }
   0x2   :  { %v893_v2 = vld [vmem:[%s6177_s1] sm:$0xff]  ;;  %4041 = vmatpush.msra.mxu3 %v3716_v0  ;;  %v28_v6 = vld [vmem:[%s6176_s0 + $0x8] sm:$0xff]  ;;  %1008 = vmatpush.msra.mxu0 %v3716_v0  ;;  %v4271_v7 = vshrl.u32 %v59_v3, 7  ;;  %v4277_v10 = vld [vmem:[%s6176_s0 + $0xf8] sm:$0xff] }
   0x3   :  { %v4264_v5 = vld [vmem:[%s6176_s0] sm:$0xff]  ;;  %3741 = vmatmul.msk.f32.vlgmr.msra.gmra.mxu3 %vm896_vm0, %v4253_v1  ;;  %1589 = vmatpush.msra.mxu2 %v3781_v4  ;;  %v1316_v9 = vrot.slane %v28_v6, 1  ;;  %v763_v12 = vrot.slane %v4277_v10, 7  ;;  %v4284_v13 = vld [vmem:[%s6176_s0 + $0x10] sm:$0xff]  ;;  %v4307_v21 = vld [vmem:[%s6176_s0 + $0xc8] sm:$0xff] }
   0x4   :  { %v6199_v8 = vrot.slane %v4264_v5, 1  ;;  %v732_v11 = vrot.slane %v4264_v5, 7  ;;  %4042 = vmatpush.msrb.mxu3 %v893_v2  ;;  %1217 = vmatpush.msra.mxu1 %v893_v2  ;;  %vm1347_vm1 = vcmp.lt.s32.totalorder %v4271_v7, 7  ;;  %v96_v14 = vand.u32 15, %v4271_v7 }
   0x5   :  { %3717 = vmatmul.msk.f32.vlgmr.msra.gmra.mxu0 %vm896_vm0, %v4264_v5  ;;  %vm764_vm2 = vcmp.lt.s32.totalorder %v4271_v7, 1  ;;  %v61_v15 = vadd.s32 8, %v4271_v7  ;;  %v1317_v17 = vrot.slane %v4284_v13, 1  ;;  %v62_v24 = vadd.s32 16, %v4271_v7 }
   0x6   :  { %4043 = vmatpush.msra.mxu3 %v3781_v4  ;;  %v1378_v16 = vsel %vm1347_vm1, %v6199_v8, %v1316_v9  ;;  %v4298_v18 = vadd.s32 4294967295, %v96_v14  ;;  %v796_v19 = vsel %vm764_vm2, %v763_v12, %v732_v11 }
   0x7   :  { %3782 = vmatmul.msk.f32.vlgmr.msra.gmra.mxu2 %vm896_vm0, %v1378_v16  ;;  %v103_v20 = vand.u32 15, %v61_v15  ;;  %v1377_v23 = vsel %vm1347_vm1, %v1316_v9, %v1317_v17 }
   0x8   :  { %vm508_vm3 = vcmp.ge.s32.totalorder %v4298_v18, 0 }
   0x9   :  { %v4310_v22 = vadd.s32 1, %v103_v20  ;;  %v861_v25 = vsel %vm508_vm3, %v796_v19, 0.0 }
   0xa   :  { %12 = vsyncpa [#allocation3], 0  ;;  %3749 = vmatmul.msk.f32.vlgmr.msra.gmra.mxu1 %vm896_vm0, %v861_v25  ;;  %v733_v27 = vrot.slane %v28_v6, 7  ;;  %v30_v28 = vld [vmem:[%s6176_s0 + $0x18] sm:$0xff]  ;;  %v110_v29 = vand.u32 15, %v62_v24  ;;  %v63_v30 = vadd.s32 24, %v4271_v7 }
   0xb   :  { %3742 = vmatmul.msk.f32.gmra.mxu3 %vm896_vm0, %v4307_v21  ;;  %vm669_vm4 = vcmp.lt.s32.totalorder %v4310_v22, 16  ;;  %v4332_v31 = vld [vmem:[%s6176_s0 + $0xd0] sm:$0xff]  ;;  %v1318_v33 = vrot.slane %v30_v28, 1  ;;  %v734_v35 = vrot.slane %v4284_v13, 7  ;;  %v31_v37 = vld [vmem:[%s6176_s0 + $0x20] sm:$0xff]  ;;  %v4358_v42 = vld [vmem:[%s6176_s0 + $0xd8] sm:$0xff] }
   0xc   :  { %v1445_v26 = vsel %vm669_vm4, %v1377_v23, 0.0  ;;  %v795_v32 = vsel %vm764_vm2, %v732_v11, %v733_v27  ;;  %v4336_v34 = vadd.s32 4294967295, %v110_v29  ;;  %v117_v36 = vand.u32 15, %v63_v30  ;;  %v32_v48 = vld [vmem:[%s6176_s0 + $0x28] sm:$0xff]  ;;  %v4380_v51 = vld [vmem:[%s6176_s0 + $0xe0] sm:$0xff]  ;;  %v4389_v57 = vld [vmem:[%s6176_s0 + $0x30] sm:$0xff] }
   0xd   :  { %3718 = vmatmul.msk.f32.gmra.mxu0 %vm896_vm0, %v28_v6  ;;  %v1376_v38 = vsel %vm1347_vm1, %v1317_v17, %v1318_v33  ;;  %v794_v39 = vsel %vm764_vm2, %v733_v27, %v734_v35  ;;  %v1319_v41 = vrot.slane %v31_v37, 1  ;;  %v64_v45 = vadd.s32 32, %v4271_v7  ;;  %v4407_v62 = vld [vmem:[%s6176_s0 + $0xe8] sm:$0xff]  ;;  %v34_v9 = vld [vmem:[%s6176_s0 + $0x38] sm:$0xff]  ;;  %v4440_v23 = vld [vmem:[%s6176_s0 + $0x40] sm:$0xff]  ;;  %s3704_s18 = sshll.u32 %s6183_s7, 4  ;;  %s3705_s18 = int_to_ptr.hbm [resolvable:$true] %s3704_s18 }
   0xe   :  { %vm6196_vm5 = vcmp.ge.s32.totalorder %v4336_v34, 0  ;;  %v4352_v40 = vadd.s32 1, %v117_v36  ;;  %v735_v47 = vrot.slane %v30_v28, 7  ;;  %v65_v50 = vadd.s32 40, %v4271_v7  ;;  %v4458_v29 = vld [vmem:[%s6176_s0 + $0xb8] sm:$0xff]  ;;  %s4205_s19 = smov 64  }
   0xf   :  { %3783 = vmatmul.msk.f32.gmra.mxu2 %vm896_vm0, %v1445_v26  ;;  %v863_v43 = vsel %vm6196_vm5, %v794_v39, 0.0  ;;  %v1375_v44 = vsel %vm1347_vm1, %v1318_v33, %v1319_v41  ;;  %v124_v49 = vand.u32 15, %v64_v45  ;;  %v1320_v53 = vrot.slane %v32_v48, 1  ;;  %s4206_s20 = smov 4  }
  0x10   :  { %vm671_vm6 = vcmp.lt.s32.totalorder %v4352_v40, 16  ;;  %v793_v52 = vsel %vm764_vm2, %v734_v35, %v735_v47  ;;  %v736_v55 = vrot.slane %v31_v37, 7  ;;  %v131_v56 = vand.u32 15, %v65_v50 }
  0x11   :  { %v1447_v46 = vsel %vm671_vm6, %v1375_v44, 0.0  ;;  %v4384_v54 = vadd.s32 4294967295, %v124_v49  ;;  %v1374_v58 = vsel %vm1347_vm1, %v1319_v41, %v1320_v53  ;;  %v1321_v61 = vrot.slane %v4389_v57, 1  ;;  %v36_v44 = vld [vmem:[%s6176_s0 + $0x48] sm:$0xff] }
  0x12   :  { %3750 = vmatmul.msk.f32.gmra.mxu1 %vm896_vm0, %v795_v32  ;;  %v792_v59 = vsel %vm764_vm2, %v735_v47, %v736_v55  ;;  %v4400_v60 = vadd.s32 1, %v131_v56  ;;  %v66_v0 = vadd.s32 48, %v4271_v7  ;;  %v737_v4 = vrot.slane %v32_v48, 7 }
  0x13   :  { %3743 = vmatmul.msk.f32.gmra.mxu3 %vm896_vm0, %v4332_v31  ;;  %vm6193_vm7 = vcmp.ge.s32.totalorder %v4384_v54, 0  ;;  %v1373_v2 = vsel %vm1347_vm1, %v1320_v53, %v1321_v61  ;;  %v67_v11 = vadd.s32 56, %v4271_v7  ;;  %v1322_v15 = vrot.slane %v34_v9, 1 }
  0x14   :  { %v865_v63 = vsel %vm6193_vm7, %v792_v59, 0.0  ;;  %vm673_vm8 = vcmp.lt.s32.totalorder %v4400_v60, 16  ;;  %v138_v6 = vand.u32 15, %v66_v0  ;;  %v791_v14 = vsel %vm764_vm2, %v736_v55, %v737_v4  ;;  %v4498_v55 = vld [vmem:[%s6176_s0 + $0x50] sm:$0xff] }
  0x15   :  { %3719 = vmatmul.msk.f32.gmra.mxu0 %vm896_vm0, %v4284_v13  ;;  %v1449_v3 = vsel %vm673_vm8, %v1373_v2, 0.0  ;;  %v4429_v13 = vld [vmem:[%s6176_s0 + $0xf0] sm:$0xff]  ;;  %v738_v17 = vrot.slane %v4389_v57, 7  ;;  %v145_v19 = vand.u32 15, %v67_v11  ;;  %v84_v20 = vadd.s32 192, %v4271_v7 }
  0x16   :  { %v4433_v16 = vadd.s32 4294967295, %v138_v6  ;;  %v1372_v24 = vsel %vm1347_vm1, %v1321_v61, %v1322_v15  ;;  %v1323_v27 = vrot.slane %v4440_v23, 1  ;;  %v756_v30 = vrot.slane %v4253_v1, 7 }
  0x17   :  { %3784 = vmatmul.msk.f32.gmra.mxu2 %vm896_vm0, %v1376_v38  ;;  %v790_v25 = vsel %vm764_vm2, %v737_v4, %v738_v17  ;;  %v4452_v26 = vadd.s32 1, %v145_v19  ;;  %v68_v33 = vadd.s32 64, %v4271_v7  ;;  %v739_v39 = vrot.slane %v34_v9, 7  ;;  %v38_v19 = vld [vmem:[%s6176_s0 + $0x58] sm:$0xff] }
  0x18   :  { %vm6192_vm9 = vcmp.ge.s32.totalorder %v4433_v16, 0  ;;  %v1371_v35 = vsel %vm1347_vm1, %v1322_v15, %v1323_v27  ;;  %v69_v45 = vadd.s32 72, %v4271_v7  ;;  %v740_v50 = vrot.slane %v4440_v23, 7 }
  0x19   :  { %v867_v32 = vsel %vm6192_vm9, %v790_v25, 0.0  ;;  %vm675_vm10 = vcmp.lt.s32.totalorder %v4452_v26, 16  ;;  %v152_v41 = vand.u32 15, %v68_v33  ;;  %v86_v53 = vadd.s32 208, %v4271_v7  ;;  %v4549_v33 = vld [vmem:[%s6176_s0 + $0x60] sm:$0xff] }
  0x1a   :  { %3751 = vmatmul.msk.f32.gmra.mxu1 %vm896_vm0, %v863_v43  ;;  %v1451_v38 = vsel %vm675_vm10, %v1371_v35, 0.0  ;;  %v757_v56 = vrot.slane %v4307_v21, 7  ;;  %v1325_v61 = vrot.slane %v4498_v55, 1  ;;  %v758_v4 = vrot.slane %v4332_v31, 7 }
  0x1b   :  { %3744 = vmatmul.msk.f32.gmra.mxu3 %vm896_vm0, %v4358_v42  ;;  %v4491_v49 = vadd.s32 4294967295, %v152_v41  ;;  %v1326_v25 = vrot.slane %v38_v19, 1  ;;  %v759_v35 = vrot.slane %v4358_v42, 7 }
  0x1c   :  { %v771_v2 = vsel %vm764_vm2, %v756_v30, %v757_v56 }
  0x1d   :  { %3720 = vmatmul.msk.f32.gmra.mxu0 %vm896_vm0, %v30_v28  ;;  %v264_v28 = vand.u32 15, %v84_v20  ;;  %vm6190_vm12 = vcmp.ge.s32.totalorder %v4491_v49, 0  ;;  %v71_v20 = vadd.s32 88, %v4271_v7 }
  0x1f   :  { %3785 = vmatmul.msk.f32.gmra.mxu2 %vm896_vm0, %v1447_v46  ;;  %v4468_v36 = vadd.s32 4294967295, %v264_v28  ;;  %v789_v46 = vsel %vm764_vm2, %v738_v17, %v739_v39  ;;  %v770_v17 = vsel %vm764_vm2, %v757_v56, %v758_v4  ;;  %v742_v28 = vrot.slane %v4498_v55, 7 }
  0x20   :  { %v73_v56 = vadd.s32 104, %v4271_v7 }
  0x21   :  { %6219 = vst [vmem:[#allocation5_spill] sm:$0xff] %v4468_v36  ;;  %vm6185_vm11 = vcmp.ge.s32.totalorder %v4468_v36, 0 }
  0x22   :  { %3752 = vmatmul.msk.f32.gmra.mxu1 %vm896_vm0, %v793_v52  ;;  %v159_v52 = vand.u32 15, %v69_v45  ;;  %v760_v45 = vrot.slane %v4380_v51, 7 }
  0x23   :  { %3745 = vmatmul.msk.f32.gmra.mxu3 %vm896_vm0, %v4380_v51 }
  0x24   :  { %v4510_v59 = vadd.s32 1, %v159_v52  ;;  %v72_v52 = vadd.s32 96, %v4271_v7 }
  0x25   :  { %3721 = vmatmul.msk.f32.gmra.mxu0 %vm896_vm0, %v31_v37  ;;  %v6197_v37 = vrot.slane %v4458_v29, 7 }
  0x26   :  { %vm677_vm13 = vcmp.lt.s32.totalorder %v4510_v59, 16 }
  0x27   :  { %3786 = vmatmul.msk.f32.gmra.mxu2 %vm896_vm0, %v1374_v58  ;;  %v772_v43 = vsel %vm764_vm2, %v6197_v37, %v756_v30  ;;  %v788_v58 = vsel %vm764_vm2, %v739_v39, %v740_v50  ;;  %v173_v30 = vand.u32 15, %v71_v20  ;;  %v761_v20 = vrot.slane %v4407_v62, 7 }
  0x28   :  { %v885_v47 = vsel %vm6185_vm11, %v772_v43, 0.0  ;;  %v869_v0 = vsel %vm6190_vm12, %v788_v58, 0.0  ;;  %v1327_v43 = vrot.slane %v4549_v33, 1  ;;  %v4588_v58 = vld [vmem:[%s6176_s0 + $0x68] sm:$0xff] }
  0x29   :  { %v4561_v41 = vadd.s32 1, %v173_v30 }
  0x2a   :  { %3753 = vmatmul.msk.f32.gmra.mxu1 %vm896_vm0, %v865_v63  ;;  %v278_v63 = vand.u32 15, %v86_v53 }
  0x2b   :  { %3746 = vmatmul.msk.f32.gmra.mxu3 %vm896_vm0, %v4407_v62 }
  0x2d   :  { %3722 = vmatmul.msk.f32.gmra.mxu0 %vm896_vm0, %v32_v48  ;;  %v1324_v48 = vrot.slane %v36_v44, 1 }
  0x2f   :  { %3787 = vmatmul.msk.f32.gmra.mxu2 %vm896_vm0, %v1449_v3  ;;  %v70_v3 = vadd.s32 80, %v4271_v7  ;;  %v1369_v6 = vsel %vm1347_vm1, %v1324_v48, %v1325_v61 }
  0x30   :  { %v1453_v11 = vsel %vm677_vm13, %v1369_v6, 0.0  ;;  %v187_v6 = vand.u32 15, %v73_v56 }
  0x31   :  { %v166_v15 = vand.u32 15, %v70_v3 }
  0x32   :  { %3754 = vmatmul.msk.f32.gmra.mxu1 %vm896_vm0, %v791_v14  ;;  %v741_v14 = vrot.slane %v36_v44, 7 }
  0x33   :  { %3747 = vmatmul.msk.f32.gmra.mxu3 %vm896_vm0, %v4429_v13 }
  0x34   :  { %v786_v39 = vsel %vm764_vm2, %v741_v14, %v742_v28 }
  0x35   :  { %3723 = vmatmul.msk.f32.gmra.mxu0 %vm896_vm0, %v4389_v57  ;;  %v1370_v57 = vsel %vm1347_vm1, %v1323_v27, %v1324_v48  ;;  %v4542_v27 = vadd.s32 4294967295, %v166_v15  ;;  %v1367_v48 = vsel %vm1347_vm1, %v1326_v25, %v1327_v43  ;;  %v90_v15 = vadd.s32 240, %v4271_v7 }
  0x37   :  { %3788 = vmatmul.msk.f32.gmra.mxu2 %vm896_vm0, %v1372_v24  ;;  %vm6187_vm15 = vcmp.ge.s32.totalorder %v4542_v27, 0  ;;  %v306_v30 = vand.u32 15, %v90_v15 }
  0x3a   :  { %3755 = vmatmul.msk.f32.gmra.mxu1 %vm896_vm0, %v867_v32  ;;  %v88_v32 = vadd.s32 224, %v4271_v7 }
  0x3b   :  { %3748 = vmatmul.msk.f32.gmra.mxu3 %vm896_vm0, %v4277_v10 }
  0x3d   :  { %3724 = vmatmul.msk.f32.gmra.mxu0 %vm896_vm0, %v34_v9  ;;  %v4523_v9 = vadd.s32 4294967295, %v278_v63  ;;  %v6198_v63 = vrot.slane %v4253_v1, 1 }
  0x3f   :  { %3789 = vmatmul.msk.f32.gmra.mxu2 %vm896_vm0, %v1451_v38  ;;  %6220 = vst [vmem:[#allocation6_spill] sm:$0xff] %v4523_v9  ;;  %vm6184_vm14 = vcmp.ge.s32.totalorder %v4523_v9, 0  ;;  %v1368_v38 = vsel %vm1347_vm1, %v1325_v61, %v1326_v25  ;;  %v180_v61 = vand.u32 15, %v72_v52  ;;  %v91_v9 = vadd.s32 248, %v4271_v7 }
  0x40   :  { %v887_v24 = vsel %vm6184_vm14, %v770_v17, 0.0  ;;  %vm679_vm14 = vcmp.lt.s32.totalorder %v4561_v41, 16 }
  0x41   :  { %v1455_v53 = vsel %vm679_vm14, %v1367_v48, 0.0  ;;  %v42_v48 = vld [vmem:[%s6176_s0 + $0x78] sm:$0xff] }
  0x42   :  { %3756 = vmatmul.msk.f32.gmra.mxu1 %vm896_vm0, %v789_v46  ;;  %v871_v46 = vsel %vm6187_vm15, %v786_v39, 0.0  ;;  %v74_v39 = vadd.s32 112, %v4271_v7 }
  0x43   :  { %3773 = vmatmul.msk.f32.vlgmr.msrb.gmra.mxu3 %vm896_vm0, %v885_v47  ;;  %v769_v47 = vsel %vm764_vm2, %v758_v4, %v759_v35  ;;  %v1328_v4 = vrot.slane %v4588_v58, 1 }
  0x44   :  { %v194_v52 = vand.u32 15, %v74_v39  ;;  %v77_v39 = vadd.s32 136, %v4271_v7 }
  0x45   :  { %3725 = vmatmul.msk.f32.gmra.mxu0 %vm896_vm0, %v4440_v23  ;;  %v787_v23 = vsel %vm764_vm2, %v740_v50, %v741_v14  ;;  %v744_v14 = vrot.slane %v4549_v33, 7 }
  0x47   :  { %3790 = vmatmul.msk.f32.gmra.mxu2 %vm896_vm0, %v1370_v57  ;;  %v768_v57 = vsel %vm764_vm2, %v759_v35, %v760_v45  ;;  %v767_v35 = vsel %vm764_vm2, %v760_v45, %v761_v20 }
  0x4a   :  { %3757 = vmatmul.msk.f32.gmra.mxu1 %vm896_vm0, %v869_v0  ;;  %v1340_v0 = vrot.slane %v4307_v21, 1  ;;  %v4605_v21 = vld [vmem:[%s6176_s0 + $0x70] sm:$0xff] }
  0x4b   :  { %3774 = vmatmul.msk.f32.gmra.mxu3 %vm896_vm0, %v771_v2 }
  0x4c   :  { %v4611_v17 = vsel %vm1347_vm1, %v6198_v63, %v1340_v0  ;;  %v81_v63 = vadd.s32 168, %v4271_v7 }
  0x4d   :  { %3726 = vmatmul.msk.f32.gmra.mxu0 %vm896_vm0, %v36_v44  ;;  %v292_v44 = vand.u32 15, %v88_v32 }
  0x4f   :  { %3791 = vmatmul.msk.f32.gmra.mxu2 %vm896_vm0, %v1453_v11  ;;  %v4573_v50 = vadd.s32 4294967295, %v292_v44  ;;  %v4598_v11 = vadd.s32 4294967295, %v180_v61  ;;  %v4666_v61 = vadd.s32 4294967295, %v194_v52 }
  0x51   :  { %6221 = vst [vmem:[#allocation7_spill] sm:$0xff] %v4573_v50  ;;  %vm6186_vm11 = vcmp.ge.s32.totalorder %v4573_v50, 0 }
  0x52   :  { %3758 = vmatmul.msk.f32.gmra.mxu1 %vm896_vm0, %v787_v23  ;;  %v889_v3 = vsel %vm6186_vm11, %v768_v57, 0.0  ;;  %6222 = vst [vmem:[#allocation8_spill] sm:$0xff] %v4598_v11  ;;  %v1366_v23 = vsel %vm1347_vm1, %v1327_v43, %v1328_v4  ;;  %vm6188_vm11 = vcmp.ge.s32.totalorder %v4598_v11, 0  ;;  %v1884_v43 = vld [vmem:[%s6179_s3 + $0x8] sm:$0xff] }
  0x53   :  { %3775 = vmatmul.msk.f32.gmra.mxu3 %vm896_vm0, %v887_v24  ;;  %v4619_v24 = vadd.s32 1, %v187_v6  ;;  %2208 = vmatpush.msrb.mxu0 %v1884_v43  ;;  %6224 = vst [vmem:[#allocation10_spill] sm:$0xff] %v4666_v61  ;;  %v1343_v6 = vrot.slane %v4380_v51, 1  ;;  %v1344_v43 = vrot.slane %v4407_v62, 1  ;;  %v4736_v62 = vld [vmem:[%s6176_s0 + $0x90] sm:$0xff] }
  0x55   :  { %3727 = vmatmul.msk.f32.gmra.mxu0 %vm896_vm0, %v4498_v55  ;;  %v743_v55 = vrot.slane %v38_v19, 7  ;;  %vm681_vm15 = vcmp.lt.s32.totalorder %v4619_v24, 16 }
  0x57   :  { %3792 = vmatmul.msk.f32.gmra.mxu2 %vm896_vm0, %v1368_v38  ;;  %v785_v2 = vsel %vm764_vm2, %v742_v28, %v743_v55  ;;  %v784_v25 = vsel %vm764_vm2, %v743_v55, %v744_v14  ;;  %v1329_v28 = vrot.slane %v4605_v21, 1  ;;  %v4636_v38 = vadd.s32 4294967295, %v306_v30 }
  0x58   :  { %v873_v32 = vsel %vm6188_vm11, %v784_v25, 0.0  ;;  %v1342_v55 = vrot.slane %v4358_v42, 1  ;;  %v4675_v42 = vld [vmem:[%s6176_s0 + $0x80] sm:$0xff] }
  0x59   :  { %6223 = vst [vmem:[#allocation9_spill] sm:$0xff] %v4636_v38  ;;  %vm6189_vm11 = vcmp.ge.s32.totalorder %v4636_v38, 0  ;;  %v243_v38 = vand.u32 15, %v81_v63 }
  0x5a   :  { %3759 = vmatmul.msk.f32.gmra.mxu1 %vm896_vm0, %v871_v46  ;;  %v745_v46 = vrot.slane %v4588_v58, 7  ;;  %v4708_v30 = vsel %vm1347_vm1, %v1342_v55, %v1343_v6 }
  0x5b   :  { %3776 = vmatmul.msk.f32.gmra.mxu3 %vm896_vm0, %v769_v47 }
  0x5c   :  { %v783_v56 = vsel %vm764_vm2, %v744_v14, %v745_v46 }
  0x5d   :  { %3728 = vmatmul.msk.f32.gmra.mxu0 %vm896_vm0, %v38_v19  ;;  %v1341_v19 = vrot.slane %v4332_v31, 1  ;;  %v762_v31 = vrot.slane %v4429_v13, 7 }
  0x5f   :  { %3793 = vmatmul.msk.f32.gmra.mxu2 %vm896_vm0, %v1455_v53  ;;  %v4644_v44 = vsel %vm1347_vm1, %v1340_v0, %v1341_v19  ;;  %v766_v47 = vsel %vm764_vm2, %v761_v20, %v762_v31  ;;  %v75_v53 = vadd.s32 120, %v4271_v7  ;;  %v746_v0 = vrot.slane %v4605_v21, 7 }
  0x60   :  { %v891_v57 = vsel %vm6189_vm11, %v766_v47, 0.0  ;;  %vm6191_vm11 = vcmp.ge.s32.totalorder %v4666_v61, 0 }
  0x61   :  { %v782_v15 = vsel %vm764_vm2, %v745_v46, %v746_v0 }
  0x62   :  { %3760 = vmatmul.msk.f32.gmra.mxu1 %vm896_vm0, %v785_v2  ;;  %v201_v2 = vand.u32 15, %v75_v53  ;;  %v875_v51 = vsel %vm6191_vm11, %v782_v15, 0.0  ;;  %v215_v53 = vand.u32 15, %v77_v39  ;;  %v78_v15 = vadd.s32 144, %v4271_v7 }
  0x63   :  { %3777 = vmatmul.msk.f32.gmra.mxu3 %vm896_vm0, %v889_v3  ;;  %v3881_v3 = vld [vmem:[%s6179_s3 + $0x28] sm:$0xff] }
  0x64   :  { %2516 = vmatpush.msrb.mxu1 %v3881_v3  ;;  %v4691_v20 = vadd.s32 1, %v201_v2  ;;  %v1333_v2 = vrot.slane %v4736_v62, 1  ;;  %v6200_v3 = vrot.slane %v4429_v13, 1 }
  0x65   :  { %3729 = vmatmul.msk.f32.gmra.mxu0 %vm896_vm0, %v4549_v33  ;;  %v1365_v33 = vsel %vm1347_vm1, %v1328_v4, %v1329_v28  ;;  %v4679_v4 = vsel %vm1347_vm1, %v1341_v19, %v1342_v55  ;;  %v1331_v19 = vrot.slane %v4675_v42, 1 }
  0x66   :  { %v1457_v45 = vsel %vm681_vm15, %v1365_v33, 0.0  ;;  %vm683_vm12 = vcmp.lt.s32.totalorder %v4691_v20, 16 }
  0x67   :  { %3794 = vmatmul.msk.f32.gmra.mxu2 %vm896_vm0, %v1366_v23  ;;  %v765_v23 = vsel %vm764_vm2, %v762_v31, %v763_v12  ;;  %v747_v31 = vrot.slane %v42_v48, 7 }
  0x6a   :  { %3761 = vmatmul.msk.f32.gmra.mxu1 %vm896_vm0, %v873_v32 }
  0x6b   :  { %3778 = vmatmul.msk.f32.gmra.mxu3 %vm896_vm0, %v767_v35  ;;  %v4718_v35 = vld [vmem:[%s6176_s0 + $0x88] sm:$0xff] }
  0x6c   :  { %v1332_v46 = vrot.slane %v4718_v35, 1 }
  0x6d   :  { %3730 = vmatmul.msk.f32.gmra.mxu0 %vm896_vm0, %v4588_v58  ;;  %v1330_v58 = vrot.slane %v42_v48, 1 }
  0x6f   :  { %3795 = vmatmul.msk.f32.gmra.mxu2 %vm896_vm0, %v1457_v45  ;;  %v1364_v14 = vsel %vm1347_vm1, %v1329_v28, %v1330_v58  ;;  %v1363_v25 = vsel %vm1347_vm1, %v1330_v58, %v1331_v19  ;;  %v85_v28 = vadd.s32 200, %v4271_v7  ;;  %v781_v45 = vsel %vm764_vm2, %v746_v0, %v747_v31 }
  0x70   :  { %v1459_v12 = vsel %vm683_vm12, %v1363_v25, 0.0  ;;  %v4753_v0 = vadd.s32 1, %v215_v53  ;;  %v4780_v25 = vsel %vm1347_vm1, %v1344_v43, %v6200_v3  ;;  %v750_v53 = vrot.slane %v4736_v62, 7 }
  0x71   :  { %v271_v33 = vand.u32 15, %v85_v28  ;;  %v749_v28 = vrot.slane %v4718_v35, 7 }
  0x72   :  { %3762 = vmatmul.msk.f32.gmra.mxu1 %vm896_vm0, %v783_v56  ;;  %v4740_v56 = vsel %vm1347_vm1, %v1343_v6, %v1344_v43  ;;  %vm685_vm7 = vcmp.lt.s32.totalorder %v4753_v0, 16 }
  0x73   :  { %3779 = vmatmul.msk.f32.gmra.mxu3 %vm896_vm0, %v891_v57  ;;  %v4729_v52 = vadd.s32 1, %v271_v33  ;;  %v1362_v57 = vsel %vm1347_vm1, %v1331_v19, %v1332_v46  ;;  %v1361_v19 = vsel %vm1347_vm1, %v1332_v46, %v1333_v2  ;;  %v79_v33 = vadd.s32 152, %v4271_v7 }
  0x75   :  { %3731 = vmatmul.msk.f32.gmra.mxu0 %vm896_vm0, %v4605_v21  ;;  %v76_v21 = vadd.s32 128, %v4271_v7  ;;  %vm6195_vm9 = vcmp.lt.s32.totalorder %v4729_v52, 16 }
  0x77   :  { %3796 = vmatmul.msk.f32.gmra.mxu2 %vm896_vm0, %v1364_v14  ;;  %v208_v32 = vand.u32 15, %v76_v21  ;;  %v1469_v14 = vsel %vm6195_vm9, %v4644_v44, 0.0  ;;  %v1461_v44 = vsel %vm685_vm7, %v1361_v19, 0.0  ;;  %v778_v19 = vsel %vm764_vm2, %v749_v28, %v750_v53 }
  0x79   :  { %v4726_v47 = vadd.s32 4294967295, %v208_v32 }
  0x7a   :  { %3763 = vmatmul.msk.f32.gmra.mxu1 %vm896_vm0, %v875_v51  ;;  %v87_v51 = vadd.s32 216, %v4271_v7 }
  0x7b   :  { %3780 = vmatmul.msk.f32.gmra.mxu3 %vm896_vm0, %v765_v23  ;;  %6225 = vst [vmem:[#allocation11_spill] sm:$0xff] %v4726_v47  ;;  %vm6194_vm11 = vcmp.ge.s32.totalorder %v4726_v47, 0  ;;  %v313_v47 = vand.u32 15, %v91_v9 }
  0x7c   :  { %v285_v32 = vand.u32 15, %v87_v51 }
  0x7d   :  { %3732 = vmatmul.msk.f32.gmra.mxu0 %vm896_vm0, %v42_v48  ;;  %v748_v48 = vrot.slane %v4675_v42, 7 }
  0x7f   :  { %3797 = vmatmul.msk.f32.gmra.mxu2 %vm896_vm0, %v1459_v12  ;;  %v780_v58 = vsel %vm764_vm2, %v747_v31, %v748_v48  ;;  %v222_v12 = vand.u32 15, %v78_v15  ;;  %v4792_v31 = vld [vmem:[%s6176_s0 + $0x98] sm:$0xff]  ;;  %v4815_v15 = vld [vmem:[%s6176_s0 + $0xa0] sm:$0xff] }
  0x80   :  { %v1334_v46 = vrot.slane %v4792_v31, 1 }
  0x82   :  { %v4731_v55 = vpop.f32.mrf.mxu0  ;;  %3764 = vmatmul.msk.f32.gmra.mxu1 %vm896_vm0, %v781_v45  ;;  %v779_v45 = vsel %vm764_vm2, %v748_v48, %v749_v28  ;;  %v1360_v48 = vsel %vm1347_vm1, %v1333_v2, %v1334_v46  ;;  %v80_v28 = vadd.s32 160, %v4271_v7 }
  0x83   :  { %3806 = vmatmul.msk.f32.vlgmr.msra.gmra.mxu3 %vm896_vm0, %v4611_v17 }
  0x85   :  { %3733 = vmatmul.msk.f32.gmra.mxu0 %vm896_vm0, %v4675_v42  ;;  %v877_v42 = vsel %vm6194_vm11, %v780_v58, 0.0  ;;  %v229_v58 = vand.u32 15, %v79_v33  ;;  %v89_v33 = vadd.s32 232, %v4271_v7 }
  0x86   :  { %v4757_v17 = vpop.f32.mrf.mxu3 }
  0x87   :  { %3798 = vmatmul.msk.f32.gmra.mxu2 %vm896_vm0, %v1362_v57  ;;  %v4760_v6 = vpop.f32.mrf.mxu1  ;;  %v4806_v57 = vadd.s32 1, %v285_v32  ;;  %v4828_v51 = vadd.s32 1, %v229_v58  ;;  %v299_v37 = vand.u32 15, %v89_v33  ;;  %v752_v33 = vrot.slane %v4815_v15, 7 }
  0x89   :  { %6227 = vst [vmem:[#allocation13_spill] sm:$0xff] %v4806_v57  ;;  %vm6204_vm9 = vcmp.lt.s32.totalorder %v4806_v57, 16  ;;  %vm6205_vm5 = vcmp.lt.s32.totalorder %v4828_v51, 16  ;;  %v4877_v3 = vadd.s32 1, %v299_v37  ;;  %v1220_v57 = vadd.f32 %v4760_v6, %v4731_v55 }
  0x8a   :  { %v4772_v23 = vpop.f32.mrf.mxu2  ;;  %v4774_v21 = vpop.f32.mrf.mxu0  ;;  %3765 = vmatmul.msk.f32.gmra.mxu1 %vm896_vm0, %v877_v42  ;;  %v6231_v55 = vrot.slane %v4264_v5, 1 }
  0x8b   :  { %3807 = vmatmul.msk.f32.gmra.mxu3 %vm896_vm0, %v1469_v14  ;;  %6229 = vst [vmem:[#allocation15_spill] sm:$0xff] %v4877_v3 }
  0x8d   :  { %3734 = vmatmul.msk.f32.gmra.mxu0 %vm896_vm0, %v4718_v35  ;;  %v4803_v35 = vadd.s32 4294967295, %v222_v12 }
  0x8e   :  { %v4795_v39 = vpop.f32.mrf.mxu3 }
  0x8f   :  { %3799 = vmatmul.msk.f32.gmra.mxu2 %vm896_vm0, %v1461_v44  ;;  %v4798_v43 = vpop.f32.mrf.mxu1  ;;  %6226 = vst [vmem:[#allocation12_spill] sm:$0xff] %v4803_v35  ;;  %vm6203_vm11 = vcmp.ge.s32.totalorder %v4803_v35, 0  ;;  %v1335_v44 = vrot.slane %v4815_v15, 1 }
  0x90   :  { %v879_v2 = vsel %vm6203_vm11, %v778_v19, 0.0  ;;  %v236_v19 = vand.u32 15, %v80_v28 }
  0x91   :  { %v1359_v32 = vsel %vm1347_vm1, %v1334_v46, %v1335_v44  ;;  %v4860_v46 = vld [vmem:[%s6176_s0 + $0xa8] sm:$0xff] }
  0x92   :  { %v4808_v42 = vpop.f32.mrf.mxu2  ;;  %v4810_v14 = vpop.f32.mrf.mxu0  ;;  %3766 = vmatmul.msk.f32.gmra.mxu1 %vm896_vm0, %v779_v45  ;;  %v4874_v8 = vadd.s32 4294967295, %v236_v19 }
  0x93   :  { %3808 = vmatmul.msk.f32.gmra.mxu3 %vm896_vm0, %v4679_v4 }
  0x94   :  { %6228 = vst [vmem:[#allocation14_spill] sm:$0xff] %v4874_v8  ;;  %vm6215_vm11 = vcmp.ge.s32.totalorder %v4874_v8, 0 }
  0x95   :  { %3735 = vmatmul.msk.f32.gmra.mxu0 %vm896_vm0, %v4736_v62  ;;  %v1471_v62 = vsel %vm6204_vm9, %v4708_v30, 0.0  ;;  %v1463_v30 = vsel %vm6205_vm5, %v1359_v32, 0.0  ;;  %v1336_v32 = vrot.slane %v4860_v46, 1  ;;  %vm6216_vm9 = vcmp.lt.s32.totalorder %v4877_v3, 16 }
  0x96   :  { %v4831_v12 = vpop.f32.mrf.mxu3  ;;  %v4951_v3 = vadd.s32 1, %v313_v47 }
  0x97   :  { %3800 = vmatmul.msk.f32.gmra.mxu2 %vm896_vm0, %v1360_v48  ;;  %v4834_v4 = vpop.f32.mrf.mxu1  ;;  %v751_v48 = vrot.slane %v4792_v31, 7  ;;  %v1358_v63 = vsel %vm1347_vm1, %v1335_v44, %v1336_v32 }
  0x99   :  { %v776_v19 = vsel %vm764_vm2, %v751_v48, %v752_v33 }
  0x9a   :  { %v4846_v45 = vpop.f32.mrf.mxu2  ;;  %v4848_v58 = vpop.f32.mrf.mxu0  ;;  %3767 = vmatmul.msk.f32.gmra.mxu1 %vm896_vm0, %v879_v2  ;;  %v881_v44 = vsel %vm6215_vm11, %v776_v19, 0.0  ;;  %v753_v19 = vrot.slane %v4860_v46, 7 }
  0x9b   :  { %3809 = vmatmul.msk.f32.gmra.mxu3 %vm896_vm0, %v1471_v62  ;;  %v3815_v62 = vld [vmem:[%s6179_s3 + $0x18] sm:$0xff] }
  0x9c   :  { %1999 = vmatpush.msrb.mxu3 %v3815_v62  ;;  %v4902_v62 = vadd.s32 1, %v243_v38 }
  0x9d   :  { %3736 = vmatmul.msk.f32.gmra.mxu0 %vm896_vm0, %v4792_v31  ;;  %v777_v31 = vsel %vm764_vm2, %v750_v53, %v751_v48  ;;  %v4887_v53 = vld [vmem:[%s6176_s0 + $0xb0] sm:$0xff]  ;;  %v82_v48 = vadd.s32 176, %v4271_v7 }
  0x9e   :  { %v4863_v2 = vpop.f32.mrf.mxu3  ;;  %vm6217_vm5 = vcmp.lt.s32.totalorder %v4902_v62, 16  ;;  %v754_v9 = vrot.slane %v4887_v53, 7 }
  0x9f   :  { %3801 = vmatmul.msk.f32.gmra.mxu2 %vm896_vm0, %v1463_v30  ;;  %v4869_v28 = vpop.f32.mrf.mxu1  ;;  %v3814_v30 = vld [vmem:[%s6179_s3 + $0x10] sm:$0xff]  ;;  %v250_v8 = vand.u32 15, %v82_v48 }
  0xa0   :  { %2000 = vmatpush.msrb.mxu3 %v3814_v30  ;;  %v774_v47 = vsel %vm764_vm2, %v753_v19, %v754_v9 }
  0xa2   :  { %v4882_v50 = vpop.f32.mrf.mxu2  ;;  %3768 = vmatmul.msk.f32.gmra.mxu1 %vm896_vm0, %v777_v31  ;;  %v4892_v37 = vpop.f32.mrf.mxu0  ;;  %v1337_v31 = vrot.slane %v4887_v53, 1 }
  0xa3   :  { %3810 = vmatmul.msk.f32.gmra.mxu3 %vm896_vm0, %v4740_v56 }
  0xa4   :  { %v1357_v38 = vsel %vm1347_vm1, %v1336_v32, %v1337_v31  ;;  %v1346_v32 = vrot.slane %v4277_v10, 1  ;;  %v6230_v10 = vrot.slane %v4429_v13, 1  ;;  %v1223_v13 = vadd.f32 %v4798_v43, %v4774_v21 }
  0xa5   :  { %3737 = vmatmul.msk.f32.gmra.mxu0 %vm896_vm0, %v4815_v15  ;;  %v1473_v15 = vsel %vm6216_vm9, %v4780_v25, 0.0  ;;  %v1465_v25 = vsel %vm6217_vm5, %v1357_v38, 0.0  ;;  %v1338_v38 = vrot.slane %v4458_v29, 1  ;;  %vm699_vm9 = vcmp.lt.s32.totalorder %v4951_v3, 16 }
  0xa6   :  { %v4905_v56 = vpop.f32.mrf.mxu3  ;;  %v1348_v48 = vsel %vm1347_vm1, %v6230_v10, %v1346_v32  ;;  %v1379_v6 = vsel %vm1347_vm1, %v1346_v32, %v6231_v55  ;;  %v1687_v43 = vadd.f32 %v4772_v23, %v1220_v57  ;;  %v1688_v5 = vadd.f32 %v4808_v42, %v1223_v13 }
  0xa7   :  { %3802 = vmatmul.msk.f32.gmra.mxu2 %vm896_vm0, %v1358_v63  ;;  %v4908_v30 = vpop.f32.mrf.mxu1  ;;  %v3880_v63 = vld [vmem:[%s6179_s3 + $0x20] sm:$0xff]  ;;  %v1475_v32 = vsel %vm699_vm9, %v1379_v6, 0.0  ;;  %v1226_v23 = vadd.f32 %v4834_v4, %v4810_v14  ;;  %v6232_v57 = vrot.slane %v4253_v1, 1  ;;  %v6233_v13 = vrot.slane %v4458_v29, 7 }
  0xa8   :  { %2517 = vmatpush.msrb.mxu1 %v3880_v63  ;;  %v83_v63 = vadd.s32 184, %v4271_v7  ;;  %v5677_v7 = vld [vmem:[%s6182_s6] ss:$0 sm:$0xff]  ;;  %s4204_s6 = smov [#allocation2]  }
  0xa9   :  { %v1689_v14 = vadd.f32 %v4846_v45, %v1226_v23  ;;  %s3702_s15 = sshll.u32 %s4204_s6, 4  ;;  %s3703_s15 = int_to_ptr.vmem [resolvable:$true] %s3702_s15 }
  0xaa   :  { %v4923_v36 = vpop.f32.mrf.mxu2  ;;  %3769 = vmatmul.msk.f32.gmra.mxu1 %vm896_vm0, %v881_v44  ;;  %v4931_v35 = vpop.f32.mrf.mxu0  ;;  %v257_v11 = vand.u32 15, %v83_v63  ;;  %v1355_v63 = vsel %vm1347_vm1, %v1338_v38, %v6232_v57 }
  0xab   :  { %3811 = vmatmul.msk.f32.gmra.mxu3 %vm896_vm0, %v1473_v15  ;;  %v775_v15 = vsel %vm764_vm2, %v752_v33, %v753_v19 }
  0xac   :  { %v4973_v33 = vadd.s32 1, %v257_v11 }
  0xad   :  { %3738 = vmatmul.msk.f32.gmra.mxu0 %vm896_vm0, %v4860_v46  ;;  %v4948_v46 = vadd.s32 4294967295, %v250_v8  ;;  %v1356_v8 = vsel %vm1347_vm1, %v1337_v31, %v1338_v38 }
  0xae   :  { %v4936_v61 = vpop.f32.mrf.mxu3  ;;  %vm691_vm5 = vcmp.lt.s32.totalorder %v4973_v33, 16 }
  0xaf   :  { %3803 = vmatmul.msk.f32.gmra.mxu2 %vm896_vm0, %v1465_v25  ;;  %v4939_v44 = vpop.f32.mrf.mxu1  ;;  %vm6218_vm11 = vcmp.ge.s32.totalorder %v4948_v46, 0 }
  0xb0   :  { %v883_v11 = vsel %vm6218_vm11, %v774_v47, 0.0  ;;  %vm1888_vm11 = vcmask 130048  }
  0xb2   :  { %v4953_v25 = vpop.f32.mrf.mxu2  ;;  %3770 = vmatmul.msk.f32.gmra.mxu1 %vm896_vm0, %v775_v15  ;;  %v4984_v31 = vpop.f32.mrf.mxu0 }
  0xb3   :  { %3812 = vmatmul.msk.f32.gmra.mxu3 %vm896_vm0, %v1348_v48  ;;  %v1467_v48 = vsel %vm691_vm5, %v1355_v63, 0.0 }
  0xb5   :  { %3739 = vmatmul.msk.f32.gmra.mxu0 %vm896_vm0, %v4887_v53  ;;  %v4981_v53 = vld [vmem:[%s6178_s2] ss:$0 sm:$0xff] }
  0xb6   :  { %v4975_v21 = vpop.f32.mrf.mxu3  ;;  %v1723_v42 = vadd.f32 %v4981_v53, %v1687_v43  ;;  %v1724_v15 = vadd.f32 %v4981_v53, %v1688_v5  ;;  %v1725_v47 = vadd.f32 %v4981_v53, %v1689_v14 }
  0xb7   :  { %3804 = vmatmul.msk.f32.gmra.mxu2 %vm896_vm0, %v1356_v8  ;;  %v4987_v19 = vpop.f32.mrf.mxu1  ;;  %v773_v8 = vsel %vm764_vm2, %v754_v9, %v6233_v13 }
  0xb8   :  { %v5011_v4 = vmax.f32 %v1723_v42, 0.0  ;;  %v5014_v38 = vmax.f32 %v1724_v15, 0.0  ;;  %v5028_v5 = vmax.f32 %v1725_v47, 0.0  ;;  %v1232_v42 = vadd.f32 %v4908_v30, %v4892_v37 }
  0xba   :  { %3771 = vmatmul.msk.f32.gmra.mxu1 %vm896_vm0, %v883_v11  ;;  %v1609_v10 = vpop.f32.mrf.mxu2  ;;  %v1031_v45 = vpop.f32.mrf.mxu0  ;;  %v2307_v6 = vrot.slane %v5011_v4, 1  ;;  %v2308_v43 = vrot.slane %v5014_v38, 1  ;;  %v2309_v63 = vrot.slane %v5028_v5, 1  ;;  %v1691_v15 = vadd.f32 %v4923_v36, %v1232_v42 }
  0xbb   :  { %3813 = vmatmul.msk.f32.gmra.mxu3 %vm896_vm0, %v1475_v32  ;;  %v1235_v36 = vadd.f32 %v4939_v44, %v4931_v35  ;;  %v1238_v35 = vadd.f32 %v4987_v19, %v4984_v31 }
  0xbc   :  { %v2369_v57 = vsel %vm1347_vm1, %v2307_v6, %v2308_v43  ;;  %v1727_v47 = vadd.f32 %v4981_v53, %v1691_v15 }
  0xbd   :  { %3740 = vmatmul.msk.f32.gmra.mxu0 %vm896_vm0, %v4458_v29  ;;  %v1229_v29 = vadd.f32 %v4869_v28, %v4848_v58  ;;  %v1883_v58 = vld [vmem:[%s6179_s3] sm:$0xff] }
  0xbe   :  { %v5009_v1 = vpop.f32.mrf.mxu3  ;;  %2209 = vmatpush.msrb.mxu0 %v1883_v58 }
  0xbf   :  { %3805 = vmatmul.msk.f32.gmra.mxu2 %vm896_vm0, %v1467_v48  ;;  %v1240_v55 = vpop.f32.mrf.mxu1  ;;  %v1690_v23 = vadd.f32 %v4882_v50, %v1229_v29  ;;  %v2368_v48 = vsel %vm1347_vm1, %v2308_v43, %v2309_v63 }
  0xc1   :  { %v1726_v50 = vadd.f32 %v4981_v53, %v1690_v23 }
  0xc2   :  { %3772 = vmatmul.msk.f32.gmra.mxu1 %vm896_vm0, %v773_v8  ;;  %v1612_v9 = vpop.f32.mrf.mxu2  ;;  %v1034_v28 = vpop.f32.mrf.mxu0  ;;  %v2372_v8 = vsel %vm669_vm4, %v2368_v48, 0.0  ;;  %vm6234_vm0 = vcmp.ge.s32.totalorder %v4336_v34, 0  ;;  %vm6236_vm4 = vcmp.ge.s32.totalorder %v4384_v54, 0 }
  0xc3   :  { %3816 = vmatmul.msk.f32.vlgmr.msrb.gmra.mxu3 %vm1888_vm11, %v5011_v4  ;;  %v5054_v14 = vmax.f32 %v1726_v50, 0.0 }
  0xc5   :  { %v2310_v43 = vrot.slane %v5054_v14, 1 }
  0xc6   :  { %v1291_v11 = vpop.f32.mrf.mxu3 }
  0xc7   :  { %v5031_v32 = vadd.f32 %v1291_v11, %v4757_v17  ;;  %v1243_v17 = vpop.f32.mrf.mxu1  ;;  %v2367_v42 = vsel %vm1347_vm1, %v2309_v63, %v2310_v43 }
  0xca   :  { %3882 = vmatmul.msk.f32.vlgmr.msrb.gmra.mxu1 %vm1888_vm11, %v2369_v57  ;;  %v1615_v13 = vpop.f32.mrf.mxu2  ;;  %v1037_v29 = vpop.f32.mrf.mxu0  ;;  %v1692_v57 = vadd.f32 %v4953_v25, %v1235_v36 }
  0xcb   :  { %3817 = vmatmul.msk.f32.gmra.mxu3 %vm1888_vm11, %v5014_v38 }
  0xcc   :  { %v1728_v50 = vadd.f32 %v4981_v53, %v1692_v57 }
  0xce   :  { %v1294_v37 = vpop.f32.mrf.mxu3 }
  0xcf   :  { %v5052_v30 = vadd.f32 %v1294_v37, %v4795_v39  ;;  %v5065_v39 = vmax.f32 %v1727_v47, 0.0  ;;  %v1246_v11 = vpop.f32.mrf.mxu1  ;;  %v5085_v37 = vmax.f32 %v1728_v50, 0.0 }
  0xd1   :  { %v2311_v58 = vrot.slane %v5065_v39, 1  ;;  %v2312_v36 = vrot.slane %v5085_v37, 1 }
  0xd2   :  { %3883 = vmatmul.msk.f32.gmra.mxu1 %vm1888_vm11, %v2372_v8  ;;  %v1618_v44 = vpop.f32.mrf.mxu2  ;;  %v1040_v48 = vpop.f32.mrf.mxu0 }
  0xd3   :  { %3818 = vmatmul.msk.f32.gmra.mxu3 %vm1888_vm11, %v5028_v5  ;;  %v2366_v25 = vsel %vm1347_vm1, %v2310_v43, %v2311_v58  ;;  %v2365_v40 = vsel %vm1347_vm1, %v2311_v58, %v2312_v36 }
  0xd4   :  { %v2374_v19 = vsel %vm671_vm6, %v2366_v25, 0.0  ;;  %vm6237_vm6 = vcmp.lt.s32.totalorder %v4902_v62, 16 }
  0xd6   :  { %v1297_v23 = vpop.f32.mrf.mxu3 }
  0xd7   :  { %v5068_v22 = vadd.f32 %v1297_v23, %v4831_v12  ;;  %v1693_v12 = vadd.f32 %v1609_v10, %v1238_v35  ;;  %v1249_v31 = vpop.f32.mrf.mxu1  ;;  %v1241_v10 = vadd.f32 %v1240_v55, %v1031_v45  ;;  %v1244_v35 = vadd.f32 %v1243_v17, %v1034_v28 }
  0xd9   :  { %v1729_v8 = vadd.f32 %v4981_v53, %v1693_v12  ;;  %v1694_v57 = vadd.f32 %v1612_v9, %v1241_v10  ;;  %v1695_v55 = vadd.f32 %v1615_v13, %v1244_v35  ;;  %v2716_v13 = vld [vmem:[%s6181_s5 + $0x8] sm:$0xff] }
  0xda   :  { %3884 = vmatmul.msk.f32.gmra.mxu1 %vm1888_vm11, %v2367_v42  ;;  %v1621_v47 = vpop.f32.mrf.mxu2  ;;  %v1043_v50 = vpop.f32.mrf.mxu0  ;;  %2831 = vmatpush.msrb.mxu2 %v2716_v13 }
  0xdb   :  { %3819 = vmatmul.msk.f32.gmra.mxu3 %vm1888_vm11, %v5054_v14  ;;  %v5094_v43 = vmax.f32 %v1729_v8, 0.0  ;;  %v1730_v45 = vadd.f32 %v4981_v53, %v1694_v57  ;;  %v1731_v17 = vadd.f32 %v4981_v53, %v1695_v55  ;;  %v1247_v8 = vadd.f32 %v1246_v11, %v1037_v29 }
  0xdc   :  { %v1250_v55 = vadd.f32 %v1249_v31, %v1040_v48 }
  0xdd   :  { %v2313_v42 = vrot.slane %v5094_v43, 1  ;;  %v1696_v57 = vadd.f32 %v1618_v44, %v1247_v8 }
  0xde   :  { %v1300_v15 = vpop.f32.mrf.mxu3  ;;  %v1697_v11 = vadd.f32 %v1621_v47, %v1250_v55 }
  0xdf   :  { %v5083_v63 = vadd.f32 %v1300_v15, %v4863_v2  ;;  %v1252_v12 = vpop.f32.mrf.mxu1  ;;  %v5111_v15 = vmax.f32 %v1730_v45, 0.0  ;;  %v1732_v29 = vadd.f32 %v4981_v53, %v1696_v57 }
  0xe0   :  { %v1733_v31 = vadd.f32 %v4981_v53, %v1697_v11  ;;  %v1253_v47 = vadd.f32 %v1252_v12, %v1043_v50 }
  0xe1   :  { %v2314_v10 = vrot.slane %v5111_v15, 1 }
  0xe2   :  { %3885 = vmatmul.msk.f32.gmra.mxu1 %vm1888_vm11, %v2374_v19  ;;  %v1624_v9 = vpop.f32.mrf.mxu2  ;;  %v1046_v19 = vpop.f32.mrf.mxu0  ;;  %v5148_v13 = vmax.f32 %v1733_v31, 0.0 }
  0xe3   :  { %3820 = vmatmul.msk.f32.gmra.mxu3 %vm1888_vm11, %v5065_v39  ;;  %v2363_v35 = vsel %vm1347_vm1, %v2313_v42, %v2314_v10  ;;  %v1698_v26 = vadd.f32 %v1624_v9, %v1253_v47 }
  0xe4   :  { %v2317_v55 = vrot.slane %v5148_v13, 1 }
  0xe5   :  { %v1734_v50 = vadd.f32 %v4981_v53, %v1698_v26 }
  0xe6   :  { %v1303_v2 = vpop.f32.mrf.mxu3 }
  0xe7   :  { %v5097_v23 = vadd.f32 %v1303_v2, %v4905_v56  ;;  %v2364_v56 = vsel %vm1347_vm1, %v2312_v36, %v2313_v42  ;;  %v5123_v36 = vmax.f32 %v1731_v17, 0.0 }
  0xe8   :  { %v2376_v28 = vsel %vm673_vm8, %v2364_v56, 0.0  ;;  %vm6239_vm8 = vcmp.ge.s32.totalorder %v4491_v49, 0 }
  0xe9   :  { %v2315_v45 = vrot.slane %v5123_v36, 1 }
  0xea   :  { %3886 = vmatmul.msk.f32.gmra.mxu1 %vm1888_vm11, %v2365_v40  ;;  %v1627_v40 = vpop.f32.mrf.mxu2  ;;  %v1049_v56 = vpop.f32.mrf.mxu0 }
  0xeb   :  { %3821 = vmatmul.msk.f32.gmra.mxu3 %vm1888_vm11, %v5085_v37 }
  0xee   :  { %v1306_v25 = vpop.f32.mrf.mxu3 }
  0xef   :  { %v5109_v58 = vadd.f32 %v1306_v25, %v4936_v61  ;;  %v1255_v61 = vpop.f32.mrf.mxu1 }
  0xf2   :  { %3887 = vmatmul.msk.f32.gmra.mxu1 %vm1888_vm11, %v2376_v28  ;;  %v5139_v28 = vmax.f32 %v1732_v29, 0.0  ;;  %v1630_v42 = vpop.f32.mrf.mxu2  ;;  %v1256_v29 = vadd.f32 %v1255_v61, %v1046_v19 }
  0xf3   :  { %3822 = vmatmul.msk.f32.gmra.mxu3 %vm1888_vm11, %v5094_v43 }
  0xf4   :  { %v2316_v17 = vrot.slane %v5139_v28, 1  ;;  %v1699_v11 = vadd.f32 %v1627_v40, %v1256_v29 }
  0xf6   :  { %v1309_v60 = vpop.f32.mrf.mxu3  ;;  %v1735_v61 = vadd.f32 %v4981_v53, %v1699_v11 }
  0xf7   :  { %v5126_v2 = vadd.f32 %v1309_v60, %v4975_v21  ;;  %v2362_v21 = vsel %vm1347_vm1, %v2314_v10, %v2315_v45  ;;  %v1258_v44 = vpop.f32.mrf.mxu1  ;;  %v1052_v10 = vpop.f32.mrf.mxu0 }
  0xf8   :  { %v2378_v48 = vsel %vm675_vm10, %v2362_v21, 0.0  ;;  %v1259_v40 = vadd.f32 %v1258_v44, %v1049_v56  ;;  %vm6241_vm10 = vcmp.ge.s32.totalorder %v4542_v27, 0 }
  0xfa   :  { %3888 = vmatmul.msk.f32.gmra.mxu1 %vm1888_vm11, %v2363_v35  ;;  %v2361_v35 = vsel %vm1347_vm1, %v2315_v45, %v2316_v17  ;;  %v1633_v12 = vpop.f32.mrf.mxu2  ;;  %v5165_v45 = vmax.f32 %v1734_v50, 0.0  ;;  %v1700_v59 = vadd.f32 %v1630_v42, %v1259_v40 }
  0xfb   :  { %3823 = vmatmul.msk.f32.gmra.mxu3 %vm1888_vm11, %v5111_v15 }
  0xfc   :  { %v2318_v47 = vrot.slane %v5165_v45, 1  ;;  %v1736_v56 = vadd.f32 %v4981_v53, %v1700_v59 }
  0xfe   :  { %v5137_v25 = vpop.f32.mrf.mxu3 }
  0xff   :  { %v1261_v57 = vpop.f32.mrf.mxu1 }
 0x100   :  { %v1262_v50 = vadd.f32 %v1261_v57, %v1052_v10 }
 0x102   :  { %3889 = vmatmul.msk.f32.gmra.mxu1 %vm1888_vm11, %v2378_v48  ;;  %v1055_v48 = vpop.f32.mrf.mxu0 }
 0x103   :  { %3824 = vmatmul.msk.f32.gmra.mxu3 %vm1888_vm11, %v5123_v36 }
 0x106   :  { %v1663_v8 = vpop.f32.mrf.mxu3 }
 0x107   :  { %v5151_v60 = vadd.f32 %v1663_v8, %v5031_v32  ;;  %v2360_v32 = vsel %vm1347_vm1, %v2316_v17, %v2317_v55  ;;  %v1264_v31 = vpop.f32.mrf.mxu1  ;;  %v5174_v17 = vmax.f32 %v1735_v61, 0.0 }
 0x108   :  { %v2380_v19 = vsel %vm677_vm13, %v2360_v32, 0.0  ;;  %v1701_v32 = vadd.f32 %v1633_v12, %v1262_v50  ;;  %v1265_v12 = vadd.f32 %v1264_v31, %v1055_v48 }
 0x109   :  { %v2319_v29 = vrot.slane %v5174_v17, 1 }
 0x10a   :  { %3890 = vmatmul.msk.f32.gmra.mxu1 %vm1888_vm11, %v2361_v35  ;;  %v2359_v35 = vsel %vm1347_vm1, %v2317_v55, %v2318_v47  ;;  %v1058_v11 = vpop.f32.mrf.mxu0  ;;  %v5191_v55 = vmax.f32 %v1736_v56, 0.0 }
 0x10b   :  { %3825 = vmatmul.msk.f32.gmra.mxu3 %vm1888_vm11, %v5139_v28 }
 0x10c   :  { %v2320_v61 = vrot.slane %v5191_v55, 1 }
 0x10e   :  { %v1666_v9 = vpop.f32.mrf.mxu3 }
 0x10f   :  { %v5163_v21 = vadd.f32 %v1666_v9, %v5052_v30  ;;  %v1636_v30 = vpop.f32.mrf.mxu2  ;;  %v1267_v44 = vpop.f32.mrf.mxu1 }
 0x110   :  { %v1702_v41 = vadd.f32 %v1636_v30, %v1265_v12  ;;  %v1268_v56 = vadd.f32 %v1267_v44, %v1058_v11 }
 0x112   :  { %3891 = vmatmul.msk.f32.gmra.mxu1 %vm1888_vm11, %v2380_v19  ;;  %v1737_v19 = vadd.f32 %v4981_v53, %v1701_v32  ;;  %v1738_v48 = vadd.f32 %v4981_v53, %v1702_v41 }
 0x113   :  { %3826 = vmatmul.msk.f32.gmra.mxu3 %vm1888_vm11, %v5148_v13 }
 0x114   :  { %v5200_v40 = vmax.f32 %v1737_v19, 0.0 }
 0x116   :  { %v1669_v8 = vpop.f32.mrf.mxu3  ;;  %v2321_v50 = vrot.slane %v5200_v40, 1 }
 0x117   :  { %v5177_v26 = vadd.f32 %v1669_v8, %v5068_v22  ;;  %v2358_v22 = vsel %vm1347_vm1, %v2318_v47, %v2319_v29  ;;  %v1639_v10 = vpop.f32.mrf.mxu2  ;;  %v1270_v47 = vpop.f32.mrf.mxu1 }
 0x118   :  { %v2382_v57 = vsel %vm679_vm14, %v2358_v22, 0.0  ;;  %v1703_v31 = vadd.f32 %v1639_v10, %v1268_v56 }
 0x11a   :  { %3892 = vmatmul.msk.f32.gmra.mxu1 %vm1888_vm11, %v2359_v35  ;;  %v2357_v35 = vsel %vm1347_vm1, %v2319_v29, %v2320_v61  ;;  %v5217_v29 = vmax.f32 %v1738_v48, 0.0 }
 0x11b   :  { %3827 = vmatmul.msk.f32.gmra.mxu3 %vm1888_vm11, %v5165_v45 }
 0x11c   :  { %v2322_v12 = vrot.slane %v5217_v29, 1 }
 0x11e   :  { %v1672_v42 = vpop.f32.mrf.mxu3  ;;  %v2355_v24 = vsel %vm1347_vm1, %v2321_v50, %v2322_v12 }
 0x11f   :  { %v5189_v9 = vadd.f32 %v1672_v42, %v5083_v63  ;;  %v1061_v63 = vpop.f32.mrf.mxu0  ;;  %v1642_v32 = vpop.f32.mrf.mxu2 }
 0x120   :  { %v1273_v11 = vpop.f32.mrf.mxu1  ;;  %v1271_v10 = vadd.f32 %v1270_v47, %v1061_v63 }
 0x121   :  { %v1750_v49 = vadd.f32 %v4981_v53, %v5189_v9 }
 0x122   :  { %3893 = vmatmul.msk.f32.gmra.mxu1 %vm1888_vm11, %v2382_v57  ;;  %v1739_v57 = vadd.f32 %v4981_v53, %v1703_v31  ;;  %v1704_v41 = vadd.f32 %v1642_v32, %v1271_v10 }
 0x123   :  { %3828 = vmatmul.msk.f32.gmra.mxu3 %vm1888_vm11, %v5174_v17 }
 0x124   :  { %v1740_v63 = vadd.f32 %v4981_v53, %v1704_v41 }
 0x126   :  { %v1675_v8 = vpop.f32.mrf.mxu3 }
 0x127   :  { %v5203_v59 = vadd.f32 %v1675_v8, %v5097_v23  ;;  %v2356_v23 = vsel %vm1347_vm1, %v2320_v61, %v2321_v50  ;;  %v1064_v42 = vpop.f32.mrf.mxu0  ;;  %v1645_v19 = vpop.f32.mrf.mxu2 }
 0x128   :  { %v2384_v44 = vsel %vm681_vm15, %v2356_v23, 0.0  ;;  %v1274_v56 = vadd.f32 %v1273_v11, %v1064_v42  ;;  %v1276_v31 = vpop.f32.mrf.mxu1  ;;  %v5242_v42 = vmax.f32 %v1740_v63, 0.0 }
 0x129   :  { %v1751_v9 = vadd.f32 %v4981_v53, %v5203_v59 }
 0x12a   :  { %3894 = vmatmul.msk.f32.gmra.mxu1 %vm1888_vm11, %v2357_v35  ;;  %v1705_v47 = vadd.f32 %v1645_v19, %v1274_v56 }
 0x12b   :  { %3829 = vmatmul.msk.f32.gmra.mxu3 %vm1888_vm11, %v5191_v55 }
 0x12e   :  { %v1678_v22 = vpop.f32.mrf.mxu3 }
 0x12f   :  { %v5215_v30 = vadd.f32 %v1678_v22, %v5109_v58  ;;  %v5226_v58 = vmax.f32 %v1739_v57, 0.0  ;;  %v1067_v48 = vpop.f32.mrf.mxu0  ;;  %v1648_v50 = vpop.f32.mrf.mxu2 }
 0x130   :  { %v1279_v19 = vpop.f32.mrf.mxu1 }
 0x131   :  { %v2323_v35 = vrot.slane %v5226_v58, 1  ;;  %v1752_v27 = vadd.f32 %v4981_v53, %v5215_v30 }
 0x132   :  { %3895 = vmatmul.msk.f32.gmra.mxu1 %vm1888_vm11, %v2384_v44  ;;  %v1741_v44 = vadd.f32 %v4981_v53, %v1705_v47 }
 0x133   :  { %3830 = vmatmul.msk.f32.gmra.mxu3 %vm1888_vm11, %v5200_v40  ;;  %v2354_v32 = vsel %vm1347_vm1, %v2322_v12, %v2323_v35  ;;  %v2324_v12 = vrot.slane %v5242_v42, 1  ;;  %v5466_v30 = vmax.f32 %v1752_v27, 0.0 }
 0x134   :  { %v2386_v11 = vsel %vm683_vm12, %v2354_v32, 0.0  ;;  %v5255_v20 = vmax.f32 %v1741_v44, 0.0 }
 0x136   :  { %v1681_v61 = vpop.f32.mrf.mxu3 }
 0x137   :  { %v5229_v8 = vadd.f32 %v1681_v61, %v5126_v2  ;;  %v1313_v2 = vadd.f32 %v5137_v25, %v5009_v1  ;;  %v1277_v1 = vadd.f32 %v1276_v31, %v1067_v48  ;;  %v1070_v25 = vpop.f32.mrf.mxu0  ;;  %v1787_v61 = vrot.slane %v5011_v4, 7  ;;  %v1651_v63 = vpop.f32.mrf.mxu2 }
 0x138   :  { %v2353_v31 = vsel %vm1347_vm1, %v2323_v35, %v2324_v12  ;;  %v1280_v47 = vadd.f32 %v1279_v19, %v1070_v25  ;;  %v1282_v35 = vpop.f32.mrf.mxu1 }
 0x139   :  { %v1706_v56 = vadd.f32 %v1648_v50, %v1277_v1  ;;  %v1788_v50 = vrot.slane %v5014_v38, 7  ;;  %v1789_v38 = vrot.slane %v5028_v5, 7 }
 0x13a   :  { %3896 = vmatmul.msk.f32.gmra.mxu1 %vm1888_vm11, %v2355_v24 }
 0x13b   :  { %3831 = vmatmul.msk.f32.gmra.mxu3 %vm1888_vm11, %v5217_v29  ;;  %v1742_v32 = vadd.f32 %v4981_v53, %v1706_v56  ;;  %v1848_v0 = vsel %vm764_vm2, %v1788_v50, %v1789_v38 }
 0x13d   :  { %v5278_v44 = vmax.f32 %v1742_v32, 0.0 }
 0x13e   :  { %v1684_v23 = vpop.f32.mrf.mxu3 }
 0x13f   :  { %v1718_v22 = vadd.f32 %v1684_v23, %v1313_v2  ;;  %v2325_v2 = vrot.slane %v5255_v20, 1  ;;  %v1707_v23 = vadd.f32 %v1651_v63, %v1280_v47  ;;  %v1654_v19 = vpop.f32.mrf.mxu2 }
 0x140   :  { %v1285_v63 = vpop.f32.mrf.mxu1 }
 0x141   :  { %v1754_v57 = vadd.f32 %v4981_v53, %v1718_v22  ;;  %v2352_v18 = vsel %vm1347_vm1, %v2324_v12, %v2325_v2  ;;  %v1073_v22 = vpop.f32.mrf.mxu0  ;;  %v1743_v25 = vadd.f32 %v4981_v53, %v1707_v23 }
 0x142   :  { %3897 = vmatmul.msk.f32.gmra.mxu1 %vm1888_vm11, %v2386_v11  ;;  %v2715_v11 = vld [vmem:[%s6181_s5] sm:$0xff]  ;;  %v2388_v1 = vsel %vm685_vm7, %v2352_v18, 0.0  ;;  %v1283_v12 = vadd.f32 %v1282_v35, %v1073_v22  ;;  %v1790_v18 = vrot.slane %v5054_v14, 7  ;;  %vm6238_vm7 = vcmp.ge.s32.totalorder %v4433_v16, 0 }
 0x143   :  { %v5248_v10 = vmax.f32 %v1754_v57, 0.0  ;;  %3832 = vmatmul.msk.f32.gmra.mxu3 %vm1888_vm11, %v5226_v58  ;;  %2832 = vmatpush.msrb.mxu2 %v2715_v11  ;;  %v1849_v57 = vsel %vm764_vm2, %v1787_v61, %v1788_v50  ;;  %v5291_v56 = vmax.f32 %v1743_v25, 0.0  ;;  %v1748_v16 = vadd.f32 %v4981_v53, %v5163_v21 }
 0x144   :  { %v1847_v35 = vsel %vm764_vm2, %v1789_v38, %v1790_v18  ;;  %v1749_v21 = vadd.f32 %v4981_v53, %v5177_v26 }
 0x145   :  { %v1818_v41 = vrot.slane %v5248_v10, 7  ;;  %v2327_v47 = vrot.slane %v5291_v56, 1 }
 0x147   :  { %v1850_v24 = vsel %vm764_vm2, %v1818_v41, %v1787_v61  ;;  %v1708_v61 = vadd.f32 %v1654_v19, %v1283_v12  ;;  %v1657_v23 = vpop.f32.mrf.mxu2 }
 0x148   :  { %v1851_v48 = vsel %vm508_vm3, %v1850_v24, 0.0  ;;  %v2326_v24 = vrot.slane %v5278_v44, 1  ;;  %vm6235_vm3 = vcmp.lt.s32.totalorder %v4828_v51, 16  ;;  %v1288_v14 = vpop.f32.mrf.mxu1 }
 0x149   :  { %3848 = vmatmul.msk.f32.vlgmr.msrb.gmra.mxu0 %vm1888_vm11, %v1851_v48  ;;  %v1076_v5 = vpop.f32.mrf.mxu0  ;;  %v1853_v48 = vsel %vm6234_vm0, %v1848_v0, 0.0  ;;  %v1744_v50 = vadd.f32 %v4981_v53, %v1708_v61 }
 0x14a   :  { %3898 = vmatmul.msk.f32.gmra.mxu1 %vm1888_vm11, %v2353_v31  ;;  %v2351_v31 = vsel %vm1347_vm1, %v2325_v2, %v2326_v24  ;;  %v1286_v32 = vadd.f32 %v1285_v63, %v1076_v5  ;;  %v2350_v22 = vsel %vm1347_vm1, %v2326_v24, %v2327_v47  ;;  %v1792_v63 = vrot.slane %v5085_v37, 7 }
 0x14b   :  { %3833 = vmatmul.msk.f32.gmra.mxu3 %vm1888_vm11, %v5242_v42  ;;  %v5308_v2 = vmax.f32 %v1744_v50, 0.0  ;;  %v2390_v11 = vsel %vm6235_vm3, %v2350_v22, 0.0  ;;  %v1747_v37 = vadd.f32 %v4981_v53, %v5151_v60  ;;  %v1794_v60 = vrot.slane %v5111_v15, 7 }
 0x14c   :  { %v1709_v34 = vadd.f32 %v1657_v23, %v1286_v32  ;;  %v1793_v32 = vrot.slane %v5094_v43, 7  ;;  %v5351_v23 = vpop.f32.mrf.mxu3  ;;  %v5380_v15 = vmax.f32 %v1748_v16, 0.0  ;;  %vm6256_vm3 = vcmp.ge.s32.totalorder %v4948_v46, 0 }
 0x14d   :  { %v2328_v19 = vrot.slane %v5308_v2, 1  ;;  %v5360_v22 = vmax.f32 %v1747_v37, 0.0  ;;  %v5432_v37 = vmax.f32 %v1751_v9, 0.0 }
 0x14e   :  { %v1844_v62 = vsel %vm764_vm2, %v1792_v63, %v1793_v32 }
 0x14f   :  { %v2349_v0 = vsel %vm1347_vm1, %v2327_v47, %v2328_v19  ;;  %v1857_v43 = vsel %vm6238_vm7, %v1844_v62, 0.0  ;;  %v2335_v62 = vrot.slane %v5432_v37, 1 }
 0x151   :  { %3849 = vmatmul.msk.f32.gmra.mxu0 %vm1888_vm11, %v1849_v57  ;;  %v1791_v57 = vrot.slane %v5065_v39, 7  ;;  %v1079_v25 = vpop.f32.mrf.mxu0  ;;  %v1660_v39 = vpop.f32.mrf.mxu2 }
 0x152   :  { %3899 = vmatmul.msk.f32.gmra.mxu1 %vm1888_vm11, %v2388_v1  ;;  %v1745_v1 = vadd.f32 %v4981_v53, %v1709_v34  ;;  %v1289_v38 = vadd.f32 %v1288_v14, %v1079_v25  ;;  %v1843_v25 = vsel %vm764_vm2, %v1793_v32, %v1794_v60  ;;  %v1795_v14 = vrot.slane %v5123_v36, 7 }
 0x153   :  { %3834 = vmatmul.msk.f32.gmra.mxu3 %vm1888_vm11, %v5255_v20  ;;  %v1846_v51 = vsel %vm764_vm2, %v1790_v18, %v1791_v57  ;;  %v2332_v36 = vrot.slane %v5380_v15, 1 }
 0x154   :  { %v5321_v12 = vmax.f32 %v1745_v1, 0.0  ;;  %v1855_v24 = vsel %vm6236_vm4, %v1846_v51, 0.0  ;;  %v1710_v5 = vadd.f32 %v1660_v39, %v1289_v38  ;;  %v1842_v51 = vsel %vm764_vm2, %v1794_v60, %v1795_v14 }
 0x155   :  { %v5392_v38 = vmax.f32 %v1749_v21, 0.0  ;;  %v1859_v33 = vsel %vm6239_vm8, %v1842_v51, 0.0  ;;  %v1753_v21 = vadd.f32 %v4981_v53, %v5229_v8 }
 0x156   :  { %v2329_v61 = vrot.slane %v5321_v12, 1  ;;  %v1746_v54 = vadd.f32 %v4981_v53, %v1710_v5  ;;  %v1809_v60 = vrot.slane %v5321_v12, 7 }
 0x158   :  { %v5344_v50 = vmax.f32 %v1746_v54, 0.0 }
 0x159   :  { %3850 = vmatmul.msk.f32.gmra.mxu0 %vm1888_vm11, %v1853_v48  ;;  %v2348_v48 = vsel %vm1347_vm1, %v2328_v19, %v2329_v61 }
 0x15a   :  { %3900 = vmatmul.msk.f32.gmra.mxu1 %vm1888_vm11, %v2351_v31  ;;  %v1845_v31 = vsel %vm764_vm2, %v1791_v57, %v1792_v63  ;;  %v2392_v47 = vsel %vm6237_vm6, %v2348_v48, 0.0  ;;  %v2330_v18 = vrot.slane %v5344_v50, 1  ;;  %v5372_v57 = vpop.f32.mrf.mxu3  ;;  %v1797_v48 = vrot.slane %v5148_v13, 7 }
 0x15b   :  { %3835 = vmatmul.msk.f32.gmra.mxu3 %vm1888_vm11, %v5278_v44  ;;  %v1810_v16 = vrot.slane %v5344_v50, 7 }
 0x15c   :  { %v2347_v34 = vsel %vm1347_vm1, %v2329_v61, %v2330_v18  ;;  %v1796_v61 = vrot.slane %v5139_v28, 7 }
 0x15e   :  { %v1841_v63 = vsel %vm764_vm2, %v1795_v14, %v1796_v61  ;;  %v1840_v13 = vsel %vm764_vm2, %v1796_v61, %v1797_v48  ;;  %v6242_v14 = vld [vmem:[#allocation13_spill] sm:$0xff] }
 0x15f   :  { %vm6243_vm12 = vcmp.lt.s32.totalorder %v6242_v14, 16  ;;  %v1803_v14 = vrot.slane %v5226_v58, 7  ;;  %v6250_v58 = vld [vmem:[#allocation11_spill] sm:$0xff] }
 0x161   :  { %3851 = vmatmul.msk.f32.gmra.mxu0 %vm1888_vm11, %v1847_v35  ;;  %v2331_v35 = vrot.slane %v5360_v22, 1 }
 0x162   :  { %3901 = vmatmul.msk.f32.gmra.mxu1 %vm1888_vm11, %v2390_v11  ;;  %v5368_v11 = vpop.f32.mrf.mxu1 }
 0x163   :  { %3836 = vmatmul.msk.f32.gmra.mxu3 %vm1888_vm11, %v5291_v56  ;;  %v2346_v1 = vsel %vm1347_vm1, %v2330_v18, %v2331_v35  ;;  %v2345_v26 = vsel %vm1347_vm1, %v2331_v35, %v2332_v36 }
 0x164   :  { %v2394_v19 = vsel %vm691_vm5, %v2346_v1, 0.0  ;;  %vm6240_vm5 = vcmp.lt.s32.totalorder %v4729_v52, 16  ;;  %v1861_v52 = vsel %vm6241_vm10, %v1840_v13, 0.0  ;;  %v6246_v13 = vld [vmem:[#allocation15_spill] sm:$0xff] }
 0x165   :  { %vm6247_vm14 = vcmp.lt.s32.totalorder %v6246_v13, 16 }
 0x169   :  { %3852 = vmatmul.msk.f32.gmra.mxu0 %vm1888_vm11, %v1855_v24  ;;  %v5398_v24 = vpop.f32.mrf.mxu3 }
 0x16a   :  { %3902 = vmatmul.msk.f32.gmra.mxu1 %vm1888_vm11, %v2349_v0  ;;  %v5394_v39 = vpop.f32.mrf.mxu1  ;;  %v2333_v0 = vrot.slane %v5392_v38, 1 }
 0x16b   :  { %3837 = vmatmul.msk.f32.gmra.mxu3 %vm1888_vm11, %v5308_v2 }
 0x16c   :  { %v2344_v5 = vsel %vm1347_vm1, %v2332_v36, %v2333_v0  ;;  %v2336_v36 = vrot.slane %v5466_v30, 1 }
 0x16d   :  { %v2396_v28 = vsel %vm6240_vm5, %v2344_v5, 0.0 }
 0x16e   :  { %v2341_v53 = vsel %vm1347_vm1, %v2335_v62, %v2336_v36 }
 0x171   :  { %3853 = vmatmul.msk.f32.gmra.mxu0 %vm1888_vm11, %v1845_v31  ;;  %v5418_v31 = vmax.f32 %v1750_v49, 0.0  ;;  %v1800_v49 = vrot.slane %v5191_v55, 7 }
 0x172   :  { %3903 = vmatmul.msk.f32.gmra.mxu1 %vm1888_vm11, %v2392_v47  ;;  %v5415_v54 = vpop.f32.mrf.mxu1  ;;  %v5424_v47 = vpop.f32.mrf.mxu3 }
 0x173   :  { %3838 = vmatmul.msk.f32.gmra.mxu3 %vm1888_vm11, %v5321_v12  ;;  %v2334_v32 = vrot.slane %v5418_v31, 1 }
 0x175   :  { %v2343_v59 = vsel %vm1347_vm1, %v2333_v0, %v2334_v32  ;;  %v2342_v35 = vsel %vm1347_vm1, %v2334_v32, %v2335_v62  ;;  %v6244_v0 = vld [vmem:[#allocation8_spill] sm:$0xff] }
 0x176   :  { %vm6245_vm13 = vcmp.ge.s32.totalorder %v6244_v0, 0 }
 0x179   :  { %3854 = vmatmul.msk.f32.gmra.mxu0 %vm1888_vm11, %v1857_v43  ;;  %v1798_v43 = vrot.slane %v5165_v45, 7  ;;  %v5464_v45 = vsel %vm764_vm2, %v1809_v60, %v1810_v16 }
 0x17a   :  { %3904 = vmatmul.msk.f32.gmra.mxu1 %vm1888_vm11, %v2347_v34  ;;  %v5440_v18 = vpop.f32.mrf.mxu1  ;;  %v5446_v34 = vpop.f32.mrf.mxu3 }
 0x17b   :  { %3839 = vmatmul.msk.f32.gmra.mxu3 %vm1888_vm11, %v5344_v50  ;;  %v1839_v1 = vsel %vm764_vm2, %v1797_v48, %v1798_v43 }
 0x181   :  { %3855 = vmatmul.msk.f32.gmra.mxu0 %vm1888_vm11, %v1843_v25  ;;  %v1799_v25 = vrot.slane %v5174_v17, 7 }
 0x182   :  { %3905 = vmatmul.msk.f32.gmra.mxu1 %vm1888_vm11, %v2394_v19  ;;  %v2398_v19 = vsel %vm6243_vm12, %v2342_v35, 0.0  ;;  %v5475_v17 = vpop.f32.mrf.mxu1  ;;  %v1802_v35 = vrot.slane %v5217_v29, 7 }
 0x183   :  { %3840 = vmatmul.msk.f32.gmra.mxu3 %vm1888_vm11, %v5360_v22  ;;  %v1838_v51 = vsel %vm764_vm2, %v1798_v43, %v1799_v25  ;;  %v1837_v48 = vsel %vm764_vm2, %v1799_v25, %v1800_v49 }
 0x184   :  { %v1863_v61 = vsel %vm6245_vm13, %v1838_v51, 0.0  ;;  %v1834_v4 = vsel %vm764_vm2, %v1802_v35, %v1803_v14  ;;  %v5544_v51 = vld [vmem:[%s6180_s4] ss:$0 sm:$0xff] }
 0x189   :  { %3856 = vmatmul.msk.f32.gmra.mxu0 %vm1888_vm11, %v1859_v33  ;;  %v5480_v33 = vmax.f32 %v1753_v21, 0.0 }
 0x18a   :  { %3906 = vmatmul.msk.f32.gmra.mxu1 %vm1888_vm11, %v2345_v26  ;;  %v5482_v26 = vpop.f32.mrf.mxu3  ;;  %v5494_v5 = vpop.f32.mrf.mxu1 }
 0x18b   :  { %3841 = vmatmul.msk.f32.gmra.mxu3 %vm1888_vm11, %v5380_v15  ;;  %v2337_v8 = vrot.slane %v5480_v33, 1 }
 0x191   :  { %3857 = vmatmul.msk.f32.gmra.mxu0 %vm1888_vm11, %v1841_v63  ;;  %v2340_v63 = vsel %vm1347_vm1, %v2336_v36, %v2337_v8 }
 0x192   :  { %3907 = vmatmul.msk.f32.gmra.mxu1 %vm1888_vm11, %v2396_v28  ;;  %v1801_v28 = vrot.slane %v5200_v40, 7  ;;  %v5501_v9 = vpop.f32.mrf.mxu3  ;;  %v2400_v32 = vsel %vm6247_vm14, %v2340_v63, 0.0  ;;  %v5514_v62 = vpop.f32.mrf.mxu1  ;;  %v1805_v63 = vrot.slane %v5255_v20, 7 }
 0x193   :  { %3842 = vmatmul.msk.f32.gmra.mxu3 %vm1888_vm11, %v5392_v38 }
 0x194   :  { %v1836_v55 = vsel %vm764_vm2, %v1800_v49, %v1801_v28  ;;  %v1835_v25 = vsel %vm764_vm2, %v1801_v28, %v1802_v35 }
 0x199   :  { %3858 = vmatmul.msk.f32.gmra.mxu0 %vm1888_vm11, %v1861_v52  ;;  %v2338_v52 = vrot.slane %v5248_v10, 1 }
 0x19a   :  { %3908 = vmatmul.msk.f32.gmra.mxu1 %vm1888_vm11, %v2343_v59  ;;  %v6248_v59 = vld [vmem:[#allocation10_spill] sm:$0xff]  ;;  %v5519_v27 = vpop.f32.mrf.mxu3  ;;  %v5535_v21 = vpop.f32.mrf.mxu1 }
 0x19b   :  { %3843 = vmatmul.msk.f32.gmra.mxu3 %vm1888_vm11, %v5418_v31  ;;  %vm6249_vm15 = vcmp.ge.s32.totalorder %v6248_v59, 0  ;;  %v2339_v43 = vsel %vm1347_vm1, %v2337_v8, %v2338_v52 }
 0x19c   :  { %v1865_v40 = vsel %vm6249_vm15, %v1836_v55, 0.0  ;;  %v6252_v55 = vld [vmem:[#allocation12_spill] sm:$0xff] }
 0x1a1   :  { %3859 = vmatmul.msk.f32.gmra.mxu0 %vm1888_vm11, %v1839_v1  ;;  %v2370_v1 = vsel %vm1347_vm1, %v2338_v52, %v2307_v6  ;;  %vm6251_vm1 = vcmp.ge.s32.totalorder %v6250_v58, 0  ;;  %v6254_v58 = vld [vmem:[#allocation14_spill] sm:$0xff] }
 0x1a2   :  { %3909 = vmatmul.msk.f32.gmra.mxu1 %vm1888_vm11, %v2398_v19  ;;  %v2402_v19 = vsel %vm699_vm9, %v2370_v1, 0.0  ;;  %v1867_v36 = vsel %vm6251_vm1, %v1834_v4, 0.0  ;;  %vm6253_vm9 = vcmp.ge.s32.totalorder %v6252_v55, 0  ;;  %vm6255_vm0 = vcmp.ge.s32.totalorder %v6254_v58, 0  ;;  %v6259_v58 = vld [vmem:[#allocation6_spill] sm:$0xff] }
 0x1a3   :  { %3844 = vmatmul.msk.f32.gmra.mxu3 %vm1888_vm11, %v5432_v37  ;;  %vm6260_vm6 = vcmp.ge.s32.totalorder %v6259_v58, 0 }
 0x1a9   :  { %3860 = vmatmul.msk.f32.gmra.mxu0 %vm1888_vm11, %v1863_v61  ;;  %v1804_v61 = vrot.slane %v5242_v42, 7 }
 0x1aa   :  { %3910 = vmatmul.msk.f32.gmra.mxu1 %vm1888_vm11, %v2341_v53 }
 0x1ab   :  { %3845 = vmatmul.msk.f32.gmra.mxu3 %vm1888_vm11, %v5466_v30  ;;  %v1833_v49 = vsel %vm764_vm2, %v1803_v14, %v1804_v61  ;;  %v1832_v42 = vsel %vm764_vm2, %v1804_v61, %v1805_v63 }
 0x1ac   :  { %v1869_v52 = vsel %vm6253_vm9, %v1832_v42, 0.0 }
 0x1b1   :  { %3861 = vmatmul.msk.f32.gmra.mxu0 %vm1888_vm11, %v1837_v48 }
 0x1b2   :  { %3911 = vmatmul.msk.f32.gmra.mxu1 %vm1888_vm11, %v2400_v32  ;;  %v2026_v32 = vpop.f32.mrf.mxu3 }
 0x1b3   :  { %3846 = vmatmul.msk.f32.gmra.mxu3 %vm1888_vm11, %v5480_v33 }
 0x1b9   :  { %3862 = vmatmul.msk.f32.gmra.mxu0 %vm1888_vm11, %v1865_v40  ;;  %v1806_v40 = vrot.slane %v5278_v44, 7 }
 0x1ba   :  { %3912 = vmatmul.msk.f32.gmra.mxu1 %vm1888_vm11, %v2339_v43  ;;  %v2029_v14 = vpop.f32.mrf.mxu3 }
 0x1bb   :  { %3847 = vmatmul.msk.f32.gmra.mxu3 %vm1888_vm11, %v5248_v10 }
 0x1c1   :  { %3863 = vmatmul.msk.f32.gmra.mxu0 %vm1888_vm11, %v1835_v25  ;;  %v1807_v25 = vrot.slane %v5291_v56, 7 }
 0x1c2   :  { %3913 = vmatmul.msk.f32.gmra.mxu1 %vm1888_vm11, %v2402_v19 }
 0x1c6   :  { %v2211_v29 = vpop.f32.mrf.mxu0 }
 0x1c7   :  { %v2212_v6 = vadd.f32 %v2211_v29, %v5351_v23  ;;  %v1830_v29 = vsel %vm764_vm2, %v1806_v40, %v1807_v25 }
 0x1c8   :  { %v1871_v56 = vsel %vm6255_vm0, %v1830_v29, 0.0 }
 0x1c9   :  { %v2615_v3 = vadd.f32 %v5368_v11, %v2212_v6  ;;  %3864 = vmatmul.msk.f32.gmra.mxu0 %vm1888_vm11, %v1867_v36 }
 0x1cb   :  { %v2651_v0 = vadd.f32 %v5544_v51, %v2615_v3  ;;  %v2032_v3 = vpop.f32.mrf.mxu3 }
 0x1cd   :  { %v2683_v53 = vmax.f32 %v2651_v0, 0.0  ;;  %v1808_v0 = vrot.slane %v5308_v2, 7 }
 0x1ce   :  { %v2214_v8 = vpop.f32.mrf.mxu0 }
 0x1cf   :  { %v2215_v23 = vadd.f32 %v2214_v8, %v5372_v57  ;;  %3914 = vmatmul.msk.f32.vlgmr.msrb.gmra.mxu2 %vm1888_vm11, %v2683_v53  ;;  %v1828_v2 = vsel %vm764_vm2, %v1808_v0, %v1809_v60 }
 0x1d1   :  { %v2616_v48 = vadd.f32 %v5394_v39, %v2215_v23  ;;  %3865 = vmatmul.msk.f32.gmra.mxu0 %vm1888_vm11, %v1833_v49  ;;  %v2543_v39 = vpop.f32.mrf.mxu1 }
 0x1d3   :  { %v2652_v11 = vadd.f32 %v5544_v51, %v2616_v48  ;;  %v2035_v48 = vpop.f32.mrf.mxu3 }
 0x1d5   :  { %v2684_v28 = vmax.f32 %v2652_v11, 0.0 }
 0x1d6   :  { %v2217_v13 = vpop.f32.mrf.mxu0 }
 0x1d7   :  { %v2218_v57 = vadd.f32 %v2217_v13, %v5398_v24  ;;  %3915 = vmatmul.msk.f32.gmra.mxu2 %vm1888_vm11, %v2684_v28  ;;  %v1831_v24 = vsel %vm764_vm2, %v1805_v63, %v1806_v40 }
 0x1d9   :  { %v2617_v20 = vadd.f32 %v5415_v54, %v2218_v57  ;;  %3866 = vmatmul.msk.f32.gmra.mxu0 %vm1888_vm11, %v1869_v52  ;;  %v2546_v4 = vpop.f32.mrf.mxu1  ;;  %v1811_v52 = vrot.slane %v5360_v22, 7 }
 0x1db   :  { %v2653_v59 = vadd.f32 %v5544_v51, %v2617_v20  ;;  %v2038_v55 = vpop.f32.mrf.mxu3 }
 0x1dd   :  { %v2685_v43 = vmax.f32 %v2653_v59, 0.0  ;;  %v1826_v59 = vsel %vm764_vm2, %v1810_v16, %v1811_v52 }
 0x1de   :  { %v2220_v35 = vpop.f32.mrf.mxu0 }
 0x1df   :  { %v2221_v1 = vadd.f32 %v2220_v35, %v5424_v47  ;;  %3916 = vmatmul.msk.f32.gmra.mxu2 %vm1888_vm11, %v2685_v43  ;;  %v6257_v43 = vld [vmem:[#allocation5_spill] sm:$0xff] }
 0x1e0   :  { %vm6258_vm4 = vcmp.ge.s32.totalorder %v6257_v43, 0 }
 0x1e1   :  { %v2618_v54 = vadd.f32 %v5440_v18, %v2221_v1  ;;  %3867 = vmatmul.msk.f32.gmra.mxu0 %vm1888_vm11, %v1831_v24  ;;  %v2549_v53 = vpop.f32.mrf.mxu1  ;;  %v1812_v24 = vrot.slane %v5380_v15, 7 }
 0x1e3   :  { %v2654_v19 = vadd.f32 %v5544_v51, %v2618_v54  ;;  %v1825_v16 = vsel %vm764_vm2, %v1811_v52, %v1812_v24 }
 0x1e5   :  { %v2686_v44 = vmax.f32 %v2654_v19, 0.0 }
 0x1e6   :  { %v2223_v47 = vpop.f32.mrf.mxu0 }
 0x1e7   :  { %v2224_v6 = vadd.f32 %v2223_v47, %v5446_v34  ;;  %3917 = vmatmul.msk.f32.gmra.mxu2 %vm1888_vm11, %v2686_v44  ;;  %v1829_v34 = vsel %vm764_vm2, %v1807_v25, %v1808_v0 }
 0x1e9   :  { %v2619_v18 = vadd.f32 %v5475_v17, %v2224_v6  ;;  %3868 = vmatmul.msk.f32.gmra.mxu0 %vm1888_vm11, %v1871_v56  ;;  %v2552_v28 = vpop.f32.mrf.mxu1 }
 0x1eb   :  { %v2655_v36 = vadd.f32 %v5544_v51, %v2619_v18 }
 0x1ed   :  { %v2687_v61 = vmax.f32 %v2655_v36, 0.0 }
 0x1ee   :  { %v2226_v8 = vpop.f32.mrf.mxu0 }
 0x1ef   :  { %v2227_v23 = vadd.f32 %v2226_v8, %v5482_v26  ;;  %3918 = vmatmul.msk.f32.gmra.mxu2 %vm1888_vm11, %v2687_v61 }
 0x1f1   :  { %v2620_v49 = vadd.f32 %v5494_v5, %v2227_v23  ;;  %3869 = vmatmul.msk.f32.gmra.mxu0 %vm1888_vm11, %v1829_v34  ;;  %v1873_v5 = vsel %vm6256_vm3, %v1828_v2, 0.0  ;;  %v2555_v46 = vpop.f32.mrf.mxu1  ;;  %v1815_v34 = vrot.slane %v5432_v37, 7 }
 0x1f3   :  { %v2656_v17 = vadd.f32 %v5544_v51, %v2620_v49 }
 0x1f5   :  { %v2688_v63 = vmax.f32 %v2656_v17, 0.0 }
 0x1f6   :  { %v2229_v11 = vpop.f32.mrf.mxu0 }
 0x1f7   :  { %v2230_v26 = vadd.f32 %v2229_v11, %v5501_v9  ;;  %3919 = vmatmul.msk.f32.gmra.mxu2 %vm1888_vm11, %v2688_v63  ;;  %v6261_v11 = vld [vmem:[#allocation7_spill] sm:$0xff] }
 0x1f8   :  { %vm6262_vm7 = vcmp.ge.s32.totalorder %v6261_v11, 0 }
 0x1f9   :  { %v2621_v42 = vadd.f32 %v5514_v62, %v2230_v26  ;;  %3870 = vmatmul.msk.f32.gmra.mxu0 %vm1888_vm11, %v1873_v5  ;;  %v2558_v1 = vpop.f32.mrf.mxu1 }
 0x1fb   :  { %v2657_v13 = vadd.f32 %v5544_v51, %v2621_v42  ;;  %v1816_v42 = vrot.slane %v5466_v30, 7 }
 0x1fd   :  { %v2689_v12 = vmax.f32 %v2657_v13, 0.0 }
 0x1fe   :  { %v2232_v57 = vpop.f32.mrf.mxu0 }
 0x1ff   :  { %v2233_v60 = vadd.f32 %v2232_v57, %v5519_v27  ;;  %3920 = vmatmul.msk.f32.gmra.mxu2 %vm1888_vm11, %v2689_v12 }
 0x201   :  { %v2622_v9 = vadd.f32 %v5535_v21, %v2233_v60  ;;  %3871 = vmatmul.msk.f32.gmra.mxu0 %vm1888_vm11, %v5464_v45  ;;  %v1875_v21 = vsel %vm6258_vm4, %v1826_v59, 0.0  ;;  %v2041_v45 = vpop.f32.mrf.mxu3  ;;  %v2561_v47 = vpop.f32.mrf.mxu1  ;;  %v1821_v60 = vsel %vm764_vm2, %v1815_v34, %v1816_v42 }
 0x203   :  { %v2658_v62 = vadd.f32 %v5544_v51, %v2622_v9 }
 0x205   :  { %v2690_v20 = vmax.f32 %v2658_v62, 0.0 }
 0x206   :  { %v2235_v27 = vpop.f32.mrf.mxu0 }
 0x207   :  { %v2236_v40 = vadd.f32 %v2235_v27, %v2026_v32  ;;  %3921 = vmatmul.msk.f32.gmra.mxu2 %vm1888_vm11, %v2690_v20  ;;  %v1813_v32 = vrot.slane %v5392_v38, 7 }
 0x209   :  { %v2623_v35 = vadd.f32 %v2543_v39, %v2236_v40  ;;  %3872 = vmatmul.msk.f32.gmra.mxu0 %vm1888_vm11, %v1875_v21  ;;  %v2044_v44 = vpop.f32.mrf.mxu3  ;;  %v1824_v15 = vsel %vm764_vm2, %v1812_v24, %v1813_v32  ;;  %v2564_v23 = vpop.f32.mrf.mxu1  ;;  %v6263_v40 = vld [vmem:[#allocation9_spill] sm:$0xff] }
 0x20a   :  { %v1877_v56 = vsel %vm6260_vm6, %v1824_v15, 0.0  ;;  %vm6264_vm8 = vcmp.ge.s32.totalorder %v6263_v40, 0 }
 0x20b   :  { %v2659_v22 = vadd.f32 %v5544_v51, %v2623_v35 }
 0x20d   :  { %v2691_v50 = vmax.f32 %v2659_v22, 0.0 }
 0x20e   :  { %v2238_v25 = vpop.f32.mrf.mxu0 }
 0x20f   :  { %v2239_v54 = vadd.f32 %v2238_v25, %v2029_v14  ;;  %3922 = vmatmul.msk.f32.gmra.mxu2 %vm1888_vm11, %v2691_v50 }
 0x211   :  { %v2624_v19 = vadd.f32 %v2546_v4, %v2239_v54  ;;  %3873 = vmatmul.msk.f32.gmra.mxu0 %vm1888_vm11, %v1825_v16  ;;  %v1814_v4 = vrot.slane %v5418_v31, 7  ;;  %v2047_v0 = vpop.f32.mrf.mxu3  ;;  %v2567_v37 = vpop.f32.mrf.mxu1 }
 0x213   :  { %v2660_v39 = vadd.f32 %v5544_v51, %v2624_v19  ;;  %v1822_v31 = vsel %vm764_vm2, %v1814_v4, %v1815_v34 }
 0x214   :  { %v1879_v26 = vsel %vm6262_vm7, %v1822_v31, 0.0 }
 0x215   :  { %v2692_v29 = vmax.f32 %v2660_v39, 0.0 }
 0x216   :  { %v2241_v6 = vpop.f32.mrf.mxu0 }
 0x217   :  { %v2242_v14 = vadd.f32 %v2241_v6, %v2032_v3  ;;  %3923 = vmatmul.msk.f32.gmra.mxu2 %vm1888_vm11, %v2692_v29  ;;  %v1823_v3 = vsel %vm764_vm2, %v1813_v32, %v1814_v4 }
 0x219   :  { %v2625_v18 = vadd.f32 %v2549_v53, %v2242_v14  ;;  %3874 = vmatmul.msk.f32.gmra.mxu0 %vm1888_vm11, %v1877_v56  ;;  %v2570_v62 = vpop.f32.mrf.mxu1 }
 0x21b   :  { %v2661_v38 = vadd.f32 %v5544_v51, %v2625_v18 }
 0x21d   :  { %v2693_v36 = vmax.f32 %v2661_v38, 0.0 }
 0x21e   :  { %v2244_v61 = vpop.f32.mrf.mxu0 }
 0x21f   :  { %v2245_v8 = vadd.f32 %v2244_v61, %v2035_v48  ;;  %3924 = vmatmul.msk.f32.gmra.mxu2 %vm1888_vm11, %v2693_v36  ;;  %v2050_v48 = vpop.f32.mrf.mxu3 }
 0x221   :  { %v2626_v49 = vadd.f32 %v2552_v28, %v2245_v8  ;;  %3875 = vmatmul.msk.f32.gmra.mxu0 %vm1888_vm11, %v1823_v3  ;;  %v2573_v22 = vpop.f32.mrf.mxu1 }
 0x223   :  { %v2662_v53 = vadd.f32 %v5544_v51, %v2626_v49 }
 0x225   :  { %v2694_v17 = vmax.f32 %v2662_v53, 0.0 }
 0x226   :  { %v2247_v63 = vpop.f32.mrf.mxu0 }
 0x227   :  { %v2248_v2 = vadd.f32 %v2247_v63, %v2038_v55  ;;  %3925 = vmatmul.msk.f32.gmra.mxu2 %vm1888_vm11, %v2694_v17  ;;  %v1817_v55 = vrot.slane %v5480_v33, 7 }
 0x229   :  { %v2627_v5 = vadd.f32 %v2555_v46, %v2248_v2  ;;  %3876 = vmatmul.msk.f32.gmra.mxu0 %vm1888_vm11, %v1879_v26  ;;  %v2053_v46 = vpop.f32.mrf.mxu3  ;;  %v1820_v30 = vsel %vm764_vm2, %v1816_v42, %v1817_v55  ;;  %v1819_v50 = vsel %vm764_vm2, %v1817_v55, %v1818_v41 }
 0x22a   :  { %v1881_v43 = vsel %vm6264_vm8, %v1820_v30, 0.0 }
 0x22b   :  { %v2663_v28 = vadd.f32 %v5544_v51, %v2627_v5 }
 0x22d   :  { %v2695_v13 = vmax.f32 %v2663_v28, 0.0 }
 0x22e   :  { %v2250_v12 = vpop.f32.mrf.mxu0 }
 0x22f   :  { %v2251_v57 = vadd.f32 %v2250_v12, %v2041_v45  ;;  %3926 = vmatmul.msk.f32.gmra.mxu2 %vm1888_vm11, %v2695_v13 }
 0x231   :  { %v2628_v9 = vadd.f32 %v2558_v1, %v2251_v57  ;;  %3877 = vmatmul.msk.f32.gmra.mxu0 %vm1888_vm11, %v1821_v60  ;;  %v2056_v35 = vpop.f32.mrf.mxu3 }
 0x233   :  { %v2664_v52 = vadd.f32 %v5544_v51, %v2628_v9 }
 0x235   :  { %v2696_v20 = vmax.f32 %v2664_v52, 0.0 }
 0x236   :  { %v2253_v59 = vpop.f32.mrf.mxu0 }
 0x237   :  { %v2254_v27 = vadd.f32 %v2253_v59, %v2044_v44  ;;  %3927 = vmatmul.msk.f32.gmra.mxu2 %vm1888_vm11, %v2696_v20  ;;  %v2576_v44 = vpop.f32.mrf.mxu1 }
 0x239   :  { %v2629_v21 = vadd.f32 %v2561_v47, %v2254_v27  ;;  %3878 = vmatmul.msk.f32.gmra.mxu0 %vm1888_vm11, %v1881_v43  ;;  %v2059_v32 = vpop.f32.mrf.mxu3 }
 0x23b   :  { %v2665_v33 = vadd.f32 %v5544_v51, %v2629_v21 }
 0x23d   :  { %v2697_v45 = vmax.f32 %v2665_v33, 0.0 }
 0x23e   :  { %v2256_v1 = vpop.f32.mrf.mxu0 }
 0x23f   :  { %v2257_v24 = vadd.f32 %v2256_v1, %v2047_v0  ;;  %3928 = vmatmul.msk.f32.gmra.mxu2 %vm1888_vm11, %v2697_v45  ;;  %v2579_v58 = vpop.f32.mrf.mxu1 }
 0x241   :  { %v2630_v25 = vadd.f32 %v2564_v23, %v2257_v24  ;;  %3879 = vmatmul.msk.f32.gmra.mxu0 %vm1888_vm11, %v1819_v50  ;;  %v2062_v41 = vpop.f32.mrf.mxu3 }
 0x243   :  { %v2666_v54 = vadd.f32 %v5544_v51, %v2630_v25 }
 0x245   :  { %v2698_v16 = vmax.f32 %v2666_v54, 0.0 }
 0x246   :  { %v2259_v19 = vpop.f32.mrf.mxu0 }
 0x247   :  { %v2260_v39 = vadd.f32 %v2259_v19, %v2050_v48  ;;  %3929 = vmatmul.msk.f32.gmra.mxu2 %vm1888_vm11, %v2698_v16  ;;  %v2582_v49 = vpop.f32.mrf.mxu1 }
 0x249   :  { %v2631_v29 = vadd.f32 %v2567_v37, %v2260_v39  ;;  %v2065_v8 = vpop.f32.mrf.mxu3 }
 0x24b   :  { %v2667_v15 = vadd.f32 %v5544_v51, %v2631_v29 }
 0x24d   :  { %v2699_v47 = vmax.f32 %v2667_v15, 0.0 }
 0x24e   :  { %v2262_v10 = vpop.f32.mrf.mxu0 }
 0x24f   :  { %v2263_v6 = vadd.f32 %v2262_v10, %v2053_v46  ;;  %3930 = vmatmul.msk.f32.gmra.mxu2 %vm1888_vm11, %v2699_v47  ;;  %v2585_v37 = vpop.f32.mrf.mxu1 }
 0x251   :  { %v2632_v14 = vadd.f32 %v2570_v62, %v2263_v6  ;;  %v2068_v26 = vpop.f32.mrf.mxu3 }
 0x252   :  { %v2834_v56 = vpop.f32.mrf.mxu2 }
 0x253   :  { %v2668_v18 = vadd.f32 %v5544_v51, %v2632_v14  ;;  %v5681_v38 = vadd.f32 %v5677_v7, %v2834_v56 }
 0x255   :  { %v2700_v4 = vmax.f32 %v2668_v18, 0.0  ;;  %2930 = vmax.xlane.f32.xlu0 %v5681_v38 }
 0x256   :  { %v2265_v36 = vpop.f32.mrf.mxu0 }
 0x257   :  { %v2266_v0 = vadd.f32 %v2265_v36, %v2056_v35  ;;  %3931 = vmatmul.msk.f32.gmra.mxu2 %vm1888_vm11, %v2700_v4  ;;  %v2588_v62 = vpop.f32.mrf.mxu1 }
 0x259   :  { %v2633_v61 = vadd.f32 %v2573_v22, %v2266_v0  ;;  %v2071_v9 = vpop.f32.mrf.mxu3 }
 0x25a   :  { %v2837_v23 = vpop.f32.mrf.mxu2 }
 0x25b   :  { %v2669_v3 = vadd.f32 %v5544_v51, %v2633_v61  ;;  %v5687_v34 = vadd.f32 %v5677_v7, %v2837_v23 }
 0x25d   :  { %v2701_v53 = vmax.f32 %v2669_v3, 0.0  ;;  %2932 = vmax.xlane.f32.xlu0 %v5687_v34 }
 0x25e   :  { %v2268_v17 = vpop.f32.mrf.mxu0 }
 0x25f   :  { %v2269_v31 = vadd.f32 %v2268_v17, %v2059_v32  ;;  %3932 = vmatmul.msk.f32.gmra.mxu2 %vm1888_vm11, %v2701_v53  ;;  %v2591_v45 = vpop.f32.mrf.mxu1 }
 0x261   :  { %v2634_v63 = vadd.f32 %v2576_v44, %v2269_v31  ;;  %v2074_v33 = vpop.f32.mrf.mxu3 }
 0x262   :  { %v2840_v2 = vpop.f32.mrf.mxu2 }
 0x263   :  { %v2670_v48 = vadd.f32 %v5544_v51, %v2634_v63  ;;  %v5693_v11 = vadd.f32 %v5677_v7, %v2840_v2 }
 0x265   :  { %v2702_v5 = vmax.f32 %v2670_v48, 0.0  ;;  %2934 = vmax.xlane.f32.xlu1 %v5693_v11 }
 0x266   :  { %v2271_v28 = vpop.f32.mrf.mxu0 }
 0x267   :  { %v2272_v42 = vadd.f32 %v2271_v28, %v2062_v41  ;;  %3933 = vmatmul.msk.f32.gmra.mxu2 %vm1888_vm11, %v2702_v5  ;;  %v2594_v29 = vpop.f32.mrf.mxu1 }
 0x269   :  { %v2635_v13 = vadd.f32 %v2579_v58, %v2272_v42  ;;  %v2077_v32 = vpop.f32.mrf.mxu3 }
 0x26a   :  { %v2843_v12 = vpop.f32.mrf.mxu2 }
 0x26b   :  { %v2671_v57 = vadd.f32 %v5544_v51, %v2635_v13  ;;  %v5699_v60 = vadd.f32 %v5677_v7, %v2843_v12 }
 0x26d   :  { %v2703_v55 = vmax.f32 %v2671_v57, 0.0  ;;  %2936 = vmax.xlane.f32.xlu1 %v5699_v60 }
 0x26e   :  { %v2274_v46 = vpop.f32.mrf.mxu0 }
 0x26f   :  { %v2275_v52 = vadd.f32 %v2274_v46, %v2065_v8  ;;  %3934 = vmatmul.msk.f32.gmra.mxu2 %vm1888_vm11, %v2703_v55  ;;  %v2597_v4 = vpop.f32.mrf.mxu1 }
 0x271   :  { %v2636_v20 = vadd.f32 %v2582_v49, %v2275_v52  ;;  %v2080_v56 = vpop.f32.mrf.mxu3 }
 0x272   :  { %v2846_v30 = vpop.f32.mrf.mxu2 }
 0x273   :  { %v2672_v59 = vadd.f32 %v5544_v51, %v2636_v20  ;;  %v5705_v27 = vadd.f32 %v5677_v7, %v2846_v30 }
 0x275   :  { %v2704_v40 = vmax.f32 %v2672_v59, 0.0  ;;  %2938 = vmax.xlane.f32.xlu2 %v5705_v27 }
 0x276   :  { %v2277_v43 = vpop.f32.mrf.mxu0 }
 0x277   :  { %v2278_v21 = vadd.f32 %v2277_v43, %v2068_v26  ;;  %3935 = vmatmul.msk.f32.gmra.mxu2 %vm1888_vm11, %v2704_v40  ;;  %v2600_v63 = vpop.f32.mrf.mxu1 }
 0x279   :  { %v2637_v35 = vadd.f32 %v2585_v37, %v2278_v21  ;;  %v2083_v53 = vpop.f32.mrf.mxu3 }
 0x27a   :  { %v2849_v22 = vpop.f32.mrf.mxu2 }
 0x27b   :  { %v2673_v1 = vadd.f32 %v5544_v51, %v2637_v35  ;;  %v5711_v24 = vadd.f32 %v5677_v7, %v2849_v22 }
 0x27d   :  { %v2705_v50 = vmax.f32 %v2673_v1, 0.0  ;;  %2940 = vmax.xlane.f32.xlu2 %v5711_v24 }
 0x27e   :  { %v2280_v25 = vpop.f32.mrf.mxu0 }
 0x27f   :  { %v2281_v54 = vadd.f32 %v2280_v25, %v2071_v9  ;;  %3936 = vmatmul.msk.f32.gmra.mxu2 %vm1888_vm11, %v2705_v50  ;;  %v2603_v57 = vpop.f32.mrf.mxu1 }
 0x281   :  { %v2638_v16 = vadd.f32 %v2588_v62, %v2281_v54  ;;  %v2086_v13 = vpop.f32.mrf.mxu3 }
 0x282   :  { %v2852_v19 = vpop.f32.mrf.mxu2 }
 0x283   :  { %v2674_v39 = vadd.f32 %v5544_v51, %v2638_v16  ;;  %v5717_v44 = vadd.f32 %v5677_v7, %v2852_v19 }
 0x285   :  { %v2706_v15 = vmax.f32 %v2674_v39, 0.0  ;;  %2942 = vmax.xlane.f32.xlu0 %v5717_v44 }
 0x286   :  { %v2283_v47 = vpop.f32.mrf.mxu0 }
 0x287   :  { %v2284_v10 = vadd.f32 %v2283_v47, %v2074_v33  ;;  %3937 = vmatmul.msk.f32.gmra.mxu2 %vm1888_vm11, %v2706_v15  ;;  %v2606_v33 = vpop.f32.mrf.mxu1 }
 0x289   :  { %v2639_v6 = vadd.f32 %v2591_v45, %v2284_v10  ;;  %v2089_v59 = vpop.f32.mrf.mxu3 }
 0x28a   :  { %v2855_v41 = vpop.f32.mrf.mxu2 }
 0x28b   :  { %v2675_v14 = vadd.f32 %v5544_v51, %v2639_v6  ;;  %v5723_v58 = vadd.f32 %v5677_v7, %v2855_v41 }
 0x28d   :  { %v2707_v18 = vmax.f32 %v2675_v14, 0.0  ;;  %2944 = vmax.xlane.f32.xlu1 %v5723_v58 }
 0x28e   :  { %v2286_v36 = vpop.f32.mrf.mxu0 }
 0x28f   :  { %v2287_v0 = vadd.f32 %v2286_v36, %v2077_v32  ;;  %3938 = vmatmul.msk.f32.gmra.mxu2 %vm1888_vm11, %v2707_v18  ;;  %v2609_v19 = vpop.f32.mrf.mxu1 }
 0x291   :  { %v2640_v61 = vadd.f32 %v2594_v29, %v2287_v0  ;;  %v2092_v16 = vpop.f32.mrf.mxu3 }
 0x292   :  { %v2858_v8 = vpop.f32.mrf.mxu2 }
 0x293   :  { %v2676_v23 = vadd.f32 %v5544_v51, %v2640_v61  ;;  %v5729_v3 = vadd.f32 %v5677_v7, %v2858_v8 }
 0x295   :  { %v2708_v49 = vmax.f32 %v2676_v23, 0.0  ;;  %2946 = vmax.xlane.f32.xlu2 %v5729_v3 }
 0x296   :  { %v2289_v17 = vpop.f32.mrf.mxu0 }
 0x297   :  { %v2290_v31 = vadd.f32 %v2289_v17, %v2080_v56  ;;  %3939 = vmatmul.msk.f32.gmra.mxu2 %vm1888_vm11, %v2708_v49 }
 0x299   :  { %v2641_v2 = vadd.f32 %v2597_v4, %v2290_v31  ;;  %v2095_v14 = vpop.f32.mrf.mxu3  ;;  %v2612_v4 = vpop.f32.mrf.mxu1 }
 0x29a   :  { %v2861_v48 = vpop.f32.mrf.mxu2 }
 0x29b   :  { %v2677_v26 = vadd.f32 %v5544_v51, %v2641_v2  ;;  %v5735_v5 = vadd.f32 %v5677_v7, %v2861_v48 }
 0x29d   :  { %v2709_v37 = vmax.f32 %v2677_v26, 0.0  ;;  %2948 = vmax.xlane.f32.xlu0 %v5735_v5 }
 0x29e   :  { %v2292_v28 = vpop.f32.mrf.mxu0 }
 0x29f   :  { %v2293_v42 = vadd.f32 %v2292_v28, %v2083_v53  ;;  %3940 = vmatmul.msk.f32.gmra.mxu2 %vm1888_vm11, %v2709_v37 }
 0x2a1   :  { %v2642_v12 = vadd.f32 %v2600_v63, %v2293_v42 }
 0x2a2   :  { %v2864_v55 = vpop.f32.mrf.mxu2 }
 0x2a3   :  { %v2678_v9 = vadd.f32 %v5544_v51, %v2642_v12  ;;  %v5741_v46 = vadd.f32 %v5677_v7, %v2864_v55 }
 0x2a5   :  { %v2710_v52 = vmax.f32 %v2678_v9, 0.0  ;;  %2950 = vmax.xlane.f32.xlu1 %v5741_v46 }
 0x2a6   :  { %v2295_v62 = vpop.f32.mrf.mxu0 }
 0x2a7   :  { %v2296_v20 = vadd.f32 %v2295_v62, %v2086_v13  ;;  %3941 = vmatmul.msk.f32.gmra.mxu2 %vm1888_vm11, %v2710_v52 }
 0x2a9   :  { %v2643_v30 = vadd.f32 %v2603_v57, %v2296_v20 }
 0x2aa   :  { %v2867_v40 = vpop.f32.mrf.mxu2 }
 0x2ab   :  { %v2679_v43 = vadd.f32 %v5544_v51, %v2643_v30  ;;  %v5747_v21 = vadd.f32 %v5677_v7, %v2867_v40 }
 0x2ad   :  { %v2711_v35 = vmax.f32 %v2679_v43, 0.0  ;;  %2952 = vmax.xlane.f32.xlu2 %v5747_v21 }
 0x2ae   :  { %v2298_v45 = vpop.f32.mrf.mxu0 }
 0x2af   :  { %v2299_v22 = vadd.f32 %v2298_v45, %v2089_v59  ;;  %3942 = vmatmul.msk.f32.gmra.mxu2 %vm1888_vm11, %v2711_v35 }
 0x2b1   :  { %v2644_v1 = vadd.f32 %v2606_v33, %v2299_v22 }
 0x2b2   :  { %v2870_v50 = vpop.f32.mrf.mxu2 }
 0x2b3   :  { %v2680_v25 = vadd.f32 %v5544_v51, %v2644_v1  ;;  %v5753_v54 = vadd.f32 %v5677_v7, %v2870_v50 }
 0x2b5   :  { %v2712_v32 = vmax.f32 %v2680_v25, 0.0  ;;  %2954 = vmax.xlane.f32.xlu0 %v5753_v54 }
 0x2b6   :  { %v2301_v39 = vpop.f32.mrf.mxu0 }
 0x2b7   :  { %v2302_v29 = vadd.f32 %v2301_v39, %v2092_v16  ;;  %3943 = vmatmul.msk.f32.gmra.mxu2 %vm1888_vm11, %v2712_v32 }
 0x2b9   :  { %v2645_v15 = vadd.f32 %v2609_v19, %v2302_v29 }
 0x2ba   :  { %v2873_v47 = vpop.f32.mrf.mxu2 }
 0x2bb   :  { %v2681_v10 = vadd.f32 %v5544_v51, %v2645_v15  ;;  %v5759_v6 = vadd.f32 %v5677_v7, %v2873_v47 }
 0x2bd   :  { %v2713_v41 = vmax.f32 %v2681_v10, 0.0  ;;  %2956 = vmax.xlane.f32.xlu1 %v5759_v6 }
 0x2be   :  { %v2304_v56 = vpop.f32.mrf.mxu0 }
 0x2bf   :  { %v2305_v18 = vadd.f32 %v2304_v56, %v2095_v14  ;;  %3944 = vmatmul.msk.f32.gmra.mxu2 %vm1888_vm11, %v2713_v41 }
 0x2c1   :  { %v2646_v36 = vadd.f32 %v2612_v4, %v2305_v18 }
 0x2c2   :  { %v2876_v0 = vpop.f32.mrf.mxu2 }
 0x2c3   :  { %v2682_v61 = vadd.f32 %v5544_v51, %v2646_v36  ;;  %v5765_v8 = vadd.f32 %v5677_v7, %v2876_v0 }
 0x2c5   :  { %v2714_v23 = vmax.f32 %v2682_v61, 0.0  ;;  %2958 = vmax.xlane.f32.xlu2 %v5765_v8 }
 0x2c7   :  { %3945 = vmatmul.msk.f32.gmra.mxu2 %vm1888_vm11, %v2714_v23 }
 0x2c8   :  { %v2931_v49 = vpop.xlane.xlu0 %2930 }
 0x2c9   :  { %v2994_v53 = vsub.f32 %v5681_v38, %v2931_v49 }
 0x2ca   :  { %v2879_v17 = vpop.f32.mrf.mxu2 }
 0x2cb   :  { %v3026_v31 = vmul.f32 1.442695, %v2994_v53  ;;  %v5771_v63 = vadd.f32 %v5677_v7, %v2879_v17 }
 0x2cd   :  { %4050 = vpow2.f32 %v3026_v31  ;;  %2960 = vmax.xlane.f32.xlu0 %v5771_v63 }
 0x2d0   :  { %v2933_v51 = vpop.xlane.xlu0 %2932 }
 0x2d1   :  { %v2995_v2 = vsub.f32 %v5687_v34, %v2933_v51 }
 0x2d2   :  { %v2882_v48 = vpop.f32.mrf.mxu2 }
 0x2d3   :  { %v5775_v26 = vpop.eup %4050  ;;  %v3028_v37 = vmul.f32 1.442695, %v2995_v2  ;;  %v5778_v28 = vadd.f32 %v5677_v7, %v2882_v48 }
 0x2d4   :  { %3090 = vadd.xlane.f32.xlu2 %v5775_v26 }
 0x2d5   :  { %4052 = vpow2.f32 %v3028_v37  ;;  %2962 = vmax.xlane.f32.xlu1 %v5778_v28 }
 0x2d8   :  { %v2935_v38 = vpop.xlane.xlu1 %2934 }
 0x2d9   :  { %v2996_v42 = vsub.f32 %v5693_v11, %v2935_v38 }
 0x2da   :  { %v2885_v13 = vpop.f32.mrf.mxu2 }
 0x2db   :  { %v5783_v12 = vpop.eup %4052  ;;  %v3030_v57 = vmul.f32 1.442695, %v2996_v42  ;;  %v5786_v34 = vadd.f32 %v5677_v7, %v2885_v13 }
 0x2dc   :  { %3092 = vadd.xlane.f32.xlu0 %v5783_v12 }
 0x2dd   :  { %4054 = vpow2.f32 %v3030_v57  ;;  %2964 = vmax.xlane.f32.xlu2 %v5786_v34 }
 0x2e0   :  { %v2937_v55 = vpop.xlane.xlu1 %2936 }
 0x2e1   :  { %v2997_v9 = vsub.f32 %v5699_v60, %v2937_v55 }
 0x2e2   :  { %v2888_v52 = vpop.f32.mrf.mxu2 }
 0x2e3   :  { %v5791_v62 = vpop.eup %4054  ;;  %v3032_v20 = vmul.f32 1.442695, %v2997_v9  ;;  %v5794_v11 = vadd.f32 %v5677_v7, %v2888_v52 }
 0x2e4   :  { %3094 = vadd.xlane.f32.xlu1 %v5791_v62 }
 0x2e5   :  { %4056 = vpow2.f32 %v3032_v20  ;;  %2966 = vmax.xlane.f32.xlu0 %v5794_v11 }
 0x2e8   :  { %v2939_v30 = vpop.xlane.xlu2 %2938 }
 0x2e9   :  { %v2998_v59 = vsub.f32 %v5705_v27, %v2939_v30 }
 0x2ea   :  { %v2891_v40 = vpop.f32.mrf.mxu2 }
 0x2eb   :  { %v5799_v43 = vpop.eup %4056  ;;  %v3034_v33 = vmul.f32 1.442695, %v2998_v59  ;;  %v5802_v60 = vadd.f32 %v5677_v7, %v2891_v40 }
 0x2ec   :  { %3096 = vadd.xlane.f32.xlu2 %v5799_v43 }
 0x2ed   :  { %4058 = vpow2.f32 %v3034_v33  ;;  %2968 = vmax.xlane.f32.xlu1 %v5802_v60 }
 0x2f0   :  { %v2941_v35 = vpop.xlane.xlu2 %2940 }
 0x2f1   :  { %v2999_v45 = vsub.f32 %v5711_v24, %v2941_v35 }
 0x2f2   :  { %v2894_v22 = vpop.f32.mrf.mxu2 }
 0x2f3   :  { %v5807_v1 = vpop.eup %4058  ;;  %v3036_v50 = vmul.f32 1.442695, %v2999_v45  ;;  %v5810_v27 = vadd.f32 %v5677_v7, %v2894_v22 }
 0x2f4   :  { %3098 = vadd.xlane.f32.xlu0 %v5807_v1 }
 0x2f5   :  { %4060 = vpow2.f32 %v3036_v50  ;;  %2970 = vmax.xlane.f32.xlu2 %v5810_v27 }
 0x2f8   :  { %v2943_v25 = vpop.xlane.xlu0 %2942 }
 0x2f9   :  { %v3000_v16 = vsub.f32 %v5717_v44, %v2943_v25 }
 0x2fa   :  { %v2897_v32 = vpop.f32.mrf.mxu2 }
 0x2fb   :  { %v5815_v19 = vpop.eup %4060  ;;  %v3038_v39 = vmul.f32 1.442695, %v3000_v16  ;;  %v5818_v24 = vadd.f32 %v5677_v7, %v2897_v32 }
 0x2fc   :  { %3100 = vadd.xlane.f32.xlu1 %v5815_v19 }
 0x2fd   :  { %4062 = vpow2.f32 %v3038_v39  ;;  %2972 = vmax.xlane.f32.xlu0 %v5818_v24 }
 0x300   :  { %v2945_v29 = vpop.xlane.xlu1 %2944 }
 0x301   :  { %v3001_v15 = vsub.f32 %v5723_v58, %v2945_v29 }
 0x302   :  { %v2900_v47 = vpop.f32.mrf.mxu2 }
 0x303   :  { %v5823_v10 = vpop.eup %4062  ;;  %v3040_v41 = vmul.f32 1.442695, %v3001_v15  ;;  %v5826_v44 = vadd.f32 %v5677_v7, %v2900_v47 }
 0x304   :  { %3102 = vadd.xlane.f32.xlu2 %v5823_v10 }
 0x305   :  { %4064 = vpow2.f32 %v3040_v41  ;;  %2974 = vmax.xlane.f32.xlu1 %v5826_v44 }
 0x308   :  { %v2947_v14 = vpop.xlane.xlu2 %2946 }
 0x309   :  { %v3002_v56 = vsub.f32 %v5729_v3, %v2947_v14 }
 0x30a   :  { %v2903_v18 = vpop.f32.mrf.mxu2 }
 0x30b   :  { %v5831_v4 = vpop.eup %4064  ;;  %v3042_v36 = vmul.f32 1.442695, %v3002_v56  ;;  %v5834_v58 = vadd.f32 %v5677_v7, %v2903_v18 }
 0x30c   :  { %3104 = vadd.xlane.f32.xlu0 %v5831_v4 }
 0x30d   :  { %4066 = vpow2.f32 %v3042_v36  ;;  %2976 = vmax.xlane.f32.xlu2 %v5834_v58 }
 0x310   :  { %v2949_v0 = vpop.xlane.xlu0 %2948 }
 0x311   :  { %v3003_v61 = vsub.f32 %v5735_v5, %v2949_v0 }
 0x312   :  { %v2906_v23 = vpop.f32.mrf.mxu2 }
 0x313   :  { %v5839_v49 = vpop.eup %4066  ;;  %v3044_v53 = vmul.f32 1.442695, %v3003_v61  ;;  %v5842_v3 = vadd.f32 %v5677_v7, %v2906_v23 }
 0x314   :  { %3106 = vadd.xlane.f32.xlu1 %v5839_v49 }
 0x315   :  { %4068 = vpow2.f32 %v3044_v53  ;;  %2978 = vmax.xlane.f32.xlu0 %v5842_v3 }
 0x318   :  { %v2951_v17 = vpop.xlane.xlu1 %2950 }
 0x319   :  { %v3004_v31 = vsub.f32 %v5741_v46, %v2951_v17 }
 0x31a   :  { %v2909_v51 = vpop.f32.mrf.mxu2 }
 0x31b   :  { %v5847_v2 = vpop.eup %4068  ;;  %v3046_v48 = vmul.f32 1.442695, %v3004_v31  ;;  %v5850_v5 = vadd.f32 %v5677_v7, %v2909_v51 }
 0x31c   :  { %3108 = vadd.xlane.f32.xlu2 %v5847_v2 }
 0x31d   :  { %4070 = vpow2.f32 %v3046_v48  ;;  %2980 = vmax.xlane.f32.xlu1 %v5850_v5 }
 0x320   :  { %v2953_v20 = vpop.xlane.xlu2 %2952 }
 0x321   :  { %v3005_v29 = vsub.f32 %v5747_v21, %v2953_v20 }
 0x322   :  { %v2912_v37 = vpop.f32.mrf.mxu2 }
 0x323   :  { %v5854_v38 = vpop.eup %4070  ;;  %v5857_v42 = vadd.f32 %v5677_v7, %v2912_v37  ;;  %v3048_v47 = vmul.f32 1.442695, %v3005_v29 }
 0x324   :  { %3110 = vadd.xlane.f32.xlu0 %v5854_v38 }
 0x325   :  { %2982 = vmax.xlane.f32.xlu2 %v5857_v42 }
 0x328   :  { %v2955_v55 = vpop.xlane.xlu0 %2954 }
 0x329   :  { %v3006_v52 = vsub.f32 %v5753_v54, %v2955_v55 }
 0x32a   :  { %v2915_v46 = vpop.f32.mrf.mxu2 }
 0x32b   :  { %v5862_v13 = vadd.f32 %v5677_v7, %v2915_v46  ;;  %v3050_v30 = vmul.f32 1.442695, %v3006_v52 }
 0x32d   :  { %2984 = vmax.xlane.f32.xlu0 %v5862_v13  ;;  %4072 = vpow2.f32 %v3050_v30 }
 0x330   :  { %v2957_v33 = vpop.xlane.xlu1 %2956 }
 0x331   :  { %v3007_v35 = vsub.f32 %v5759_v6, %v2957_v33 }
 0x332   :  { %v2918_v57 = vpop.f32.mrf.mxu2 }
 0x333   :  { %v5866_v9 = vadd.f32 %v5677_v7, %v2918_v57  ;;  %v3052_v16 = vmul.f32 1.442695, %v3007_v35  ;;  %v5879_v39 = vpop.eup %4072 }
 0x335   :  { %2986 = vmax.xlane.f32.xlu1 %v5866_v9 }
 0x338   :  { %v2959_v45 = vpop.xlane.xlu2 %2958 }
 0x339   :  { %v3008_v0 = vsub.f32 %v5765_v8, %v2959_v45 }
 0x33a   :  { %v2921_v59 = vpop.f32.mrf.mxu2 }
 0x33b   :  { %v5871_v40 = vadd.f32 %v5677_v7, %v2921_v59  ;;  %v3054_v53 = vmul.f32 1.442695, %v3008_v0 }
 0x33d   :  { %2988 = vmax.xlane.f32.xlu2 %v5871_v40 }
 0x340   :  { %v2961_v22 = vpop.xlane.xlu0 %2960 }
 0x341   :  { %v3009_v50 = vsub.f32 %v5771_v63, %v2961_v22 }
 0x342   :  { %v2924_v25 = vpop.f32.mrf.mxu2 }
 0x343   :  { %v3056_v32 = vmul.f32 1.442695, %v3009_v50  ;;  %v5877_v54 = vadd.f32 %v5677_v7, %v2924_v25 }
 0x345   :  { %4074 = vpow2.f32 %v3056_v32  ;;  %3114 = vadd.xlane.f32.xlu2 %v5879_v39  ;;  %2990 = vmax.xlane.f32.xlu0 %v5877_v54 }
 0x346   :  { %4076 = vpow2.f32 %v3052_v16 }
 0x347   :  { %v3091_v6 = vpop.xlane.xlu2 %3090 }
 0x348   :  { %4078 = vrcp.f32 %v3091_v6  ;;  %v2963_v15 = vpop.xlane.xlu1 %2962  ;;  %v3165_v55 = vand.u32 2147483648, %v3091_v6  ;;  %vm3159_vm11 = vweird.f32 %v3091_v6  ;;  %v3163_v20 = vand.u32 2147483647, %v3091_v6 }
 0x349   :  { %v3010_v63 = vsub.f32 %v5778_v28, %v2963_v15 }
 0x34a   :  { %v2927_v41 = vpop.f32.mrf.mxu2  ;;  %v3166_v32 = vor.u32 1.1754944e-38, %v3165_v55  ;;  %vm3164_vm12 = vcmp.eq.f32.partialorder %v3163_v20, 8.507059e+37 }
 0x34b   :  { %v5885_v14 = vpop.eup %4074  ;;  %v3058_v56 = vmul.f32 1.442695, %v3010_v63  ;;  %v5888_v18 = vadd.f32 %v5677_v7, %v2927_v41 }
 0x34c   :  { %v5890_v36 = vpop.eup %4076 }
 0x34d   :  { %4080 = vpow2.f32 %v3058_v56  ;;  %2992 = vmax.xlane.f32.xlu1 %v5888_v18  ;;  %3120 = vadd.xlane.f32.xlu2 %v5885_v14 }
 0x34e   :  { %v4079_v21 = vpop.eup %4078  ;;  %4082 = vpow2.f32 %v3048_v47  ;;  %3116 = vadd.xlane.f32.xlu0 %v5890_v36 }
 0x34f   :  { %v3155_v28 = vmul.f32 %v4079_v21, %v3091_v6  ;;  %v3093_v61 = vpop.xlane.xlu0 %3092  ;;  %vm3160_vm2 = vweird.f32 %v4079_v21 }
 0x350   :  { %4084 = vrcp.f32 %v3093_v61  ;;  %v2965_v31 = vpop.xlane.xlu2 %2964  ;;  %vm5907_vm5 = vmor %vm3159_vm11, %vm3160_vm2  ;;  %v3180_v35 = vand.u32 2147483648, %v3093_v61  ;;  %vm3174_vm13 = vweird.f32 %v3093_v61 }
 0x351   :  { %v3156_v23 = vsub.f32 1.0, %v3155_v28  ;;  %4086 = vpow2.f32 %v3054_v53  ;;  %v3011_v37 = vsub.f32 %v5786_v34, %v2965_v31  ;;  %v3178_v34 = vand.u32 2147483647, %v3093_v61 }
 0x352   :  { %v3181_v15 = vor.u32 1.1754944e-38, %v3180_v35 }
 0x353   :  { %v5896_v7 = vpop.eup %4080  ;;  %v3157_v17 = vmul.f32 %v4079_v21, %v3156_v23  ;;  %v3060_v45 = vmul.f32 1.442695, %v3011_v37  ;;  %vm3179_vm15 = vcmp.eq.f32.partialorder %v3178_v34, 8.507059e+37 }
 0x354   :  { %v5898_v51 = vpop.eup %4082 }
 0x355   :  { %3112 = vadd.xlane.f32.xlu1 %v5898_v51  ;;  %v3158_v8 = vadd.f32 %v4079_v21, %v3157_v17 }
 0x356   :  { %v4085_v48 = vpop.eup %4084  ;;  %3122 = vadd.xlane.f32.xlu0 %v5896_v7 }
 0x357   :  { %v3170_v46 = vmul.f32 %v4085_v48, %v3093_v61  ;;  %v5903_v57 = vpop.xlane.xlu1 %3094  ;;  %v3162_v22 = vsel %vm5907_vm5, %v4079_v21, %v3158_v8  ;;  %vm3175_vm10 = vweird.f32 %v4085_v48  ;;  %v5913_v16 = vpop.eup %4086 }
 0x358   :  { %4088 = vrcp.f32 %v5903_v57  ;;  %v2967_v52 = vpop.xlane.xlu0 %2966  ;;  %v3167_v6 = vsel %vm3164_vm12, %v3166_v32, %v3162_v22  ;;  %vm3176_vm14 = vmor %vm3174_vm13, %vm3175_vm10  ;;  %vm3189_vm9 = vweird.f32 %v5903_v57 }
 0x359   :  { %v3171_v30 = vsub.f32 1.0, %v3170_v46  ;;  %v3012_v59 = vsub.f32 %v5794_v11, %v2967_v52  ;;  %v3168_v0 = vmul.f32 %v5775_v26, %v3167_v6  ;;  %v3193_v52 = vand.u32 2147483647, %v5903_v57 }
 0x35b   :  { %v3172_v50 = vmul.f32 %v4085_v48, %v3171_v30  ;;  %v3062_v25 = vmul.f32 1.442695, %v3012_v59  ;;  %vm3194_vm4 = vcmp.eq.f32.partialorder %v3193_v52, 8.507059e+37 }
 0x35d   :  { %v3173_v29 = vadd.f32 %v4085_v48, %v3172_v50  ;;  %4090 = vpow2.f32 %v3062_v25  ;;  %3118 = vadd.xlane.f32.xlu1 %v5913_v16 }
 0x35e   :  { %v4089_v11 = vpop.eup %4088  ;;  %4092 = vpow2.f32 %v3060_v45 }
 0x35f   :  { %v3177_v63 = vsel %vm3176_vm14, %v4085_v48, %v3173_v29  ;;  %v3185_v47 = vmul.f32 %v4089_v11, %v5903_v57  ;;  %v3097_v41 = vpop.xlane.xlu2 %3096  ;;  %vm3190_vm1 = vweird.f32 %v4089_v11 }
 0x360   :  { %v3182_v56 = vsel %vm3179_vm15, %v3181_v15, %v3177_v63  ;;  %4094 = vrcp.f32 %v3097_v41  ;;  %v2969_v21 = vpop.xlane.xlu1 %2968  ;;  %vm5933_vm0 = vmor %vm3189_vm9, %vm3190_vm1  ;;  %v3208_v33 = vand.u32 2147483647, %v3097_v41  ;;  %v3210_v34 = vand.u32 2147483648, %v3097_v41 }
 0x361   :  { %v3183_v28 = vmul.f32 %v5783_v12, %v3182_v56  ;;  %v3186_v61 = vsub.f32 1.0, %v3185_v47  ;;  %v3013_v23 = vsub.f32 %v5802_v60, %v2969_v21  ;;  %v3195_v60 = vand.u32 2147483648, %v5903_v57 }
 0x362   :  { %vm3204_vm6 = vweird.f32 %v3097_v41  ;;  %v3211_v29 = vor.u32 1.1754944e-38, %v3210_v34  ;;  %vm3209_vm8 = vcmp.eq.f32.partialorder %v3208_v33, 8.507059e+37 }
 0x363   :  { %v5920_v53 = vpop.eup %4090  ;;  %v3949_v17 = vpack.c.bf16 %v3183_v28, %v3168_v0  ;;  %v3187_v31 = vmul.f32 %v4089_v11, %v3186_v61  ;;  %v3064_v37 = vmul.f32 1.442695, %v3013_v23  ;;  %v3196_v25 = vor.u32 1.1754944e-38, %v3195_v60 }
 0x364   :  { %v5922_v48 = vpop.eup %4092  ;;  %3126 = vadd.xlane.f32.xlu2 %v5920_v53 }
 0x365   :  { %3950 = vst [vmem:[#allocation2] sm:$0xff] %v3949_v17   ;;  %4096 = vpow2.f32 %v3064_v37  ;;  %3124 = vadd.xlane.f32.xlu1 %v5922_v48  ;;  %v3188_v26 = vadd.f32 %v4089_v11, %v3187_v31 }
 0x366   :  { %v4095_v8 = vpop.eup %4094 }
 0x367   :  { %v3200_v12 = vmul.f32 %v4095_v8, %v3097_v41  ;;  %v5926_v46 = vpop.xlane.xlu0 %3098  ;;  %v3192_v45 = vsel %vm5933_vm0, %v4089_v11, %v3188_v26  ;;  %vm3205_vm3 = vweird.f32 %v4095_v8 }
 0x368   :  { %4098 = vrcp.f32 %v5926_v46  ;;  %v2971_v55 = vpop.xlane.xlu2 %2970  ;;  %v3197_v32 = vsel %vm3194_vm4, %v3196_v25, %v3192_v45  ;;  %vm3206_vm7 = vmor %vm3204_vm6, %vm3205_vm3  ;;  %vm3219_vm11 = vweird.f32 %v5926_v46 }
 0x369   :  { %v3201_v20 = vsub.f32 1.0, %v3200_v12  ;;  %v3014_v30 = vsub.f32 %v5810_v27, %v2971_v55  ;;  %v3198_v56 = vmul.f32 %v5791_v62, %v3197_v32  ;;  %v3225_v62 = vand.u32 2147483648, %v5926_v46 }
 0x36b   :  { %v5937_v35 = vpop.eup %4096  ;;  %v3202_v22 = vmul.f32 %v4095_v8, %v3201_v20  ;;  %v3066_v50 = vmul.f32 1.442695, %v3014_v30  ;;  %v3226_v45 = vor.u32 1.1754944e-38, %v3225_v62 }
 0x36c   :  { %3128 = vadd.xlane.f32.xlu0 %v5937_v35 }
 0x36d   :  { %v3203_v57 = vadd.f32 %v4095_v8, %v3202_v22  ;;  %4100 = vpow2.f32 %v3066_v50 }
 0x36e   :  { %v4099_v27 = vpop.eup %4098 }
 0x36f   :  { %v3207_v6 = vsel %vm3206_vm7, %v4095_v8, %v3203_v57  ;;  %v3215_v15 = vmul.f32 %v4099_v27, %v5926_v46  ;;  %v3101_v63 = vpop.xlane.xlu1 %3100  ;;  %vm3220_vm2 = vweird.f32 %v4099_v27 }
 0x370   :  { %v3212_v11 = vsel %vm3209_vm8, %v3211_v29, %v3207_v6  ;;  %4102 = vrcp.f32 %v3101_v63  ;;  %v2973_v47 = vpop.xlane.xlu0 %2972  ;;  %vm5956_vm5 = vmor %vm3219_vm11, %vm3220_vm2  ;;  %v3238_v52 = vand.u32 2147483647, %v3101_v63  ;;  %v3240_v20 = vand.u32 2147483648, %v3101_v63 }
 0x371   :  { %v3213_v21 = vmul.f32 %v5799_v43, %v3212_v11  ;;  %v3216_v0 = vsub.f32 1.0, %v3215_v15  ;;  %v3015_v41 = vsub.f32 %v5818_v24, %v2973_v47  ;;  %v3223_v24 = vand.u32 2147483647, %v5926_v46 }
 0x372   :  { %vm3234_vm13 = vweird.f32 %v3101_v63  ;;  %v3241_v50 = vor.u32 1.1754944e-38, %v3240_v20  ;;  %vm3239_vm15 = vcmp.eq.f32.partialorder %v3238_v52, 8.507059e+37 }
 0x373   :  { %v5946_v28 = vpop.eup %4100  ;;  %v3954_v61 = vpack.c.bf16 %v3213_v21, %v3198_v56  ;;  %v3217_v23 = vmul.f32 %v4099_v27, %v3216_v0  ;;  %v3068_v17 = vmul.f32 1.442695, %v3015_v41  ;;  %vm3224_vm12 = vcmp.eq.f32.partialorder %v3223_v24, 8.507059e+37 }
 0x374   :  { %3130 = vadd.xlane.f32.xlu1 %v5946_v28 }
 0x375   :  { %4026 = vst [vmem:[#allocation2 + $0x8] sm:$0xff] %v3954_v61   ;;  %4104 = vpow2.f32 %v3068_v17  ;;  %v3218_v37 = vadd.f32 %v4099_v27, %v3217_v23 }
 0x376   :  { %v4103_v31 = vpop.eup %4102 }
 0x377   :  { %v3230_v8 = vmul.f32 %v4103_v31, %v3101_v63  ;;  %v5949_v26 = vpop.xlane.xlu2 %3102  ;;  %v3222_v59 = vsel %vm5956_vm5, %v4099_v27, %v3218_v37  ;;  %vm3235_vm10 = vweird.f32 %v4103_v31 }
 0x378   :  { %4106 = vrcp.f32 %v5949_v26  ;;  %v2975_v43 = vpop.xlane.xlu1 %2974  ;;  %v3227_v22 = vsel %vm3224_vm12, %v3226_v45, %v3222_v59  ;;  %vm3236_vm14 = vmor %vm3234_vm13, %vm3235_vm10  ;;  %vm3249_vm9 = vweird.f32 %v5949_v26 }
 0x379   :  { %v3231_v12 = vsub.f32 1.0, %v3230_v8  ;;  %v3016_v60 = vsub.f32 %v5826_v44, %v2975_v43  ;;  %v3228_v6 = vmul.f32 %v5807_v1, %v3227_v22  ;;  %v3255_v1 = vand.u32 2147483648, %v5949_v26 }
 0x37b   :  { %v5960_v30 = vpop.eup %4104  ;;  %v3232_v33 = vmul.f32 %v4103_v31, %v3231_v12  ;;  %v3070_v34 = vmul.f32 1.442695, %v3016_v60  ;;  %v3256_v52 = vor.u32 1.1754944e-38, %v3255_v1 }
 0x37c   :  { %3132 = vadd.xlane.f32.xlu2 %v5960_v30 }
 0x37d   :  { %v3233_v46 = vadd.f32 %v4103_v31, %v3232_v33  ;;  %4108 = vpow2.f32 %v3070_v34 }
 0x37e   :  { %v4107_v44 = vpop.eup %4106 }
 0x37f   :  { %v3237_v25 = vsel %vm3236_vm14, %v4103_v31, %v3233_v46  ;;  %v3245_v57 = vmul.f32 %v4107_v44, %v5949_v26  ;;  %v3105_v32 = vpop.xlane.xlu0 %3104  ;;  %vm3250_vm1 = vweird.f32 %v4107_v44 }
 0x380   :  { %v3242_v27 = vsel %vm3239_vm15, %v3241_v50, %v3237_v25  ;;  %4110 = vrcp.f32 %v3105_v32  ;;  %v2977_v29 = vpop.xlane.xlu2 %2976  ;;  %vm5979_vm0 = vmor %vm3249_vm9, %vm3250_vm1  ;;  %v3268_v62 = vand.u32 2147483647, %v3105_v32  ;;  %v3270_v43 = vand.u32 2147483648, %v3105_v32 }
 0x381   :  { %v3243_v15 = vmul.f32 %v5815_v19, %v3242_v27  ;;  %v3246_v11 = vsub.f32 1.0, %v3245_v57  ;;  %v3017_v63 = vsub.f32 %v5834_v58, %v2977_v29  ;;  %v3253_v58 = vand.u32 2147483647, %v5949_v26 }
 0x382   :  { %vm3264_vm6 = vweird.f32 %v3105_v32  ;;  %v3271_v59 = vor.u32 1.1754944e-38, %v3270_v43  ;;  %vm3269_vm8 = vcmp.eq.f32.partialorder %v3268_v62, 8.507059e+37 }
 0x383   :  { %v5969_v47 = vpop.eup %4108  ;;  %v3959_v56 = vpack.c.bf16 %v3243_v15, %v3228_v6  ;;  %v3247_v21 = vmul.f32 %v4107_v44, %v3246_v11  ;;  %v3072_v0 = vmul.f32 1.442695, %v3017_v63  ;;  %vm3254_vm4 = vcmp.eq.f32.partialorder %v3253_v58, 8.507059e+37 }
 0x384   :  { %3134 = vadd.xlane.f32.xlu0 %v5969_v47 }
 0x385   :  { %4027 = vst [vmem:[#allocation2 + $0x10] sm:$0xff] %v3959_v56   ;;  %4112 = vpow2.f32 %v3072_v0  ;;  %v3248_v61 = vadd.f32 %v4107_v44, %v3247_v21 }
 0x386   :  { %v4111_v41 = vpop.eup %4110 }
 0x387   :  { %v3260_v23 = vmul.f32 %v4111_v41, %v3105_v32  ;;  %v5972_v17 = vpop.xlane.xlu1 %3106  ;;  %v3252_v12 = vsel %vm5979_vm0, %v4107_v44, %v3248_v61  ;;  %vm3265_vm3 = vweird.f32 %v4111_v41 }
 0x388   :  { %4114 = vrcp.f32 %v5972_v17  ;;  %v2979_v19 = vpop.xlane.xlu0 %2978  ;;  %v3257_v20 = vsel %vm3254_vm4, %v3256_v52, %v3252_v12  ;;  %vm3266_vm7 = vmor %vm3264_vm6, %vm3265_vm3  ;;  %vm3279_vm11 = vweird.f32 %v5972_v17 }
 0x389   :  { %v3261_v31 = vsub.f32 1.0, %v3260_v23  ;;  %v3018_v37 = vsub.f32 %v5842_v3, %v2979_v19  ;;  %v3258_v22 = vmul.f32 %v5823_v10, %v3257_v20  ;;  %v3285_v10 = vand.u32 2147483648, %v5972_v17 }
 0x38b   :  { %v5983_v24 = vpop.eup %4112  ;;  %v3262_v60 = vmul.f32 %v4111_v41, %v3261_v31  ;;  %v3074_v55 = vmul.f32 1.442695, %v3018_v37  ;;  %v3286_v31 = vor.u32 1.1754944e-38, %v3285_v10 }
 0x38c   :  { %3136 = vadd.xlane.f32.xlu1 %v5983_v24 }
 0x38d   :  { %v3263_v26 = vadd.f32 %v4111_v41, %v3262_v60  ;;  %4116 = vpow2.f32 %v3074_v55 }
 0x38e   :  { %v4115_v3 = vpop.eup %4114 }
 0x38f   :  { %v3267_v33 = vsel %vm3266_vm7, %v4111_v41, %v3263_v26  ;;  %v3275_v34 = vmul.f32 %v4115_v3, %v5972_v17  ;;  %v3109_v45 = vpop.xlane.xlu2 %3108  ;;  %vm3280_vm2 = vweird.f32 %v4115_v3 }
 0x390   :  { %v3272_v46 = vsel %vm3269_vm8, %v3271_v59, %v3267_v33  ;;  %4118 = vrcp.f32 %v3109_v45  ;;  %v2981_v44 = vpop.xlane.xlu1 %2980  ;;  %vm3281_vm5 = vmor %vm3279_vm11, %vm3280_vm2  ;;  %v3298_v41 = vand.u32 2147483647, %v3109_v45  ;;  %v3300_v61 = vand.u32 2147483648, %v3109_v45 }
 0x391   :  { %v3273_v50 = vmul.f32 %v5831_v4, %v3272_v46  ;;  %v3276_v25 = vsub.f32 1.0, %v3275_v34  ;;  %v3019_v57 = vsub.f32 %v5850_v5, %v2981_v44  ;;  %v3283_v5 = vand.u32 2147483647, %v5972_v17 }
 0x392   :  { %vm3294_vm13 = vweird.f32 %v3109_v45  ;;  %v3301_v8 = vor.u32 1.1754944e-38, %v3300_v61  ;;  %vm3299_vm15 = vcmp.eq.f32.partialorder %v3298_v41, 8.507059e+37 }
 0x393   :  { %v5992_v32 = vpop.eup %4116  ;;  %v3964_v27 = vpack.c.bf16 %v3273_v50, %v3258_v22  ;;  %v3277_v29 = vmul.f32 %v4115_v3, %v3276_v25  ;;  %v3076_v6 = vmul.f32 1.442695, %v3019_v57  ;;  %vm3284_vm12 = vcmp.eq.f32.partialorder %v3283_v5, 8.507059e+37 }
 0x394   :  { %3138 = vadd.xlane.f32.xlu2 %v5992_v32 }
 0x395   :  { %4028 = vst [vmem:[#allocation2 + $0x18] sm:$0xff] %v3964_v27   ;;  %4120 = vpow2.f32 %v3076_v6  ;;  %v3278_v11 = vadd.f32 %v4115_v3, %v3277_v29 }
 0x396   :  { %v4119_v15 = vpop.eup %4118 }
 0x397   :  { %v3290_v63 = vmul.f32 %v4119_v15, %v3109_v45  ;;  %v5995_v56 = vpop.xlane.xlu0 %3110  ;;  %v3282_v1 = vsel %vm3281_vm5, %v4115_v3, %v3278_v11  ;;  %vm3295_vm10 = vweird.f32 %v4119_v15 }
 0x398   :  { %v2983_v4 = vpop.xlane.xlu2 %2982  ;;  %v3287_v17 = vsel %vm3284_vm12, %v3286_v31, %v3282_v1  ;;  %vm3296_vm14 = vmor %vm3294_vm13, %vm3295_vm10  ;;  %vm3309_vm4 = vweird.f32 %v5995_v56 }
 0x399   :  { %v3291_v21 = vsub.f32 1.0, %v3290_v63  ;;  %v3020_v0 = vsub.f32 %v5857_v42, %v2983_v4  ;;  %v3288_v12 = vmul.f32 %v5839_v49, %v3287_v17 }
 0x39b   :  { %v6001_v23 = vpop.eup %4120  ;;  %v3292_v19 = vmul.f32 %v4119_v15, %v3291_v21  ;;  %v3078_v58 = vmul.f32 1.442695, %v3020_v0 }
 0x39c   :  { %3140 = vadd.xlane.f32.xlu0 %v6001_v23 }
 0x39d   :  { %v3293_v37 = vadd.f32 %v4119_v15, %v3292_v19  ;;  %4122 = vpow2.f32 %v3078_v58 }
 0x39f   :  { %v3297_v42 = vsel %vm3296_vm14, %v4119_v15, %v3293_v37 }
 0x3a0   :  { %v3302_v62 = vsel %vm3299_vm15, %v3301_v8, %v3297_v42  ;;  %v2985_v43 = vpop.xlane.xlu0 %2984 }
 0x3a1   :  { %v3303_v60 = vmul.f32 %v5847_v2, %v3302_v62  ;;  %v3021_v55 = vsub.f32 %v5862_v13, %v2985_v43 }
 0x3a3   :  { %v6007_v52 = vpop.eup %4122  ;;  %v3969_v26 = vpack.c.bf16 %v3303_v60, %v3288_v12  ;;  %v3080_v3 = vmul.f32 1.442695, %v3021_v55 }
 0x3a4   :  { %3142 = vadd.xlane.f32.xlu1 %v6007_v52 }
 0x3a5   :  { %4029 = vst [vmem:[#allocation2 + $0x20] sm:$0xff] %v3969_v26   ;;  %4124 = vpow2.f32 %v3080_v3 }
 0x3a8   :  { %v2987_v20 = vpop.xlane.xlu1 %2986 }
 0x3a9   :  { %v3022_v59 = vsub.f32 %v5866_v9, %v2987_v20 }
 0x3ab   :  { %v6011_v33 = vpop.eup %4124  ;;  %v3082_v34 = vmul.f32 1.442695, %v3022_v59 }
 0x3ac   :  { %3144 = vadd.xlane.f32.xlu2 %v6011_v33 }
 0x3ad   :  { %4126 = vpow2.f32 %v3082_v34 }
 0x3b0   :  { %v2989_v49 = vpop.xlane.xlu2 %2988 }
 0x3b1   :  { %v3023_v2 = vsub.f32 %v5871_v40, %v2989_v49 }
 0x3b3   :  { %v6015_v13 = vpop.eup %4126  ;;  %v3084_v45 = vmul.f32 1.442695, %v3023_v2 }
 0x3b4   :  { %3146 = vadd.xlane.f32.xlu0 %v6015_v13 }
 0x3b5   :  { %4128 = vpow2.f32 %v3084_v45  ;;  %v3315_v45 = vand.u32 2147483648, %v5995_v56 }
 0x3b8   :  { %v3115_v46 = vpop.xlane.xlu2 %3114  ;;  %v2991_v44 = vpop.xlane.xlu0 %2990 }
 0x3b9   :  { %4130 = vrcp.f32 %v3115_v46  ;;  %v3024_v9 = vsub.f32 %v5877_v54, %v2991_v44  ;;  %vm3339_vm9 = vweird.f32 %v3115_v46  ;;  %v3345_v1 = vand.u32 2147483648, %v3115_v46 }
 0x3ba   :  { %4132 = vrcp.f32 %v5995_v56  ;;  %v3343_v31 = vand.u32 2147483647, %v3115_v46 }
 0x3bb   :  { %v6019_v22 = vpop.eup %4128  ;;  %v3086_v50 = vmul.f32 1.442695, %v3024_v9  ;;  %v3346_v55 = vor.u32 1.1754944e-38, %v3345_v1  ;;  %v3313_v9 = vand.u32 2147483647, %v5995_v56 }
 0x3bc   :  { %3148 = vadd.xlane.f32.xlu1 %v6019_v22  ;;  %vm3344_vm7 = vcmp.eq.f32.partialorder %v3343_v31, 8.507059e+37 }
 0x3bd   :  { %4134 = vpow2.f32 %v3086_v50  ;;  %vm3314_vm12 = vcmp.eq.f32.partialorder %v3313_v9, 8.507059e+37 }
 0x3bf   :  { %v4131_v40 = vpop.eup %4130 }
 0x3c0   :  { %v3335_v25 = vmul.f32 %v4131_v40, %v3115_v46  ;;  %v2993_v57 = vpop.xlane.xlu1 %2992  ;;  %v6023_v27 = vpop.eup %4132  ;;  %vm3340_vm1 = vweird.f32 %v4131_v40 }
 0x3c1   :  { %v6025_v29 = vpop.xlane.xlu2 %3120  ;;  %v3117_v6 = vpop.xlane.xlu0 %3116  ;;  %v3025_v54 = vsub.f32 %v5888_v18, %v2993_v57  ;;  %v3305_v63 = vmul.f32 %v6023_v27, %v5995_v56  ;;  %vm6041_vm0 = vmor %vm3339_vm9, %vm3340_vm1  ;;  %vm3310_vm6 = vweird.f32 %v6023_v27 }
 0x3c2   :  { %v3336_v15 = vsub.f32 1.0, %v3335_v25  ;;  %4136 = vrcp.f32 %v3117_v6  ;;  %v3358_v42 = vand.u32 2147483647, %v3117_v6  ;;  %v3360_v62 = vand.u32 2147483648, %v3117_v6  ;;  %vm6069_vm5 = vmor %vm3309_vm4, %vm3310_vm6 }
 0x3c3   :  { %v6028_v11 = vpop.eup %4134  ;;  %4138 = vrcp.f32 %v6025_v29  ;;  %v3088_v4 = vmul.f32 1.442695, %v3025_v54  ;;  %v3306_v21 = vsub.f32 1.0, %v3305_v63  ;;  %vm3354_vm8 = vweird.f32 %v3117_v6 }
 0x3c4   :  { %v3337_v10 = vmul.f32 %v4131_v40, %v3336_v15  ;;  %3150 = vadd.xlane.f32.xlu2 %v6028_v11  ;;  %v3361_v34 = vor.u32 1.1754944e-38, %v3360_v62  ;;  %vm3359_vm11 = vcmp.eq.f32.partialorder %v3358_v42, 8.507059e+37  ;;  %v3390_v42 = vand.u32 2147483648, %v6025_v29 }
 0x3c5   :  { %4140 = vpow2.f32 %v3088_v4  ;;  %v3307_v17 = vmul.f32 %v6023_v27, %v3306_v21  ;;  %vm3384_vm9 = vweird.f32 %v6025_v29 }
 0x3c6   :  { %v3338_v0 = vadd.f32 %v4131_v40, %v3337_v10 }
 0x3c7   :  { %v3308_v20 = vadd.f32 %v6023_v27, %v3307_v17 }
 0x3c8   :  { %v4137_v5 = vpop.eup %4136  ;;  %v6034_v41 = vpop.xlane.xlu1 %3112  ;;  %v3342_v8 = vsel %vm6041_vm0, %v4131_v40, %v3338_v0 }
 0x3c9   :  { %v3350_v61 = vmul.f32 %v4137_v5, %v3117_v6  ;;  %4142 = vrcp.f32 %v6034_v41  ;;  %v6037_v18 = vpop.eup %4138  ;;  %v6039_v19 = vpop.xlane.xlu0 %3122  ;;  %vm3355_vm3 = vweird.f32 %v4137_v5  ;;  %v3347_v59 = vsel %vm3344_vm7, %v3346_v55, %v3342_v8 }
 0x3ca   :  { %v3380_v12 = vmul.f32 %v6037_v18, %v6025_v29  ;;  %4144 = vrcp.f32 %v6039_v19  ;;  %vm3356_vm2 = vmor %vm3354_vm8, %vm3355_vm3  ;;  %v3348_v6 = vmul.f32 %v5879_v39, %v3347_v59  ;;  %v3330_v54 = vand.u32 2147483648, %v6034_v41 }
 0x3cb   :  { %v3351_v37 = vsub.f32 1.0, %v3350_v61  ;;  %v6048_v43 = vpop.eup %4140  ;;  %v3312_v63 = vsel %vm6069_vm5, %v6023_v27, %v3308_v20  ;;  %v3328_v4 = vand.u32 2147483647, %v6034_v41  ;;  %vm3324_vm13 = vweird.f32 %v6034_v41 }
 0x3cc   :  { %3152 = vadd.xlane.f32.xlu0 %v6048_v43  ;;  %v3381_v46 = vsub.f32 1.0, %v3380_v12  ;;  %v3331_v61 = vor.u32 1.1754944e-38, %v3330_v54  ;;  %vm3385_vm1 = vweird.f32 %v6037_v18  ;;  %v3403_v9 = vand.u32 2147483647, %v6039_v19 }
 0x3cd   :  { %v3352_v60 = vmul.f32 %v4137_v5, %v3351_v37  ;;  %vm3329_vm15 = vcmp.eq.f32.partialorder %v3328_v4, 8.507059e+37  ;;  %vm6098_vm0 = vmor %vm3384_vm9, %vm3385_vm1  ;;  %v3405_v57 = vand.u32 2147483648, %v6039_v19 }
 0x3ce   :  { %v3382_v56 = vmul.f32 %v6037_v18, %v3381_v46 }
 0x3cf   :  { %v4143_v26 = vpop.eup %4142  ;;  %v3353_v3 = vadd.f32 %v4137_v5, %v3352_v60  ;;  %v3388_v60 = vand.u32 2147483647, %v6025_v29  ;;  %v3391_v29 = vor.u32 1.1754944e-38, %v3390_v42 }
 0x3d0   :  { %v3320_v49 = vmul.f32 %v4143_v26, %v6034_v41  ;;  %v6058_v2 = vpop.xlane.xlu1 %3118  ;;  %v6063_v25 = vpop.eup %4144  ;;  %vm3325_vm10 = vweird.f32 %v4143_v26  ;;  %v3383_v37 = vadd.f32 %v6037_v18, %v3382_v56 }
 0x3d1   :  { %v3357_v44 = vsel %vm3356_vm2, %v4137_v5, %v3353_v3  ;;  %4146 = vrcp.f32 %v6058_v2  ;;  %v3316_v5 = vor.u32 1.1754944e-38, %v3315_v45  ;;  %v3395_v39 = vmul.f32 %v6063_v25, %v6039_v19  ;;  %vm3326_vm14 = vmor %vm3324_vm13, %vm3325_vm10 }
 0x3d2   :  { %v3362_v50 = vsel %vm3359_vm11, %v3361_v34, %v3357_v44  ;;  %v3321_v40 = vsub.f32 1.0, %v3320_v49  ;;  %v3375_v20 = vand.u32 2147483648, %v6058_v2  ;;  %vm3389_vm4 = vcmp.eq.f32.partialorder %v3388_v60, 8.507059e+37 }
 0x3d3   :  { %v3363_v15 = vmul.f32 %v5890_v36, %v3362_v50  ;;  %v3317_v36 = vsel %vm3314_vm12, %v3316_v5, %v3312_v63  ;;  %v3396_v62 = vsub.f32 1.0, %v3395_v39  ;;  %vm3369_vm6 = vweird.f32 %v6058_v2 }
 0x3d4   :  { %v3322_v10 = vmul.f32 %v4143_v26, %v3321_v40  ;;  %v3318_v8 = vmul.f32 %v5854_v38, %v3317_v36  ;;  %v3387_v38 = vsel %vm6098_vm0, %v6037_v18, %v3383_v37  ;;  %v3376_v50 = vor.u32 1.1754944e-38, %v3375_v20 }
 0x3d5   :  { %v3979_v21 = vpack.c.bf16 %v3363_v15, %v3348_v6  ;;  %v3397_v49 = vmul.f32 %v6063_v25, %v3396_v62  ;;  %v3392_v18 = vsel %vm3389_vm4, %v3391_v29, %v3387_v38  ;;  %vm3400_vm2 = vweird.f32 %v6063_v25 }
 0x3d6   :  { %v3323_v0 = vadd.f32 %v4143_v26, %v3322_v10  ;;  %v3393_v10 = vmul.f32 %v5885_v14, %v3392_v18  ;;  %vm3399_vm11 = vweird.f32 %v6039_v19  ;;  %vm6129_vm10 = vcmp.eq.f32.partialorder %v3403_v9, 8.507059e+37 }
 0x3d7   :  { %4031 = vst [vmem:[#allocation2 + $0x30] sm:$0xff] %v3979_v21   ;;  %v6084_v27 = vpop.xlane.xlu2 %3126  ;;  %v4147_v1 = vpop.eup %4146  ;;  %vm6125_vm5 = vmor %vm3399_vm11, %vm3400_vm2 }
 0x3d8   :  { %v3327_v58 = vsel %vm3326_vm14, %v4143_v26, %v3323_v0  ;;  %4148 = vrcp.f32 %v6084_v27  ;;  %v6087_v31 = vpop.xlane.xlu1 %3124  ;;  %v3365_v41 = vmul.f32 %v4147_v1, %v6058_v2  ;;  %vm3370_vm3 = vweird.f32 %v4147_v1 }
 0x3d9   :  { %v3332_v17 = vsel %vm3329_vm15, %v3331_v61, %v3327_v58  ;;  %4150 = vrcp.f32 %v6087_v31  ;;  %vm3371_vm7 = vmor %vm3369_vm6, %vm3370_vm3  ;;  %v3406_v0 = vor.u32 1.1754944e-38, %v3405_v57  ;;  %v3420_v61 = vand.u32 2147483648, %v6087_v31 }
 0x3da   :  { %v3333_v12 = vmul.f32 %v5898_v51, %v3332_v17  ;;  %v3366_v55 = vsub.f32 1.0, %v3365_v41  ;;  %v3373_v51 = vand.u32 2147483647, %v6058_v2  ;;  %v3398_v2 = vadd.f32 %v6063_v25, %v3397_v49 }
 0x3db   :  { %v3418_v19 = vand.u32 2147483647, %v6087_v31  ;;  %vm3429_vm13 = vweird.f32 %v6084_v27  ;;  %v3435_v41 = vand.u32 2147483648, %v6084_v27  ;;  %vm3414_vm15 = vweird.f32 %v6087_v31 }
 0x3dc   :  { %v3974_v3 = vpack.c.bf16 %v3333_v12, %v3318_v8  ;;  %v3367_v59 = vmul.f32 %v4147_v1, %v3366_v55  ;;  %vm3374_vm8 = vcmp.eq.f32.partialorder %v3373_v51, 8.507059e+37  ;;  %v3433_v42 = vand.u32 2147483647, %v6084_v27 }
 0x3dd   :  { %v3421_v62 = vor.u32 1.1754944e-38, %v3420_v61  ;;  %vm3419_vm0 = vcmp.eq.f32.partialorder %v3418_v19, 8.507059e+37 }
 0x3de   :  { %v6107_v34 = vpop.eup %4148  ;;  %4030 = vst [vmem:[#allocation2 + $0x28] sm:$0xff] %v3974_v3   ;;  %v3368_v45 = vadd.f32 %v4147_v1, %v3367_v59  ;;  %v3436_v59 = vor.u32 1.1754944e-38, %v3435_v41  ;;  %vm3434_vm4 = vcmp.eq.f32.partialorder %v3433_v42, 8.507059e+37 }
 0x3df   :  { %v3425_v46 = vmul.f32 %v6107_v34, %v6084_v27  ;;  %v6113_v44 = vpop.xlane.xlu0 %3128  ;;  %v4151_v40 = vpop.eup %4150  ;;  %vm3430_vm14 = vweird.f32 %v6107_v34 }
 0x3e0   :  { %4152 = vrcp.f32 %v6113_v44  ;;  %v3372_v6 = vsel %vm3371_vm7, %v4147_v1, %v3368_v45  ;;  %v3410_v63 = vmul.f32 %v4151_v40, %v6087_v31  ;;  %vm3415_vm12 = vweird.f32 %v4151_v40  ;;  %vm6147_vm9 = vmor %vm3429_vm13, %vm3430_vm14 }
 0x3e1   :  { %v3426_v15 = vsub.f32 1.0, %v3425_v46  ;;  %v3377_v54 = vsel %vm3374_vm8, %v3376_v50, %v3372_v6  ;;  %vm3416_vm1 = vmor %vm3414_vm15, %vm3415_vm12  ;;  %v3448_v26 = vand.u32 2147483647, %v6113_v44  ;;  %v3450_v3 = vand.u32 2147483648, %v6113_v44 }
 0x3e2   :  { %v3378_v4 = vmul.f32 %v5913_v16, %v3377_v54  ;;  %v3411_v56 = vsub.f32 1.0, %v3410_v63  ;;  %v3402_v16 = vsel %vm6125_vm5, %v6063_v25, %v3398_v2  ;;  %vm3444_vm6 = vweird.f32 %v6113_v44 }
 0x3e3   :  { %v3427_v5 = vmul.f32 %v6107_v34, %v3426_v15  ;;  %v3407_v25 = vsel %vm6129_vm10, %v3406_v0, %v3402_v16  ;;  %v3451_v18 = vor.u32 1.1754944e-38, %v3450_v3  ;;  %vm3449_vm8 = vcmp.eq.f32.partialorder %v3448_v26, 8.507059e+37 }
 0x3e4   :  { %v3984_v36 = vpack.c.bf16 %v3393_v10, %v3378_v4  ;;  %v3412_v1 = vmul.f32 %v4151_v40, %v3411_v56  ;;  %v3408_v27 = vmul.f32 %v5896_v7, %v3407_v25 }
 0x3e5   :  { %v3428_v58 = vadd.f32 %v6107_v34, %v3427_v5 }
 0x3e6   :  { %v4153_v14 = vpop.eup %4152  ;;  %4032 = vst [vmem:[#allocation2 + $0x38] sm:$0xff] %v3984_v36   ;;  %v3413_v8 = vadd.f32 %v4151_v40, %v3412_v1 }
 0x3e7   :  { %v3440_v37 = vmul.f32 %v4153_v14, %v6113_v44  ;;  %v3131_v17 = vpop.xlane.xlu1 %3130  ;;  %v3432_v31 = vsel %vm6147_vm9, %v6107_v34, %v3428_v58  ;;  %vm3445_vm3 = vweird.f32 %v4153_v14 }
 0x3e8   :  { %4154 = vrcp.f32 %v3131_v17  ;;  %v3417_v55 = vsel %vm3416_vm1, %v4151_v40, %v3413_v8  ;;  %v3437_v45 = vsel %vm3434_vm4, %v3436_v59, %v3432_v31  ;;  %vm3446_vm7 = vmor %vm3444_vm6, %vm3445_vm3  ;;  %v3465_v10 = vand.u32 2147483648, %v3131_v17 }
 0x3e9   :  { %v3441_v12 = vsub.f32 1.0, %v3440_v37  ;;  %v3422_v20 = vsel %vm3419_vm0, %v3421_v62, %v3417_v55  ;;  %v3438_v7 = vmul.f32 %v5920_v53, %v3437_v45  ;;  %vm3459_vm11 = vweird.f32 %v3131_v17 }
 0x3ea   :  { %v3423_v51 = vmul.f32 %v5922_v48, %v3422_v20  ;;  %v3463_v4 = vand.u32 2147483647, %v3131_v17  ;;  %v3466_v39 = vor.u32 1.1754944e-38, %v3465_v10 }
 0x3eb   :  { %v3442_v38 = vmul.f32 %v4153_v14, %v3441_v12 }
 0x3ec   :  { %v3989_v46 = vpack.c.bf16 %v3423_v51, %v3408_v27  ;;  %vm3464_vm12 = vcmp.eq.f32.partialorder %v3463_v4, 8.507059e+37 }
 0x3ed   :  { %v3443_v29 = vadd.f32 %v4153_v14, %v3442_v38 }
 0x3ee   :  { %v4155_v49 = vpop.eup %4154  ;;  %4033 = vst [vmem:[#allocation2 + $0x40] sm:$0xff] %v3989_v46  }
 0x3ef   :  { %v3447_v9 = vsel %vm3446_vm7, %v4153_v14, %v3443_v29  ;;  %v3455_v34 = vmul.f32 %v4155_v49, %v3131_v17  ;;  %v3133_v50 = vpop.xlane.xlu2 %3132  ;;  %vm3460_vm2 = vweird.f32 %v4155_v49 }
 0x3f0   :  { %v3452_v40 = vsel %vm3449_vm8, %v3451_v18, %v3447_v9  ;;  %4156 = vrcp.f32 %v3133_v50  ;;  %vm3461_vm5 = vmor %vm3459_vm11, %vm3460_vm2  ;;  %v3480_v56 = vand.u32 2147483648, %v3133_v50  ;;  %vm3474_vm13 = vweird.f32 %v3133_v50 }
 0x3f1   :  { %v3453_v48 = vmul.f32 %v5937_v35, %v3452_v40  ;;  %v3456_v57 = vsub.f32 1.0, %v3455_v34  ;;  %v3478_v35 = vand.u32 2147483647, %v3133_v50 }
 0x3f2   :  { %v3481_v14 = vor.u32 1.1754944e-38, %v3480_v56 }
 0x3f3   :  { %v3994_v6 = vpack.c.bf16 %v3453_v48, %v3438_v7  ;;  %v3457_v15 = vmul.f32 %v4155_v49, %v3456_v57  ;;  %vm3479_vm15 = vcmp.eq.f32.partialorder %v3478_v35, 8.507059e+37 }
 0x3f5   :  { %4034 = vst [vmem:[#allocation2 + $0x48] sm:$0xff] %v3994_v6   ;;  %v3458_v2 = vadd.f32 %v4155_v49, %v3457_v15 }
 0x3f6   :  { %v4157_v44 = vpop.eup %4156 }
 0x3f7   :  { %v3470_v54 = vmul.f32 %v4157_v44, %v3133_v50  ;;  %v3135_v63 = vpop.xlane.xlu0 %3134  ;;  %v3462_v21 = vsel %vm3461_vm5, %v4155_v49, %v3458_v2  ;;  %vm3475_vm10 = vweird.f32 %v4157_v44 }
 0x3f8   :  { %4158 = vrcp.f32 %v3135_v63  ;;  %v3467_v61 = vsel %vm3464_vm12, %v3466_v39, %v3462_v21  ;;  %vm3476_vm14 = vmor %vm3474_vm13, %vm3475_vm10  ;;  %v3495_v55 = vand.u32 2147483648, %v3135_v63  ;;  %vm3489_vm9 = vweird.f32 %v3135_v63 }
 0x3f9   :  { %v3471_v5 = vsub.f32 1.0, %v3470_v54  ;;  %v3468_v37 = vmul.f32 %v5946_v28, %v3467_v61  ;;  %v3493_v26 = vand.u32 2147483647, %v3135_v63 }
 0x3fa   :  { %v3496_v38 = vor.u32 1.1754944e-38, %v3495_v55 }
 0x3fb   :  { %v3472_v53 = vmul.f32 %v4157_v44, %v3471_v5  ;;  %vm3494_vm4 = vcmp.eq.f32.partialorder %v3493_v26, 8.507059e+37 }
 0x3fd   :  { %v3473_v0 = vadd.f32 %v4157_v44, %v3472_v53 }
 0x3fe   :  { %v4159_v36 = vpop.eup %4158 }
 0x3ff   :  { %v3477_v16 = vsel %vm3476_vm14, %v4157_v44, %v3473_v0  ;;  %v3485_v1 = vmul.f32 %v4159_v36, %v3135_v63  ;;  %v3137_v19 = vpop.xlane.xlu1 %3136  ;;  %vm3490_vm1 = vweird.f32 %v4159_v36 }
 0x400   :  { %v3482_v58 = vsel %vm3479_vm15, %v3481_v14, %v3477_v16  ;;  %4160 = vrcp.f32 %v3137_v19  ;;  %vm3491_vm0 = vmor %vm3489_vm9, %vm3490_vm1  ;;  %v3510_v31 = vand.u32 2147483648, %v3137_v19  ;;  %vm3504_vm6 = vweird.f32 %v3137_v19 }
 0x401   :  { %v3483_v17 = vmul.f32 %v5960_v30, %v3482_v58  ;;  %v3486_v41 = vsub.f32 1.0, %v3485_v1  ;;  %v3508_v30 = vand.u32 2147483647, %v3137_v19 }
 0x402   :  { %v3511_v29 = vor.u32 1.1754944e-38, %v3510_v31 }
 0x403   :  { %v3999_v8 = vpack.c.bf16 %v3483_v17, %v3468_v37  ;;  %v3487_v25 = vmul.f32 %v4159_v36, %v3486_v41  ;;  %vm3509_vm8 = vcmp.eq.f32.partialorder %v3508_v30, 8.507059e+37 }
 0x405   :  { %4035 = vst [vmem:[#allocation2 + $0x50] sm:$0xff] %v3999_v8   ;;  %v3488_v62 = vadd.f32 %v4159_v36, %v3487_v25 }
 0x406   :  { %v4161_v42 = vpop.eup %4160 }
 0x407   :  { %v3500_v12 = vmul.f32 %v4161_v42, %v3137_v19  ;;  %v3139_v60 = vpop.xlane.xlu2 %3138  ;;  %v3492_v20 = vsel %vm3491_vm0, %v4159_v36, %v3488_v62  ;;  %vm3505_vm3 = vweird.f32 %v4161_v42 }
 0x408   :  { %4162 = vrcp.f32 %v3139_v60  ;;  %v3497_v51 = vsel %vm3494_vm4, %v3496_v38, %v3492_v20  ;;  %vm3506_vm7 = vmor %vm3504_vm6, %vm3505_vm3  ;;  %v3525_v44 = vand.u32 2147483648, %v3139_v60  ;;  %vm3519_vm11 = vweird.f32 %v3139_v60 }
 0x409   :  { %v3501_v3 = vsub.f32 1.0, %v3500_v12  ;;  %v3498_v9 = vmul.f32 %v5969_v47, %v3497_v51  ;;  %v3523_v2 = vand.u32 2147483647, %v3139_v60 }
 0x40a   :  { %v3526_v4 = vor.u32 1.1754944e-38, %v3525_v44 }
 0x40b   :  { %v3502_v28 = vmul.f32 %v4161_v42, %v3501_v3  ;;  %vm3524_vm12 = vcmp.eq.f32.partialorder %v3523_v2, 8.507059e+37 }
 0x40d   :  { %v3503_v27 = vadd.f32 %v4161_v42, %v3502_v28 }
 0x40e   :  { %v4163_v59 = vpop.eup %4162 }
 0x40f   :  { %v3507_v49 = vsel %vm3506_vm7, %v4161_v42, %v3503_v27  ;;  %v3515_v45 = vmul.f32 %v4163_v59, %v3139_v60  ;;  %v3141_v46 = vpop.xlane.xlu0 %3140  ;;  %vm3520_vm2 = vweird.f32 %v4163_v59 }
 0x410   :  { %v3512_v18 = vsel %vm3509_vm8, %v3511_v29, %v3507_v49  ;;  %4164 = vrcp.f32 %v3141_v46  ;;  %vm3521_vm5 = vmor %vm3519_vm11, %vm3520_vm2  ;;  %v3540_v63 = vand.u32 2147483648, %v3141_v46  ;;  %vm3534_vm13 = vweird.f32 %v3141_v46 }
 0x411   :  { %v3513_v34 = vmul.f32 %v5983_v24, %v3512_v18  ;;  %v3516_v50 = vsub.f32 1.0, %v3515_v45  ;;  %v3538_v24 = vand.u32 2147483647, %v3141_v46 }
 0x412   :  { %v3541_v53 = vor.u32 1.1754944e-38, %v3540_v63 }
 0x413   :  { %v4004_v40 = vpack.c.bf16 %v3513_v34, %v3498_v9  ;;  %v3517_v7 = vmul.f32 %v4163_v59, %v3516_v50  ;;  %vm3539_vm15 = vcmp.eq.f32.partialorder %v3538_v24, 8.507059e+37 }
 0x415   :  { %4036 = vst [vmem:[#allocation2 + $0x58] sm:$0xff] %v4004_v40   ;;  %v3518_v57 = vadd.f32 %v4163_v59, %v3517_v7 }
 0x416   :  { %v4165_v48 = vpop.eup %4164 }
 0x417   :  { %v3530_v6 = vmul.f32 %v4165_v48, %v3141_v46  ;;  %v3143_v15 = vpop.xlane.xlu1 %3142  ;;  %v3522_v10 = vsel %vm3521_vm5, %v4163_v59, %v3518_v57  ;;  %vm3535_vm10 = vweird.f32 %v4165_v48 }
 0x418   :  { %4166 = vrcp.f32 %v3143_v15  ;;  %v3527_v21 = vsel %vm3524_vm12, %v3526_v4, %v3522_v10  ;;  %vm3536_vm14 = vmor %vm3534_vm13, %vm3535_vm10  ;;  %v3555_v8 = vand.u32 2147483648, %v3143_v15  ;;  %vm3549_vm9 = vweird.f32 %v3143_v15 }
 0x419   :  { %v3531_v54 = vsub.f32 1.0, %v3530_v6  ;;  %v3528_v61 = vmul.f32 %v5992_v32, %v3527_v21  ;;  %v3553_v25 = vand.u32 2147483647, %v3143_v15 }
 0x41a   :  { %v3556_v60 = vor.u32 1.1754944e-38, %v3555_v8 }
 0x41b   :  { %v3532_v47 = vmul.f32 %v4165_v48, %v3531_v54  ;;  %vm3554_vm4 = vcmp.eq.f32.partialorder %v3553_v25, 8.507059e+37 }
 0x41d   :  { %v3533_v5 = vadd.f32 %v4165_v48, %v3532_v47 }
 0x41e   :  { %v4167_v56 = vpop.eup %4166 }
 0x41f   :  { %v3537_v35 = vsel %vm3536_vm14, %v4165_v48, %v3533_v5  ;;  %v3545_v39 = vmul.f32 %v4167_v56, %v3143_v15  ;;  %v3145_v0 = vpop.xlane.xlu2 %3144  ;;  %vm3550_vm1 = vweird.f32 %v4167_v56 }
 0x420   :  { %v3542_v36 = vsel %vm3539_vm15, %v3541_v53, %v3537_v35  ;;  %4168 = vrcp.f32 %v3145_v0  ;;  %vm3551_vm0 = vmor %vm3549_vm9, %vm3550_vm1  ;;  %v3570_v62 = vand.u32 2147483648, %v3145_v0  ;;  %vm3564_vm6 = vweird.f32 %v3145_v0 }
 0x421   :  { %v3543_v14 = vmul.f32 %v6001_v23, %v3542_v36  ;;  %v3546_v16 = vsub.f32 1.0, %v3545_v39  ;;  %v3568_v23 = vand.u32 2147483647, %v3145_v0 }
 0x422   :  { %v3571_v31 = vor.u32 1.1754944e-38, %v3570_v62 }
 0x423   :  { %v4009_v1 = vpack.c.bf16 %v3543_v14, %v3528_v61  ;;  %v3547_v19 = vmul.f32 %v4167_v56, %v3546_v16  ;;  %vm3569_vm8 = vcmp.eq.f32.partialorder %v3568_v23, 8.507059e+37 }
 0x425   :  { %4037 = vst [vmem:[#allocation2 + $0x60] sm:$0xff] %v4009_v1   ;;  %v3548_v37 = vadd.f32 %v4167_v56, %v3547_v19 }
 0x426   :  { %v4169_v58 = vpop.eup %4168 }
 0x427   :  { %v3560_v17 = vmul.f32 %v4169_v58, %v3145_v0  ;;  %v3147_v41 = vpop.xlane.xlu0 %3146  ;;  %v3552_v12 = vsel %vm3551_vm0, %v4167_v56, %v3548_v37  ;;  %vm3565_vm3 = vweird.f32 %v4169_v58 }
 0x428   :  { %4170 = vrcp.f32 %v3147_v41  ;;  %v3557_v3 = vsel %vm3554_vm4, %v3556_v60, %v3552_v12  ;;  %vm3566_vm7 = vmor %vm3564_vm6, %vm3565_vm3  ;;  %v3585_v9 = vand.u32 2147483648, %v3147_v41  ;;  %vm3579_vm11 = vweird.f32 %v3147_v41 }
 0x429   :  { %v3561_v42 = vsub.f32 1.0, %v3560_v17  ;;  %v3558_v27 = vmul.f32 %v6007_v52, %v3557_v3  ;;  %v3583_v50 = vand.u32 2147483647, %v3147_v41 }
 0x42a   :  { %v3586_v57 = vor.u32 1.1754944e-38, %v3585_v9 }
 0x42b   :  { %v3562_v32 = vmul.f32 %v4169_v58, %v3561_v42  ;;  %vm3584_vm12 = vcmp.eq.f32.partialorder %v3583_v50, 8.507059e+37 }
 0x42d   :  { %v3563_v55 = vadd.f32 %v4169_v58, %v3562_v32 }
 0x42e   :  { %v4171_v26 = vpop.eup %4170 }
 0x42f   :  { %v3567_v20 = vsel %vm3566_vm7, %v4169_v58, %v3563_v55  ;;  %v3575_v28 = vmul.f32 %v4171_v26, %v3147_v41  ;;  %v3149_v30 = vpop.xlane.xlu1 %3148  ;;  %vm3580_vm2 = vweird.f32 %v4171_v26 }
 0x430   :  { %v3572_v38 = vsel %vm3569_vm8, %v3571_v31, %v3567_v20  ;;  %4172 = vrcp.f32 %v3149_v30  ;;  %vm3581_vm5 = vmor %vm3579_vm11, %vm3580_vm2  ;;  %v3600_v7 = vand.u32 2147483648, %v3149_v30  ;;  %vm3594_vm13 = vweird.f32 %v3149_v30 }
 0x431   :  { %v3573_v59 = vmul.f32 %v6011_v33, %v3572_v38  ;;  %v3576_v51 = vsub.f32 1.0, %v3575_v28  ;;  %v3598_v33 = vand.u32 2147483647, %v3149_v30 }
 0x432   :  { %v3601_v44 = vor.u32 1.1754944e-38, %v3600_v7 }
 0x433   :  { %v4014_v29 = vpack.c.bf16 %v3573_v59, %v3558_v27  ;;  %v3577_v49 = vmul.f32 %v4171_v26, %v3576_v51  ;;  %vm3599_vm15 = vcmp.eq.f32.partialorder %v3598_v33, 8.507059e+37 }
 0x435   :  { %4038 = vst [vmem:[#allocation2 + $0x68] sm:$0xff] %v4014_v29   ;;  %v3578_v46 = vadd.f32 %v4171_v26, %v3577_v49 }
 0x436   :  { %v4173_v45 = vpop.eup %4172 }
 0x437   :  { %v3590_v18 = vmul.f32 %v4173_v45, %v3149_v30  ;;  %v3151_v34 = vpop.xlane.xlu2 %3150  ;;  %v3582_v48 = vsel %vm3581_vm5, %v4171_v26, %v3578_v46  ;;  %vm3595_vm10 = vweird.f32 %v4173_v45 }
 0x438   :  { %4174 = vrcp.f32 %v3151_v34  ;;  %v3587_v15 = vsel %vm3584_vm12, %v3586_v57, %v3582_v48  ;;  %vm3596_vm14 = vmor %vm3594_vm13, %vm3595_vm10  ;;  %v3615_v0 = vand.u32 2147483648, %v3151_v34  ;;  %vm3609_vm9 = vweird.f32 %v3151_v34 }
 0x439   :  { %v3591_v40 = vsub.f32 1.0, %v3590_v18  ;;  %v3588_v47 = vmul.f32 %v6015_v13, %v3587_v15  ;;  %v3613_v36 = vand.u32 2147483647, %v3151_v34 }
 0x43a   :  { %v3616_v1 = vor.u32 1.1754944e-38, %v3615_v0 }
 0x43b   :  { %v3592_v52 = vmul.f32 %v4173_v45, %v3591_v40  ;;  %vm3614_vm4 = vcmp.eq.f32.partialorder %v3613_v36, 8.507059e+37 }
 0x43d   :  { %v3593_v6 = vadd.f32 %v4173_v45, %v3592_v52 }
 0x43e   :  { %v4175_v2 = vpop.eup %4174 }
 0x43f   :  { %v3597_v54 = vsel %vm3596_vm14, %v4173_v45, %v3593_v6  ;;  %v3605_v10 = vmul.f32 %v4175_v2, %v3151_v34  ;;  %v3153_v4 = vpop.xlane.xlu0 %3152  ;;  %vm3610_vm1 = vweird.f32 %v4175_v2 }
 0x440   :  { %v3602_v63 = vsel %vm3599_vm15, %v3601_v44, %v3597_v54  ;;  %4176 = vrcp.f32 %v3153_v4  ;;  %vm3611_vm0 = vmor %vm3609_vm9, %vm3610_vm1  ;;  %v3630_v14 = vand.u32 2147483648, %v3153_v4  ;;  %vm3624_vm6 = vweird.f32 %v3153_v4 }
 0x441   :  { %v3603_v24 = vmul.f32 %v6019_v22, %v3602_v63  ;;  %v3606_v5 = vsub.f32 1.0, %v3605_v10  ;;  %v3628_v22 = vand.u32 2147483647, %v3153_v4 }
 0x442   :  { %v3631_v37 = vor.u32 1.1754944e-38, %v3630_v14 }
 0x443   :  { %v4019_v56 = vpack.c.bf16 %v3603_v24, %v3588_v47  ;;  %v3607_v21 = vmul.f32 %v4175_v2, %v3606_v5  ;;  %vm3629_vm8 = vcmp.eq.f32.partialorder %v3628_v22, 8.507059e+37 }
 0x445   :  { %4039 = vst [vmem:[#allocation2 + $0x70] sm:$0xff] %v4019_v56   ;;  %v3608_v35 = vadd.f32 %v4175_v2, %v3607_v21 }
 0x446   :  { %v4177_v53 = vpop.eup %4176 }
 0x447   :  { %v3620_v39 = vmul.f32 %v4177_v53, %v3153_v4  ;;  %v3612_v16 = vsel %vm3611_vm0, %v4175_v2, %v3608_v35  ;;  %vm3625_vm3 = vweird.f32 %v4177_v53 }
 0x448   :  { %v3617_v58 = vsel %vm3614_vm4, %v3616_v1, %v3612_v16  ;;  %vm3626_vm7 = vmor %vm3624_vm6, %vm3625_vm3 }
 0x449   :  { %v3621_v61 = vsub.f32 1.0, %v3620_v39  ;;  %v3618_v8 = vmul.f32 %v6028_v11, %v3617_v58 }
 0x44b   :  { %v3622_v13 = vmul.f32 %v4177_v53, %v3621_v61 }
 0x44d   :  { %v3623_v19 = vadd.f32 %v4177_v53, %v3622_v13 }
 0x44f   :  { %v3627_v17 = vsel %vm3626_vm7, %v4177_v53, %v3623_v19 }
 0x450   :  { %v3632_v41 = vsel %vm3629_vm8, %v3631_v37, %v3627_v17 }
 0x451   :  { %v3633_v25 = vmul.f32 %v6048_v43, %v3632_v41 }
 0x453   :  { %v4024_v42 = vpack.c.bf16 %v3633_v25, %v3618_v8 }
 0x455   :  { %4040 = vst [vmem:[#allocation2 + $0x78] sm:$0xff] %v4024_v42  }
 0x456   :  { %3710 = dma.vmem_to_hbm [thread:$0]  %s3703_s15, 2048, %s3705_s18, [#allocation3], %s4205_s19, %s4205_s19, %s4206_s20  }
 0x457   :  { %4202 = dma.done.wait [#allocation3], 2048  }
 0x458   :  { %4203 = vsyncadd [#allocation3], 4294965248 }
 0x459   :  { %3715 = vsyncpa [#allocation3], 1 }

</bundles_post_ra>
